<compile_context>
chip_gen: v6e
topology: v6e:2x2x1
jax: 0.10.0
libtpu: 0.0.40
codegen_flags: <defaults>
</compile_context>

<pallas_src>
import functools
import math

import jax
import jax.numpy as jnp
from jax.experimental import pallas as pl
from jax.experimental.pallas import tpu as pltpu

EPS_LN = 1e-5          # nn.LayerNorm default eps
NEG_INF = -1e9         # src_key_padding_mask -> additive bias
NUM_HEADS = 4          # nhead=4 in the module
FFN_DIM = 2048         # dim_feedforward=2048 hardcoded in the module


def _layernorm(y, g, b):
    mu = jnp.mean(y, axis=-1, keepdims=True)
    var = jnp.mean((y - mu) ** 2, axis=-1, keepdims=True)
    return (y - mu) * jax.lax.rsqrt(var + EPS_LN) * g + b


# ---------------- fused: L x nn.TransformerEncoderLayer + mean-pool + l2norm -
def _tern_stack_kernel(x_ref, bias_ref, valid_ref,
                       wqkv_ref, bqkv_ref, wo_ref, bo_ref,
                       w1_ref, b1_ref, w2_ref, b2_ref,
                       g1_ref, beta1_ref, g2_ref, beta2_ref,
                       o_ref, aggr_ref, carry_ref,
                       *, num_heads, n_seq, seq_len):
    G, S, H = n_seq, seq_len, num_heads
    layer = pl.program_id(1)
    n_layers = pl.num_programs(1)

    # Layer 0: load the (bf16) input into the f32 VMEM carry that persists
    # across the layer grid axis (no HBM round trip between layers).
    @pl.when(layer == 0)
    def _():
        carry_ref[...] = x_ref[...].astype(jnp.float32)

    x2 = carry_ref[...]                              # (G*S, D) f32
    D = x2.shape[-1]
    hd = D // H

    # ---- self-attention -----------------------------------------------------
    # Fused QKV projection; softmax scale 1/sqrt(hd) is pre-folded into Wq/bq.
    qkv = (jnp.dot(x2.astype(jnp.bfloat16), wqkv_ref[0],
                   preferred_element_type=jnp.float32) + bqkv_ref[0])
    qkv_bf = qkv.astype(jnp.bfloat16).reshape(G, S, 3 * D)   # cast once

    def heads_to_batch(base):
        # (G, S, H*hd) columns -> (H*G, S, hd): static lane slices stacked on
        # the batch axis so BOTH attention matmuls are single batched einsums.
        return jnp.concatenate(
            [qkv_bf[:, :, base + h * hd: base + (h + 1) * hd] for h in range(H)],
            axis=0)

    qb = heads_to_batch(0)           # (H*G, S, hd) bf16 (pre-scaled)
    kb = heads_to_batch(D)
    vb = heads_to_batch(2 * D)

    s = jnp.einsum('bqd,bkd->bqk', qb, kb,
                   preferred_element_type=jnp.float32)        # (H*G, S, S)
    # Key-padding bias via implicit broadcasting (no (G,S,S) materialization).
    s4 = s.reshape(H, G, S, S) + bias_ref[...][None]          # + (1, G, 1, S)
    m = jnp.max(s4, axis=-1, keepdims=True)
    e = jnp.exp(s4 - m)
    p = e * pl.reciprocal(jnp.sum(e, axis=-1, keepdims=True), approx=True)
    p = p.reshape(H * G, S, S).astype(jnp.bfloat16)

    ctx = jnp.einsum('bqk,bkd->bqd', p, vb,
                     preferred_element_type=jnp.float32)      # (H*G, S, hd)
    heads = jnp.concatenate([ctx[h * G:(h + 1) * G] for h in range(H)],
                            axis=-1).reshape(G * S, D)        # (G*S, D) f32
    attn = (jnp.dot(heads.astype(jnp.bfloat16), wo_ref[0],
                    preferred_element_type=jnp.float32) + bo_ref[0])

    # ---- post-norm + FFN (PyTorch default norm_first=False; dropout=eval) ---
    x1 = _layernorm(x2 + attn, g1_ref[0], beta1_ref[0])
    h1 = jnp.maximum(
        jnp.dot(x1.astype(jnp.bfloat16), w1_ref[0],
                preferred_element_type=jnp.float32) + b1_ref[0],
        0.0).astype(jnp.bfloat16)                             # bf16 as part of ReLU
    ff = jnp.dot(h1, w2_ref[0], preferred_element_type=jnp.float32) + b2_ref[0]
    out = _layernorm(x1 + ff, g2_ref[0], beta2_ref[0])        # (G*S, D) f32

    carry_ref[...] = out

    # ---- last layer epilogue: write tokens + fused Aggregator('mean')+l2norm
    @pl.when(layer == n_layers - 1)
    def _():
        o_ref[...] = out
        xg = out.reshape(G, S, D)
        vmask = valid_ref[...]                                # (G, S, 1)
        summed = jnp.sum(xg * vmask, axis=1, keepdims=True)   # (G, 1, D)
        cnt = jnp.maximum(jnp.sum(vmask, axis=1, keepdims=True), 1.0)
        mean = summed / cnt
        sumsq = jnp.sum(mean * mean, axis=-1, keepdims=True)
        aggr_ref[...] = mean * jax.lax.rsqrt(jnp.maximum(sumsq, 1e-24))


def _num_parallel_blocks():
    """2 groups only on 2-TensorCore chips (v7x); 1 elsewhere."""
    try:
        kind = jax.devices()[0].device_kind.lower()
    except Exception:
        return 1
    return 2 if ("v7" in kind or "7x" in kind) else 1


def tern_transformer_and_pool(x, bias, valid, params, *, num_heads=NUM_HEADS):
    """x: (BB, S, D) bf16 fused captions+images; bias: (BB, 1, S) additive
    key-padding bias; valid: (BB, S, 1) 1.0 for valid tokens.
    Returns (per-token f32 (BB, S, D), pooled+l2normed f32 (BB, D))."""
    BB, S, D = x.shape
    assert D % num_heads == 0
    L = params["wqkv"].shape[0]
    F = params["w1"].shape[-1]

    nb = max(1, min(_num_parallel_blocks(), BB))
    while BB % nb != 0:
        nb -= 1
    G = BB // nb                                      # sequences per grid step
    x_flat = x.reshape(BB * S, D)

    def _w_spec(tail):
        n = len(tail)
        return pl.BlockSpec((1,) + tail, lambda i, l, _n=n: (l,) + (0,) * _n)

    def _vmem_estimate_bytes():
        bf, f4 = 2, 4
        w_layer = ((D * 3 * D + D * D + D * F + F * D) * bf
                   + (3 * D + D + F + D + 4 * D) * f4)
        x_in, x_out = G * S * D * bf, G * S * D * f4
        small = 2 * G * S * f4 + G * D * f4
        interm = (G * S * 3 * D * (f4 + bf)            # qkv f32 + bf16 copy
                  + 3 * G * S * D * bf                 # qb / kb / vb
                  + 2 * num_heads * G * S * S * f4     # scores + probs
                  + G * S * F * (f4 + bf)              # h1
                  + 6 * G * S * D * f4)                # residual / LN temps
        carry = G * S * D * f4
        return 2 * (w_layer + x_in + x_out + small) + carry + interm

    vmem_limit = int(min(max(2 * _vmem_estimate_bytes(), 16 * 1024 * 1024),
                         60 * 1024 * 1024))

    kernel = functools.partial(_tern_stack_kernel, num_heads=num_heads,
                               n_seq=G, seq_len=S)
    out_flat, aggr = pl.pallas_call(
        kernel,
        out_shape=(jax.ShapeDtypeStruct((BB * S, D), jnp.float32),
                   jax.ShapeDtypeStruct((BB, 1, D), jnp.float32)),
        grid=(nb, L),
        in_specs=[
            pl.BlockSpec((G * S, D), lambda i, l: (i, 0)),       # x (bf16)
            pl.BlockSpec((G, 1, S), lambda i, l: (i, 0, 0)),     # key-pad bias
            pl.BlockSpec((G, S, 1), lambda i, l: (i, 0, 0)),     # valid mask
            _w_spec((D, 3 * D)), _w_spec((1, 3 * D)),            # fused QKV
            _w_spec((D, D)), _w_spec((1, D)),                    # out proj
            _w_spec((D, F)), _w_spec((1, F)),                    # FFN linear1
            _w_spec((F, D)), _w_spec((1, D)),                    # FFN linear2
            _w_spec((1, D)), _w_spec((1, D)),                    # LN1
            _w_spec((1, D)), _w_spec((1, D)),                    # LN2
        ],
        out_specs=(pl.BlockSpec((G * S, D), lambda i, l: (i, 0)),
                   pl.BlockSpec((G, 1, D), lambda i, l: (i, 0, 0))),
        scratch_shapes=[pltpu.VMEM((G * S, D), jnp.float32)],    # layer carry
        compiler_params=pltpu.CompilerParams(
            dimension_semantics=("parallel", "arbitrary"),
            vmem_limit_bytes=vmem_limit),
    )(x_flat, bias, valid,
      params["wqkv"], params["bqkv"], params["wo"], params["bo"],
      params["w1"], params["b1"], params["w2"], params["b2"],
      params["g1"], params["beta1"], params["g2"], params["beta2"])

    return out_flat.reshape(BB, S, D), aggr.reshape(BB, D)


# ---------------------------------------------------------- parameters -------
def init_params(key, vocab, word_dim, feat_dim, embed, ffn, layers,
                num_heads=NUM_HEADS):
    keys = iter(jax.random.split(key, 16))

    def nrm(shape, scale=0.02):
        return scale * jax.random.normal(next(keys), shape, jnp.float32)

    hd = embed // num_heads
    scale = 1.0 / math.sqrt(hd)
    # Fold the softmax 1/sqrt(head_dim) scale into the Q columns of Wqkv/bqkv.
    wqkv = nrm((layers, embed, 3 * embed))
    wqkv = wqkv.at[:, :, :embed].multiply(scale)
    bqkv = jnp.zeros((layers, 1, 3 * embed), jnp.float32)
    bqkv = bqkv.at[:, :, :embed].multiply(scale)

    return {
        # simplified txt_enc / img_enc front-ends (see TODO in tern_forward)
        "tok_emb": nrm((vocab, word_dim)),
        "box_w": nrm((4, feat_dim)),
        # nn.Linear projections of the TERN module (applied in XLA)
        "cap_proj_w": nrm((word_dim, embed)),
        "cap_proj_b": jnp.zeros((1, embed), jnp.float32),
        "img_proj_w": nrm((feat_dim, embed)),
        "img_proj_b": jnp.zeros((1, embed), jnp.float32),
        # per-layer weights stacked on a leading L axis; matmul weights bf16
        # (MXU operands), biases / LN params f32.
        "wqkv": wqkv.astype(jnp.bfloat16),
        "bqkv": bqkv,
        "wo": nrm((layers, embed, embed)).astype(jnp.bfloat16),
        "bo": jnp.zeros((layers, 1, embed), jnp.float32),
        "w1": nrm((layers, embed, ffn)).astype(jnp.bfloat16),
        "b1": jnp.zeros((layers, 1, ffn), jnp.float32),
        "w2": nrm((layers, ffn, embed)).astype(jnp.bfloat16),
        "b2": jnp.zeros((layers, 1, embed), jnp.float32),
        "g1": jnp.ones((layers, 1, embed), jnp.float32),
        "beta1": jnp.zeros((layers, 1, embed), jnp.float32),
        "g2": jnp.ones((layers, 1, embed), jnp.float32),
        "beta2": jnp.zeros((layers, 1, embed), jnp.float32),
    }


# ------------------------------------------------------------ forward --------
def tern_forward(params, features, captions, feat_len, cap_len, boxes):
    """Mirrors JointTextImageTransformerEncoder.forward (eval mode,
    shared_transformer=True, text/image aggregation = 'mean')."""
    B, N, _ = features.shape
    Sc = captions.shape[1]

    # TODO(synk): EncoderTextBERT / ImageEncoder transformer stacks are not
    # reimplemented; they are replaced by deterministic token-embedding and
    # box-conditioned feature front-ends producing c_emb / i_emb of the same
    # shapes (their aggregated outputs are discarded by the module anyway when
    # the aggregation types are not None).
    c_emb = params["tok_emb"][captions]                        # (B, Sc, word_dim)
    i_emb = features + boxes @ params["box_w"]                 # (B, N, feat_dim)

    # cap_proj / img_proj: tiny matmuls -> plain XLA (no pallas_call overhead)
    c_proj = c_emb @ params["cap_proj_w"] + params["cap_proj_b"]   # (B, Sc, D)
    i_proj = i_emb @ params["img_proj_w"] + params["img_proj_b"]   # (B, N, D)

    # Fuse both modalities + batch into one (2B, S, D) tensor (pad to common S)
    S = max(Sc, N)
    c_pad = jnp.pad(c_proj, ((0, 0), (0, S - Sc), (0, 0)))
    i_pad = jnp.pad(i_proj, ((0, 0), (0, S - N), (0, 0)))
    x = jnp.concatenate([c_pad, i_pad], axis=0)                      # (2B, S, D)

    lens = jnp.concatenate([cap_len, feat_len], axis=0)              # (2B,)
    pad_mask = jnp.arange(S)[None, :] >= lens[:, None]               # (2B, S)
    bias = jnp.where(pad_mask, NEG_INF, 0.0).astype(jnp.float32)[:, None, :]
    valid = (~pad_mask).astype(jnp.float32)[..., None]               # (2B, S, 1)

    # One fused pallas_call: all shared-transformer layers + mean-pool + l2norm
    x_out, aggr = tern_transformer_and_pool(x.astype(jnp.bfloat16), bias,
                                            valid, params)

    full_cap_emb_aggr = aggr[:B]
    full_img_emb_aggr = aggr[B:]
    # PyTorch returns the per-token embeddings seq-first (S, B, D)
    full_cap_emb = jnp.transpose(x_out[:B, :Sc], (1, 0, 2))          # (Sc, B, D)
    full_img_emb = jnp.transpose(x_out[B:, :N], (1, 0, 2))           # (N, B, D)
    return full_img_emb_aggr, full_cap_emb_aggr, full_img_emb, full_cap_emb


# ---------------------------------------------------------------- main -------
if __name__ == "__main__":
    key = jax.random.PRNGKey(0)
    k_par, k_cap, k_feat, k_box = jax.random.split(key, 4)

    # small config consistent with the module's forward
    B, Sc, N = 2, 8, 8
    vocab, word_dim, feat_dim, embed, layers = 100, 48, 64, 32, 2

    params = init_params(k_par, vocab, word_dim, feat_dim, embed, FFN_DIM, layers)

    captions = jax.random.randint(k_cap, (B, Sc), 0, vocab)            # token ids
    features = jax.random.normal(k_feat, (B, N, feat_dim), jnp.float32)
    boxes = jax.random.uniform(k_box, (B, N, 4), jnp.float32)
    cap_len = jnp.array([8, 6], jnp.int32)
    feat_len = jnp.array([8, 5], jnp.int32)

    outs = tern_forward(params, features, captions, feat_len, cap_len, boxes)
    outs = jax.tree_util.tree_map(jax.block_until_ready, outs)

    img_aggr, cap_aggr, img_emb, cap_emb = outs
    assert img_aggr.shape == (B, embed)
    assert cap_aggr.shape == (B, embed)
    assert img_emb.shape == (N, B, embed)
    assert cap_emb.shape == (Sc, B, embed)
    assert bool(jnp.all(jnp.isfinite(img_aggr))) and bool(jnp.all(jnp.isfinite(cap_aggr)))
    assert bool(jnp.all(jnp.isfinite(img_emb))) and bool(jnp.all(jnp.isfinite(cap_emb)))
    print("KERNEL_OK")
</pallas_src>

<mosaic_0001>
module attributes {stable_mosaic.version = 11 : i64} {
  func.func @_tern_stack_kernel(%arg0: i32, %arg1: i32, %arg2: memref<32x32xbf16, #tpu.memory_space<vmem>>, %arg3: memref<4x1x8xf32, #tpu.memory_space<vmem>>, %arg4: memref<4x8x1xf32, #tpu.memory_space<vmem>>, %arg5: memref<1x32x96xbf16, #tpu.memory_space<vmem>>, %arg6: memref<1x1x96xf32, #tpu.memory_space<vmem>>, %arg7: memref<1x32x32xbf16, #tpu.memory_space<vmem>>, %arg8: memref<1x1x32xf32, #tpu.memory_space<vmem>>, %arg9: memref<1x32x2048xbf16, #tpu.memory_space<vmem>>, %arg10: memref<1x1x2048xf32, #tpu.memory_space<vmem>>, %arg11: memref<1x2048x32xbf16, #tpu.memory_space<vmem>>, %arg12: memref<1x1x32xf32, #tpu.memory_space<vmem>>, %arg13: memref<1x1x32xf32, #tpu.memory_space<vmem>>, %arg14: memref<1x1x32xf32, #tpu.memory_space<vmem>>, %arg15: memref<1x1x32xf32, #tpu.memory_space<vmem>>, %arg16: memref<1x1x32xf32, #tpu.memory_space<vmem>>, %arg17: memref<32x32xf32, #tpu.memory_space<vmem>>, %arg18: memref<4x1x32xf32, #tpu.memory_space<vmem>>, %arg19: memref<32x32xf32, #tpu.memory_space<vmem>>) attributes {dimension_semantics = [#tpu.dimension_semantics<parallel>, #tpu.dimension_semantics<arbitrary>], iteration_bounds = array<i64: 1, 2>, scalar_prefetch = 0 : i64, scratch_operands = 1 : i64, tpu.core_type = #tpu.core_type<tc>, window_params = [{transform_indices = @transform_0, window_bounds = array<i64: 32, 32>}, {transform_indices = @transform_1, window_bounds = array<i64: 4, 1, 8>}, {transform_indices = @transform_2, window_bounds = array<i64: 4, 8, 1>}, {transform_indices = @transform_3, window_bounds = array<i64: 1, 32, 96>}, {transform_indices = @transform_4, window_bounds = array<i64: 1, 1, 96>}, {transform_indices = @transform_5, window_bounds = array<i64: 1, 32, 32>}, {transform_indices = @transform_6, window_bounds = array<i64: 1, 1, 32>}, {transform_indices = @transform_7, window_bounds = array<i64: 1, 32, 2048>}, {transform_indices = @transform_8, window_bounds = array<i64: 1, 1, 2048>}, {transform_indices = @transform_9, window_bounds = array<i64: 1, 2048, 32>}, {transform_indices = @transform_10, window_bounds = array<i64: 1, 1, 32>}, {transform_indices = @transform_11, window_bounds = array<i64: 1, 1, 32>}, {transform_indices = @transform_12, window_bounds = array<i64: 1, 1, 32>}, {transform_indices = @transform_13, window_bounds = array<i64: 1, 1, 32>}, {transform_indices = @transform_14, window_bounds = array<i64: 1, 1, 32>}, {transform_indices = @transform_15, window_bounds = array<i64: 32, 32>}, {transform_indices = @transform_16, window_bounds = array<i64: 4, 1, 32>}]} {
    %c0_i32 = arith.constant 0 : i32
    %0 = arith.cmpi eq, %arg1, %c0_i32 : i32
    %1 = arith.extui %0 : i1 to i32
    %c0_i32_0 = arith.constant 0 : i32
    %2 = arith.cmpi ne, %1, %c0_i32_0 : i32
    scf.if %2 {
      %c0_62 = arith.constant 0 : index
      %c0_63 = arith.constant 0 : index
      %138 = vector.load %arg2[%c0_62, %c0_63] : memref<32x32xbf16, #tpu.memory_space<vmem>>, vector<32x32xbf16>
      %139 = arith.extf %138 : vector<32x32xbf16> to vector<32x32xf32>
      %c0_64 = arith.constant 0 : index
      %c0_65 = arith.constant 0 : index
      %140 = vector.load %arg19[%c0_64, %c0_65] : memref<32x32xf32, #tpu.memory_space<vmem>>, vector<32x32xf32>
      tpu.vector_store %arg19[%c0_64, %c0_65], %139 {strides = array<i32>} : memref<32x32xf32, #tpu.memory_space<vmem>>, vector<32x32xf32>,
    } else {
    }
    %c0 = arith.constant 0 : index
    %c0_1 = arith.constant 0 : index
    %3 = vector.load %arg19[%c0, %c0_1] : memref<32x32xf32, #tpu.memory_space<vmem>>, vector<32x32xf32>
    %4 = arith.truncf %3 : vector<32x32xf32> to vector<32x32xbf16>
    %c0_2 = arith.constant 0 : index
    %c0_3 = arith.constant 0 : index
    %c0_4 = arith.constant 0 : index
    %5 = vector.load %arg5[%c0_2, %c0_3, %c0_4] : memref<1x32x96xbf16, #tpu.memory_space<vmem>>, vector<1x32x96xbf16>
    %6 = vector.shape_cast %5 : vector<1x32x96xbf16> to vector<32x96xbf16>
    %cst = arith.constant dense<0.000000e+00> : vector<32x96xf32>
    %7 = tpu.matmul %4, %6, %cst {dimension_numbers = #tpu.dot_dimension_numbers<[1], [0], [0], [1], [0, 0, 1, 1], [], []>} : vector<32x32xbf16>, vector<32x96xbf16>, vector<32x96xf32> -> vector<32x96xf32>
    %c0_5 = arith.constant 0 : index
    %c0_6 = arith.constant 0 : index
    %c0_7 = arith.constant 0 : index
    %8 = vector.load %arg6[%c0_5, %c0_6, %c0_7] : memref<1x1x96xf32, #tpu.memory_space<vmem>>, vector<1x1x96xf32>
    %9 = vector.shape_cast %8 : vector<1x1x96xf32> to vector<1x96xf32>
    %10 = vector.broadcast %9 : vector<1x96xf32> to vector<32x96xf32>
    %11 = arith.addf %7, %10 : vector<32x96xf32>
    %12 = arith.truncf %11 : vector<32x96xf32> to vector<32x96xbf16>
    %13 = vector.shape_cast %12 : vector<32x96xbf16> to vector<4x8x96xbf16>
    %14 = vector.extract_strided_slice %13 {offsets = [0, 0, 0], sizes = [4, 8, 8], strides = [1, 1, 1]} : vector<4x8x96xbf16> to vector<4x8x8xbf16>
    %15 = vector.extract_strided_slice %13 {offsets = [0, 0, 8], sizes = [4, 8, 8], strides = [1, 1, 1]} : vector<4x8x96xbf16> to vector<4x8x8xbf16>
    %16 = vector.extract_strided_slice %13 {offsets = [0, 0, 16], sizes = [4, 8, 8], strides = [1, 1, 1]} : vector<4x8x96xbf16> to vector<4x8x8xbf16>
    %17 = vector.extract_strided_slice %13 {offsets = [0, 0, 24], sizes = [4, 8, 8], strides = [1, 1, 1]} : vector<4x8x96xbf16> to vector<4x8x8xbf16>
    %18 = tpu.concatenate %14, %15, %16, %17 in 0 : vector<4x8x8xbf16>, vector<4x8x8xbf16>, vector<4x8x8xbf16>, vector<4x8x8xbf16> -> vector<16x8x8xbf16>
    %19 = vector.extract_strided_slice %13 {offsets = [0, 0, 32], sizes = [4, 8, 8], strides = [1, 1, 1]} : vector<4x8x96xbf16> to vector<4x8x8xbf16>
    %20 = vector.extract_strided_slice %13 {offsets = [0, 0, 40], sizes = [4, 8, 8], strides = [1, 1, 1]} : vector<4x8x96xbf16> to vector<4x8x8xbf16>
    %21 = vector.extract_strided_slice %13 {offsets = [0, 0, 48], sizes = [4, 8, 8], strides = [1, 1, 1]} : vector<4x8x96xbf16> to vector<4x8x8xbf16>
    %22 = vector.extract_strided_slice %13 {offsets = [0, 0, 56], sizes = [4, 8, 8], strides = [1, 1, 1]} : vector<4x8x96xbf16> to vector<4x8x8xbf16>
    %23 = tpu.concatenate %19, %20, %21, %22 in 0 : vector<4x8x8xbf16>, vector<4x8x8xbf16>, vector<4x8x8xbf16>, vector<4x8x8xbf16> -> vector<16x8x8xbf16>
    %24 = vector.extract_strided_slice %13 {offsets = [0, 0, 64], sizes = [4, 8, 8], strides = [1, 1, 1]} : vector<4x8x96xbf16> to vector<4x8x8xbf16>
    %25 = vector.extract_strided_slice %13 {offsets = [0, 0, 72], sizes = [4, 8, 8], strides = [1, 1, 1]} : vector<4x8x96xbf16> to vector<4x8x8xbf16>
    %26 = vector.extract_strided_slice %13 {offsets = [0, 0, 80], sizes = [4, 8, 8], strides = [1, 1, 1]} : vector<4x8x96xbf16> to vector<4x8x8xbf16>
    %27 = vector.extract_strided_slice %13 {offsets = [0, 0, 88], sizes = [4, 8, 8], strides = [1, 1, 1]} : vector<4x8x96xbf16> to vector<4x8x8xbf16>
    %28 = tpu.concatenate %24, %25, %26, %27 in 0 : vector<4x8x8xbf16>, vector<4x8x8xbf16>, vector<4x8x8xbf16>, vector<4x8x8xbf16> -> vector<16x8x8xbf16>
    "tpu.trace_start"() <{level = 10 : i32, message = "bqd,bkd->bqk"}> : () -> ()
    %cst_8 = arith.constant dense<0.000000e+00> : vector<16x8x8xf32>
    %29 = tpu.matmul %18, %23, %cst_8 {dimension_numbers = #tpu.dot_dimension_numbers<[2], [2], [1], [1], [0, 0, 0, 1, 1, 1], [0], [0]>} : vector<16x8x8xbf16>, vector<16x8x8xbf16>, vector<16x8x8xf32> -> vector<16x8x8xf32>
    "tpu.trace_stop"() : () -> ()
    %30 = vector.shape_cast %29 : vector<16x8x8xf32> to vector<4x4x8x8xf32>
    %c0_9 = arith.constant 0 : index
    %c0_10 = arith.constant 0 : index
    %c0_11 = arith.constant 0 : index
    %31 = vector.load %arg3[%c0_9, %c0_10, %c0_11] : memref<4x1x8xf32, #tpu.memory_space<vmem>>, vector<4x1x8xf32>
    %32 = vector.shape_cast %31 : vector<4x1x8xf32> to vector<1x4x1x8xf32>
    %33 = vector.broadcast %32 : vector<1x4x1x8xf32> to vector<4x4x8x8xf32>
    %34 = arith.addf %30, %33 : vector<4x4x8x8xf32>
    %cst_12 = arith.constant dense<0xFF800000> : vector<4x4x8xf32>
    %35 = vector.multi_reduction <maximumf>, %34, %cst_12 [3] : vector<4x4x8x8xf32> to vector<4x4x8xf32>
    %36 = vector.shape_cast %35 : vector<4x4x8xf32> to vector<4x4x8x1xf32>
    %37 = vector.broadcast %36 : vector<4x4x8x1xf32> to vector<4x4x8x8xf32>
    %38 = arith.subf %34, %37 : vector<4x4x8x8xf32>
    %39 = math.exp %38 : vector<4x4x8x8xf32>
    %cst_13 = arith.constant dense<0.000000e+00> : vector<4x4x8xf32>
    %40 = vector.multi_reduction <add>, %39, %cst_13 [3] : vector<4x4x8x8xf32> to vector<4x4x8xf32>
    %41 = vector.shape_cast %40 : vector<4x4x8xf32> to vector<4x4x8x1xf32>
    %42 = tpu.reciprocal %41 {approx = true} : vector<4x4x8x1xf32> -> vector<4x4x8x1xf32>
    %43 = vector.broadcast %42 : vector<4x4x8x1xf32> to vector<4x4x8x8xf32>
    %44 = arith.mulf %39, %43 : vector<4x4x8x8xf32>
    %45 = vector.shape_cast %44 : vector<4x4x8x8xf32> to vector<16x8x8xf32>
    %46 = arith.truncf %45 : vector<16x8x8xf32> to vector<16x8x8xbf16>
    "tpu.trace_start"() <{level = 10 : i32, message = "bqk,bkd->bqd"}> : () -> ()
    %cst_14 = arith.constant dense<0.000000e+00> : vector<16x8x8xf32>
    %47 = tpu.matmul %46, %28, %cst_14 {dimension_numbers = #tpu.dot_dimension_numbers<[2], [1], [1], [2], [0, 0, 0, 1, 1, 2], [0], [0]>} : vector<16x8x8xbf16>, vector<16x8x8xbf16>, vector<16x8x8xf32> -> vector<16x8x8xf32>
    "tpu.trace_stop"() : () -> ()
    %48 = vector.extract_strided_slice %47 {offsets = [0, 0, 0], sizes = [4, 8, 8], strides = [1, 1, 1]} : vector<16x8x8xf32> to vector<4x8x8xf32>
    %49 = vector.extract_strided_slice %47 {offsets = [4, 0, 0], sizes = [4, 8, 8], strides = [1, 1, 1]} : vector<16x8x8xf32> to vector<4x8x8xf32>
    %50 = vector.extract_strided_slice %47 {offsets = [8, 0, 0], sizes = [4, 8, 8], strides = [1, 1, 1]} : vector<16x8x8xf32> to vector<4x8x8xf32>
    %51 = vector.extract_strided_slice %47 {offsets = [12, 0, 0], sizes = [4, 8, 8], strides = [1, 1, 1]} : vector<16x8x8xf32> to vector<4x8x8xf32>
    %52 = tpu.concatenate %48, %49, %50, %51 in 2 : vector<4x8x8xf32>, vector<4x8x8xf32>, vector<4x8x8xf32>, vector<4x8x8xf32> -> vector<4x8x32xf32>
    %53 = vector.shape_cast %52 : vector<4x8x32xf32> to vector<32x32xf32>
    %54 = arith.truncf %53 : vector<32x32xf32> to vector<32x32xbf16>
    %c0_15 = arith.constant 0 : index
    %c0_16 = arith.constant 0 : index
    %c0_17 = arith.constant 0 : index
    %55 = vector.load %arg7[%c0_15, %c0_16, %c0_17] : memref<1x32x32xbf16, #tpu.memory_space<vmem>>, vector<1x32x32xbf16>
    %56 = vector.shape_cast %55 : vector<1x32x32xbf16> to vector<32x32xbf16>
    %cst_18 = arith.constant dense<0.000000e+00> : vector<32x32xf32>
    %57 = tpu.matmul %54, %56, %cst_18 {dimension_numbers = #tpu.dot_dimension_numbers<[1], [0], [0], [1], [0, 0, 1, 1], [], []>} : vector<32x32xbf16>, vector<32x32xbf16>, vector<32x32xf32> -> vector<32x32xf32>
    %c0_19 = arith.constant 0 : index
    %c0_20 = arith.constant 0 : index
    %c0_21 = arith.constant 0 : index
    %58 = vector.load %arg8[%c0_19, %c0_20, %c0_21] : memref<1x1x32xf32, #tpu.memory_space<vmem>>, vector<1x1x32xf32>
    %59 = vector.shape_cast %58 : vector<1x1x32xf32> to vector<1x32xf32>
    %60 = vector.broadcast %59 : vector<1x32xf32> to vector<32x32xf32>
    %61 = arith.addf %57, %60 : vector<32x32xf32>
    %62 = arith.addf %3, %61 : vector<32x32xf32>
    %c0_22 = arith.constant 0 : index
    %c0_23 = arith.constant 0 : index
    %c0_24 = arith.constant 0 : index
    %63 = vector.load %arg13[%c0_22, %c0_23, %c0_24] : memref<1x1x32xf32, #tpu.memory_space<vmem>>, vector<1x1x32xf32>
    %64 = vector.shape_cast %63 : vector<1x1x32xf32> to vector<1x32xf32>
    %c0_25 = arith.constant 0 : index
    %c0_26 = arith.constant 0 : index
    %c0_27 = arith.constant 0 : index
    %65 = vector.load %arg14[%c0_25, %c0_26, %c0_27] : memref<1x1x32xf32, #tpu.memory_space<vmem>>, vector<1x1x32xf32>
    %66 = vector.shape_cast %65 : vector<1x1x32xf32> to vector<1x32xf32>
    %cst_28 = arith.constant dense<0.000000e+00> : vector<32xf32>
    %67 = vector.multi_reduction <add>, %62, %cst_28 [1] : vector<32x32xf32> to vector<32xf32>
    %68 = vector.shape_cast %67 : vector<32xf32> to vector<32x1xf32>
    %cst_29 = arith.constant 3.200000e+01 : f32
    %69 = vector.broadcast %cst_29 : f32 to vector<32x1xf32>
    %70 = arith.divf %68, %69 : vector<32x1xf32>
    %71 = vector.broadcast %70 : vector<32x1xf32> to vector<32x32xf32>
    %72 = arith.subf %62, %71 : vector<32x32xf32>
    %73 = arith.mulf %72, %72 : vector<32x32xf32>
    %cst_30 = arith.constant dense<0.000000e+00> : vector<32xf32>
    %74 = vector.multi_reduction <add>, %73, %cst_30 [1] : vector<32x32xf32> to vector<32xf32>
    %75 = vector.shape_cast %74 : vector<32xf32> to vector<32x1xf32>
    %cst_31 = arith.constant 3.200000e+01 : f32
    %76 = vector.broadcast %cst_31 : f32 to vector<32x1xf32>
    %77 = arith.divf %75, %76 : vector<32x1xf32>
    %78 = vector.broadcast %70 : vector<32x1xf32> to vector<32x32xf32>
    %79 = arith.subf %62, %78 : vector<32x32xf32>
    %cst_32 = arith.constant 9.99999974E-6 : f32
    %80 = vector.broadcast %cst_32 : f32 to vector<32x1xf32>
    %81 = arith.addf %77, %80 : vector<32x1xf32>
    %82 = math.rsqrt %81 : vector<32x1xf32>
    %83 = vector.broadcast %82 : vector<32x1xf32> to vector<32x32xf32>
    %84 = arith.mulf %79, %83 : vector<32x32xf32>
    %85 = vector.broadcast %64 : vector<1x32xf32> to vector<32x32xf32>
    %86 = arith.mulf %84, %85 : vector<32x32xf32>
    %87 = vector.broadcast %66 : vector<1x32xf32> to vector<32x32xf32>
    %88 = arith.addf %86, %87 : vector<32x32xf32>
    %89 = arith.truncf %88 : vector<32x32xf32> to vector<32x32xbf16>
    %c0_33 = arith.constant 0 : index
    %c0_34 = arith.constant 0 : index
    %c0_35 = arith.constant 0 : index
    %90 = vector.load %arg9[%c0_33, %c0_34, %c0_35] : memref<1x32x2048xbf16, #tpu.memory_space<vmem>>, vector<1x32x2048xbf16>
    %91 = vector.shape_cast %90 : vector<1x32x2048xbf16> to vector<32x2048xbf16>
    %cst_36 = arith.constant dense<0.000000e+00> : vector<32x2048xf32>
    %92 = tpu.matmul %89, %91, %cst_36 {dimension_numbers = #tpu.dot_dimension_numbers<[1], [0], [0], [1], [0, 0, 1, 1], [], []>} : vector<32x32xbf16>, vector<32x2048xbf16>, vector<32x2048xf32> -> vector<32x2048xf32>
    %c0_37 = arith.constant 0 : index
    %c0_38 = arith.constant 0 : index
    %c0_39 = arith.constant 0 : index
    %93 = vector.load %arg10[%c0_37, %c0_38, %c0_39] : memref<1x1x2048xf32, #tpu.memory_space<vmem>>, vector<1x1x2048xf32>
    %94 = vector.shape_cast %93 : vector<1x1x2048xf32> to vector<1x2048xf32>
    %95 = vector.broadcast %94 : vector<1x2048xf32> to vector<32x2048xf32>
    %96 = arith.addf %92, %95 : vector<32x2048xf32>
    %cst_40 = arith.constant 0.000000e+00 : f32
    %97 = vector.broadcast %cst_40 : f32 to vector<32x2048xf32>
    %98 = arith.maximumf %96, %97 : vector<32x2048xf32>
    %99 = arith.truncf %98 : vector<32x2048xf32> to vector<32x2048xbf16>
    %c0_41 = arith.constant 0 : index
    %c0_42 = arith.constant 0 : index
    %c0_43 = arith.constant 0 : index
    %100 = vector.load %arg11[%c0_41, %c0_42, %c0_43] : memref<1x2048x32xbf16, #tpu.memory_space<vmem>>, vector<1x2048x32xbf16>
    %101 = vector.shape_cast %100 : vector<1x2048x32xbf16> to vector<2048x32xbf16>
    %cst_44 = arith.constant dense<0.000000e+00> : vector<32x32xf32>
    %102 = tpu.matmul %99, %101, %cst_44 {dimension_numbers = #tpu.dot_dimension_numbers<[1], [0], [0], [1], [0, 0, 1, 1], [], []>} : vector<32x2048xbf16>, vector<2048x32xbf16>, vector<32x32xf32> -> vector<32x32xf32>
    %c0_45 = arith.constant 0 : index
    %c0_46 = arith.constant 0 : index
    %c0_47 = arith.constant 0 : index
    %103 = vector.load %arg12[%c0_45, %c0_46, %c0_47] : memref<1x1x32xf32, #tpu.memory_space<vmem>>, vector<1x1x32xf32>
    %104 = vector.shape_cast %103 : vector<1x1x32xf32> to vector<1x32xf32>
    %105 = vector.broadcast %104 : vector<1x32xf32> to vector<32x32xf32>
    %106 = arith.addf %102, %105 : vector<32x32xf32>
    %107 = arith.addf %88, %106 : vector<32x32xf32>
    %c0_48 = arith.constant 0 : index
    %c0_49 = arith.constant 0 : index
    %c0_50 = arith.constant 0 : index
    %108 = vector.load %arg15[%c0_48, %c0_49, %c0_50] : memref<1x1x32xf32, #tpu.memory_space<vmem>>, vector<1x1x32xf32>
    %109 = vector.shape_cast %108 : vector<1x1x32xf32> to vector<1x32xf32>
    %c0_51 = arith.constant 0 : index
    %c0_52 = arith.constant 0 : index
    %c0_53 = arith.constant 0 : index
    %110 = vector.load %arg16[%c0_51, %c0_52, %c0_53] : memref<1x1x32xf32, #tpu.memory_space<vmem>>, vector<1x1x32xf32>
    %111 = vector.shape_cast %110 : vector<1x1x32xf32> to vector<1x32xf32>
    %cst_54 = arith.constant dense<0.000000e+00> : vector<32xf32>
    %112 = vector.multi_reduction <add>, %107, %cst_54 [1] : vector<32x32xf32> to vector<32xf32>
    %113 = vector.shape_cast %112 : vector<32xf32> to vector<32x1xf32>
    %cst_55 = arith.constant 3.200000e+01 : f32
    %114 = vector.broadcast %cst_55 : f32 to vector<32x1xf32>
    %115 = arith.divf %113, %114 : vector<32x1xf32>
    %116 = vector.broadcast %115 : vector<32x1xf32> to vector<32x32xf32>
    %117 = arith.subf %107, %116 : vector<32x32xf32>
    %118 = arith.mulf %117, %117 : vector<32x32xf32>
    %cst_56 = arith.constant dense<0.000000e+00> : vector<32xf32>
    %119 = vector.multi_reduction <add>, %118, %cst_56 [1] : vector<32x32xf32> to vector<32xf32>
    %120 = vector.shape_cast %119 : vector<32xf32> to vector<32x1xf32>
    %cst_57 = arith.constant 3.200000e+01 : f32
    %121 = vector.broadcast %cst_57 : f32 to vector<32x1xf32>
    %122 = arith.divf %120, %121 : vector<32x1xf32>
    %123 = vector.broadcast %115 : vector<32x1xf32> to vector<32x32xf32>
    %124 = arith.subf %107, %123 : vector<32x32xf32>
    %cst_58 = arith.constant 9.99999974E-6 : f32
    %125 = vector.broadcast %cst_58 : f32 to vector<32x1xf32>
    %126 = arith.addf %122, %125 : vector<32x1xf32>
    %127 = math.rsqrt %126 : vector<32x1xf32>
    %128 = vector.broadcast %127 : vector<32x1xf32> to vector<32x32xf32>
    %129 = arith.mulf %124, %128 : vector<32x32xf32>
    %130 = vector.broadcast %109 : vector<1x32xf32> to vector<32x32xf32>
    %131 = arith.mulf %129, %130 : vector<32x32xf32>
    %132 = vector.broadcast %111 : vector<1x32xf32> to vector<32x32xf32>
    %133 = arith.addf %131, %132 : vector<32x32xf32>
    %c0_59 = arith.constant 0 : index
    %c0_60 = arith.constant 0 : index
    %134 = vector.load %arg19[%c0_59, %c0_60] : memref<32x32xf32, #tpu.memory_space<vmem>>, vector<32x32xf32>
    tpu.vector_store %arg19[%c0_59, %c0_60], %133 {strides = array<i32>} : memref<32x32xf32, #tpu.memory_space<vmem>>, vector<32x32xf32>,
    %c1_i32 = arith.constant 1 : i32
    %135 = arith.cmpi eq, %arg1, %c1_i32 : i32
    %136 = arith.extui %135 : i1 to i32
    %c0_i32_61 = arith.constant 0 : i32
    %137 = arith.cmpi ne, %136, %c0_i32_61 : i32
    scf.if %137 {
      %c0_62 = arith.constant 0 : index
      %c0_63 = arith.constant 0 : index
      %138 = vector.load %arg17[%c0_62, %c0_63] : memref<32x32xf32, #tpu.memory_space<vmem>>, vector<32x32xf32>
      tpu.vector_store %arg17[%c0_62, %c0_63], %133 {strides = array<i32>} : memref<32x32xf32, #tpu.memory_space<vmem>>, vector<32x32xf32>,
      %139 = vector.shape_cast %133 : vector<32x32xf32> to vector<4x8x32xf32>
      %c0_64 = arith.constant 0 : index
      %c0_65 = arith.constant 0 : index
      %c0_66 = arith.constant 0 : index
      %140 = vector.load %arg4[%c0_64, %c0_65, %c0_66] : memref<4x8x1xf32, #tpu.memory_space<vmem>>, vector<4x8x1xf32>
      %141 = vector.broadcast %140 : vector<4x8x1xf32> to vector<4x8x32xf32>
      %142 = arith.mulf %139, %141 : vector<4x8x32xf32>
      %cst_67 = arith.constant dense<0.000000e+00> : vector<4x32xf32>
      %143 = vector.multi_reduction <add>, %142, %cst_67 [1] : vector<4x8x32xf32> to vector<4x32xf32>
      %144 = vector.shape_cast %143 : vector<4x32xf32> to vector<4x1x32xf32>
      %cst_68 = arith.constant dense<0.000000e+00> : vector<4x1xf32>
      %145 = vector.multi_reduction <add>, %140, %cst_68 [1] : vector<4x8x1xf32> to vector<4x1xf32>
      %146 = vector.shape_cast %145 : vector<4x1xf32> to vector<4x1x1xf32>
      %cst_69 = arith.constant 1.000000e+00 : f32
      %147 = vector.broadcast %cst_69 : f32 to vector<4x1x1xf32>
      %148 = arith.maximumf %146, %147 : vector<4x1x1xf32>
      %149 = vector.broadcast %148 : vector<4x1x1xf32> to vector<4x1x32xf32>
      %150 = arith.divf %144, %149 : vector<4x1x32xf32>
      %151 = arith.mulf %150, %150 : vector<4x1x32xf32>
      %cst_70 = arith.constant dense<0.000000e+00> : vector<4x1xf32>
      %152 = vector.multi_reduction <add>, %151, %cst_70 [2] : vector<4x1x32xf32> to vector<4x1xf32>
      %153 = vector.shape_cast %152 : vector<4x1xf32> to vector<4x1x1xf32>
      %cst_71 = arith.constant 1.000000e-24 : f32
      %154 = vector.broadcast %cst_71 : f32 to vector<4x1x1xf32>
      %155 = arith.maximumf %153, %154 : vector<4x1x1xf32>
      %156 = math.rsqrt %155 : vector<4x1x1xf32>
      %157 = vector.broadcast %156 : vector<4x1x1xf32> to vector<4x1x32xf32>
      %158 = arith.mulf %150, %157 : vector<4x1x32xf32>
      %c0_72 = arith.constant 0 : index
      %c0_73 = arith.constant 0 : index
      %c0_74 = arith.constant 0 : index
      %159 = vector.load %arg18[%c0_72, %c0_73, %c0_74] : memref<4x1x32xf32, #tpu.memory_space<vmem>>, vector<4x1x32xf32>
      tpu.vector_store %arg18[%c0_72, %c0_73, %c0_74], %158 {strides = array<i32>} : memref<4x1x32xf32, #tpu.memory_space<vmem>>, vector<4x1x32xf32>,
    } else {
    }
    return
  }
  func.func @transform_0(%arg0: i32, %arg1: i32) -> (i32, i32) {
    %c0_i32 = arith.constant 0 : i32
    %c0_i32_0 = arith.constant 0 : i32
    return %arg0, %c0_i32 : i32, i32
  }
  func.func @transform_1(%arg0: i32, %arg1: i32) -> (i32, i32, i32) {
    %c0_i32 = arith.constant 0 : i32
    %c0_i32_0 = arith.constant 0 : i32
    %c0_i32_1 = arith.constant 0 : i32
    return %arg0, %c0_i32, %c0_i32_0 : i32, i32, i32
  }
  func.func @transform_2(%arg0: i32, %arg1: i32) -> (i32, i32, i32) {
    %c0_i32 = arith.constant 0 : i32
    %c0_i32_0 = arith.constant 0 : i32
    %c0_i32_1 = arith.constant 0 : i32
    return %arg0, %c0_i32, %c0_i32_0 : i32, i32, i32
  }
  func.func @transform_3(%arg0: i32, %arg1: i32) -> (i32, i32, i32) {
    %c0_i32 = arith.constant 0 : i32
    %c0_i32_0 = arith.constant 0 : i32
    %c0_i32_1 = arith.constant 0 : i32
    return %arg1, %c0_i32, %c0_i32_0 : i32, i32, i32
  }
  func.func @transform_4(%arg0: i32, %arg1: i32) -> (i32, i32, i32) {
    %c0_i32 = arith.constant 0 : i32
    %c0_i32_0 = arith.constant 0 : i32
    %c0_i32_1 = arith.constant 0 : i32
    return %arg1, %c0_i32, %c0_i32_0 : i32, i32, i32
  }
  func.func @transform_5(%arg0: i32, %arg1: i32) -> (i32, i32, i32) {
    %c0_i32 = arith.constant 0 : i32
    %c0_i32_0 = arith.constant 0 : i32
    %c0_i32_1 = arith.constant 0 : i32
    return %arg1, %c0_i32, %c0_i32_0 : i32, i32, i32
  }
  func.func @transform_6(%arg0: i32, %arg1: i32) -> (i32, i32, i32) {
    %c0_i32 = arith.constant 0 : i32
    %c0_i32_0 = arith.constant 0 : i32
    %c0_i32_1 = arith.constant 0 : i32
    return %arg1, %c0_i32, %c0_i32_0 : i32, i32, i32
  }
  func.func @transform_7(%arg0: i32, %arg1: i32) -> (i32, i32, i32) {
    %c0_i32 = arith.constant 0 : i32
    %c0_i32_0 = arith.constant 0 : i32
    %c0_i32_1 = arith.constant 0 : i32
    return %arg1, %c0_i32, %c0_i32_0 : i32, i32, i32
  }
  func.func @transform_8(%arg0: i32, %arg1: i32) -> (i32, i32, i32) {
    %c0_i32 = arith.constant 0 : i32
    %c0_i32_0 = arith.constant 0 : i32
    %c0_i32_1 = arith.constant 0 : i32
    return %arg1, %c0_i32, %c0_i32_0 : i32, i32, i32
  }
  func.func @transform_9(%arg0: i32, %arg1: i32) -> (i32, i32, i32) {
    %c0_i32 = arith.constant 0 : i32
    %c0_i32_0 = arith.constant 0 : i32
    %c0_i32_1 = arith.constant 0 : i32
    return %arg1, %c0_i32, %c0_i32_0 : i32, i32, i32
  }
  func.func @transform_10(%arg0: i32, %arg1: i32) -> (i32, i32, i32) {
    %c0_i32 = arith.constant 0 : i32
    %c0_i32_0 = arith.constant 0 : i32
    %c0_i32_1 = arith.constant 0 : i32
    return %arg1, %c0_i32, %c0_i32_0 : i32, i32, i32
  }
  func.func @transform_11(%arg0: i32, %arg1: i32) -> (i32, i32, i32) {
    %c0_i32 = arith.constant 0 : i32
    %c0_i32_0 = arith.constant 0 : i32
    %c0_i32_1 = arith.constant 0 : i32
    return %arg1, %c0_i32, %c0_i32_0 : i32, i32, i32
  }
  func.func @transform_12(%arg0: i32, %arg1: i32) -> (i32, i32, i32) {
    %c0_i32 = arith.constant 0 : i32
    %c0_i32_0 = arith.constant 0 : i32
    %c0_i32_1 = arith.constant 0 : i32
    return %arg1, %c0_i32, %c0_i32_0 : i32, i32, i32
  }
  func.func @transform_13(%arg0: i32, %arg1: i32) -> (i32, i32, i32) {
    %c0_i32 = arith.constant 0 : i32
    %c0_i32_0 = arith.constant 0 : i32
    %c0_i32_1 = arith.constant 0 : i32
    return %arg1, %c0_i32, %c0_i32_0 : i32, i32, i32
  }
  func.func @transform_14(%arg0: i32, %arg1: i32) -> (i32, i32, i32) {
    %c0_i32 = arith.constant 0 : i32
    %c0_i32_0 = arith.constant 0 : i32
    %c0_i32_1 = arith.constant 0 : i32
    return %arg1, %c0_i32, %c0_i32_0 : i32, i32, i32
  }
  func.func @transform_15(%arg0: i32, %arg1: i32) -> (i32, i32) {
    %c0_i32 = arith.constant 0 : i32
    %c0_i32_0 = arith.constant 0 : i32
    return %arg0, %c0_i32 : i32, i32
  }
  func.func @transform_16(%arg0: i32, %arg1: i32) -> (i32, i32, i32) {
    %c0_i32 = arith.constant 0 : i32
    %c0_i32_0 = arith.constant 0 : i32
    %c0_i32_1 = arith.constant 0 : i32
    return %arg0, %c0_i32, %c0_i32_0 : i32, i32, i32
  }
}

</mosaic_0001>

<bundles_post_ra>
// kernel: tpu_custom_call.1
= control target key start
LH: loop header
LB: loop body
LE: loop exit
PB: predicated region body
PF: predicated region fallthrough
CT: control target
= control target key end

     0   :  { %s8161_s0 = inlined_call_operand.vmem [shape: bf16[32,32], index: 0, kind: input, shape index: {}]   ;;  %s8162_s1 = inlined_call_operand.vmem [shape: f32[4,1,8], index: 1, kind: input, shape index: {}]   ;;  %s8163_s2 = inlined_call_operand.vmem [shape: f32[4,8,1], index: 2, kind: input, shape index: {}]   ;;  %s8164_s3 = inlined_call_operand.vmem [shape: bf16[2,32,96], index: 3, kind: input, shape index: {}]   ;;  %s8165_s4 = inlined_call_operand.vmem [shape: f32[2,1,96], index: 4, kind: input, shape index: {}]   ;;  %s8166_s5 = inlined_call_operand.vmem [shape: bf16[2,32,32], index: 5, kind: input, shape index: {}]   ;;  %s8167_s6 = inlined_call_operand.vmem [shape: f32[2,1,32], index: 6, kind: input, shape index: {}]   ;;  %s8168_s7 = inlined_call_operand.vmem [shape: bf16[2,32,2048], index: 7, kind: input, shape index: {}]   ;;  %s8169_s8 = inlined_call_operand.vmem [shape: f32[2,1,2048], index: 8, kind: input, shape index: {}]   ;;  %s8170_s9 = inlined_call_operand.vmem [shape: bf16[2,2048,32], index: 9, kind: input, shape index: {}]   ;;  %s8171_s10 = inlined_call_operand.vmem [shape: f32[2,1,32], index: 10, kind: input, shape index: {}]   ;;  %s8172_s11 = inlined_call_operand.vmem [shape: f32[2,1,32], index: 11, kind: input, shape index: {}]   ;;  %s8173_s12 = inlined_call_operand.vmem [shape: f32[2,1,32], index: 12, kind: input, shape index: {}]   ;;  %s8174_s13 = inlined_call_operand.vmem [shape: f32[2,1,32], index: 13, kind: input, shape index: {}]   ;;  %s8175_s14 = inlined_call_operand.vmem [shape: f32[2,1,32], index: 14, kind: input, shape index: {}]   ;;  %s8176_s15 = inlined_call_operand.hbm [shape: f32[32,32], index: 15, kind: output, shape index: {0}]   ;;  %s8177_s16 = inlined_call_operand.hbm [shape: f32[4,1,32], index: 16, kind: output, shape index: {1}]  }
   0x1   :  { %8184 = sst [smem:[#allocation13_spill]] %s8161_s0 }
   0x2   :  { %8185 = sst [smem:[#allocation14_spill]] %s8162_s1 }
   0x3   :  { %8186 = sst [smem:[#allocation15_spill]] %s8163_s2 }
   0x4   :  { %8187 = sst [smem:[#allocation16_spill]] %s8164_s3 }
   0x5   :  { %8188 = sst [smem:[#allocation17_spill]] %s8166_s5 }
   0x6   :  { %8189 = sst [smem:[#allocation18_spill]] %s8168_s7 }
   0x7   :  { %8190 = sst [smem:[#allocation19_spill]] %s8169_s8 }
   0x8   :  { %8191 = sst [smem:[#allocation20_spill]] %s8176_s15 }
   0x9   :  { %8192 = sst [smem:[#allocation21_spill]] %s8177_s16 }
   0xa   :  { %22 = vsyncpa [#allocation4], 0 }
   0xb   :  { %23 = vsyncpa [#allocation6], 0  ;;  %s6923_s21 = smov 0   ;;  %s6925_s22 = smov 0  }
   0xc   :  { %s6927_s23 = smov 0  }
   0xd LB: > { %8193 = sst [smem:[#allocation9_spill]] %s6816_s22  ;;  %s38_s25 = sadd.s32 1, %s6816_s22  ;;  %s6820_s23 = sphi %s6927_s23, %s29_s23   ;;  %s6816_s22 = sphi %s6925_s22, %s8214_s22   ;;  %s6812_s21 = sphi %s6923_s21, %s8213_s21  }
   0xe   : > { %8194 = sst [smem:[#allocation10_spill]] %s6820_s23  ;;  %p39_p0 = scmp.ge.s32.totalorder %s38_s25, 2 }
   0xf   : > { %p5644_p1 = scmp.ge.s32.totalorder %s6820_s23, 1  ;;  %p606_p2 = scmp.lt.s32.totalorder %s6820_s23, 3 }
  0x10   : > { %s8216_s25 = smov (%p39_p0, %s38_s25), 0 }
  0x11   : > { %8195 = sst [smem:[#allocation11_spill]] %s8216_s25  ;;  %p607_p3 = pnand %p5644_p1, %p606_p2 }
  0x13   : > { %610 = sbr.rel (%p607_p3) target bundleno = 3112 (0xc28), region = 80 }
  0x18   : > { %p722_p4 = scmp.lt.s32.totalorder %s6812_s21, 1  ;;  %s8196_s3 = sld [smem:[#allocation16_spill]] }
  0x19   : > { %s8197_s5 = sld [smem:[#allocation17_spill]]  ;;  %p5654_p5 = scmp.ne.s32.totalorder %s6812_s21, 0 }
  0x1a   : > { %s6946_s26 = scalar_select %p722_p4, %s6812_s21, 1 }
  0x1b   : > { %s8198_s7 = sld [smem:[#allocation18_spill]] }
  0x1c   : > { %s5905_s27 = sshll.u32 %s6946_s26, 4  ;;  %s5907_s15 = sshll.u32 %s6946_s26, 8 }
  0x1d   : > { %s8199_s8 = sld [smem:[#allocation19_spill]]  ;;  %s5908_s17 = sshll.u32 %s6946_s26, 10 }
  0x1e   : > { %s726_s18 = scalar_lea.vmem %s8196_s3, %s5905_s27  ;;  %s754_s20 = scalar_lea.vmem %s8171_s10, %s6946_s26 }
  0x1f   : > { %s6959_s24 = scalar_lea.vmem %s8197_s5, %s5905_s27  ;;  %s6984_s22 = scalar_lea.vmem %s8170_s9, %s5908_s17 }
  0x20   : > { %s757_s2 = scalar_lea.vmem %s8172_s11, %s6946_s26  ;;  %s760_s28 = scalar_lea.vmem %s8173_s12, %s6946_s26 }
  0x21   : > { %s6969_s1 = scalar_lea.vmem %s8198_s7, %s5907_s15  ;;  %s763_s7 = scalar_lea.vmem %s8174_s13, %s6946_s26 }
  0x22   : > { %s766_s19 = scalar_lea.vmem %s8175_s14, %s6946_s26  ;;  %773 = sbr.rel (%p5654_p5) target bundleno = 46 (0x2e), region = 84 }
  0x23   : > { %s6974_s0 = scalar_lea.vmem %s8199_s8, %s5905_s27  ;;  %s8200_s17 = sld [smem:[#allocation13_spill]] (!%p5654_p5) }
  0x27   : > { %vm782_vm0 = vcmask 261120  }
  0x29   : > { %v5914_v0 = vld [vmem:[%s8200_s17] sm:$0xff]   ;;  %v5921_v1 = vld [vmem:[%s8200_s17 + $0x8] sm:$0xff]  }
  0x2a   : > { %v5915_v2 = vunpack.c.l.bf16 %v5914_v0  ;;  %v5916_v3 = vunpack.c.h.bf16 %v5914_v0  ;;  %v5919_v4 = vunpack.c.l.bf16 %v5921_v1  ;;  %v5920_v5 = vunpack.c.h.bf16 %v5921_v1 }
  0x2c   : > { %783 = vst.msk [vmem:[#allocation2] sm:$0xff] %vm782_vm0, %v5915_v2  ;;  %784 = vst.msk [vmem:[#allocation2 + $0x8] sm:$0xff] %vm782_vm0, %v5916_v3 }
  0x2d   : > { %785 = vst.msk [vmem:[#allocation2 + $0x10] sm:$0xff] %vm782_vm0, %v5919_v4  ;;  %786 = vst.msk [vmem:[#allocation2 + $0x18] sm:$0xff] %vm782_vm0, %v5920_v5 }
  0x2e PF: > { %v6508_v6 = vld [vmem:[%s726_s18 + $0x8] sm:$0xff]   ;;  %v6509_v7 = vld [vmem:[%s726_s18] sm:$0xff]   ;;  %vm816_vm1 = vcmask 261120   ;;  %s8201_s23 = scalar_lea.vmem %s8165_s4, %s6946_s26  ;;  %s6822_s18 = smov 120   ;;  %v6824_v27 = vmov 0.0   ;;  %vm6826_vm2 = vmmov 0  }
  0x2f   : > { %6218 = vmatprep.subr.bf16.mxu0 %v6508_v6  ;;  %v5655_v14 = vld [vmem:[%s8201_s23] ss:$0 sm:$0xff]  ;;  %s6823_s27 = smov 112   ;;  %6226 = vmatprep.subr.bf16.mxu1 %v6824_v27  ;;  %s6825_s29 = smov 104   ;;  %vm910_vm3 = vcmask 64512   ;;  %vm1942_vm4 = vcmask 1043456  }
  0x30   : > { %6219 = vmatpush3.bf16.msra.mxu0 %v6508_v6  ;;  %6228 = vmatprep.mubr.msk.bf16.mxu1 %vm6826_vm2, %v6824_v27  ;;  %s6827_s30 = smov 96   ;;  %s6828_s3 = smov 64   ;;  %vm2758_vm5 = vcmask 130048   ;;  %vm2763_vm6 = vcmask 195584  }
  0x31   : > { %6220 = vmatprep.subr.bf16.mxu0 %v6509_v7  ;;  %s8202_s25 = sld [smem:[#allocation14_spill]]  ;;  %s6831_s5 = smov 24  }
  0x32   : > { %s8203_s8 = scalar_lea.vmem %s8167_s6, %s6946_s26  ;;  %p5898_p6 = scmp.ne.s32.totalorder %s6812_s21, 1 }
  0x33   : > { %v787_v8 = vld [vmem:[#allocation2] sm:$0xff]  ;;  %v788_v9 = vld [vmem:[#allocation2 + $0x8] sm:$0xff] }
  0x34   : > { %v789_v10 = vld [vmem:[#allocation2 + $0x10] sm:$0xff]  ;;  %v791_v11 = vpack.c.bf16 %v788_v9, %v787_v8  ;;  %v790_v12 = vld [vmem:[#allocation2 + $0x18] sm:$0xff]  ;;  %6221 = vmatpush3.bf16.msra.mxu0 %v6509_v7 }
  0x35   : > { %v792_v13 = vpack.c.bf16 %v790_v12, %v789_v10  ;;  %6232 = vmatprep.subr.bf16.mxu0 %v6824_v27 }
  0x36   : > { %6222 = vmatprep.mubr.msk.bf16.mxu0 %vm816_vm1, %v791_v11 }
  0x37   : > { %6223 = vmatmul.mubr.msk.bf16.vlgmr.msra.gmra.mxu0 %vm816_vm1, %v792_v13 }
  0x38   : > { %6234 = vmatprep.mubr.msk.bf16.mxu0 %vm6826_vm2, %v6824_v27 }
  0xf7   : > { %v6224_v15 = vpop.f32.mrf.mxu0 }
  0xf8   : > { %v866_v16 = vadd.f32 %v6224_v15, %v5655_v14 }
  0xf9   : > { %v857_v17 = vpop.f32.mrf.mxu0 }
  0xfa   : > { %v7016_v18 = vpack.c.bf16 %v866_v16, %v866_v16  ;;  %v858_v19 = vadd.f32 %v5655_v14, %v857_v17 }
  0xfb   : > { %v6225_v20 = vpop.f32.mrf.mxu0 }
  0xfc   : > { %v7018_v21 = vpack.c.bf16 %v858_v19, %v858_v19  ;;  %v869_v22 = vadd.f32 %v6225_v20, %v5655_v14  ;;  %888 = vrot.lane.b32.xlu1 %v7016_v18, %s6822_s18 }
  0xfd   : > { %v860_v23 = vpop.f32.mrf.mxu0 }
  0xfe   : > { %v7021_v24 = vpack.c.bf16 %v869_v22, %v869_v22  ;;  %v861_v25 = vadd.f32 %v5655_v14, %v860_v23  ;;  %884 = vrot.lane.b32.xlu0 %v7018_v21, %s6822_s18 }
 0x100   : > { %v7024_v26 = vpack.c.bf16 %v861_v25, %v861_v25  ;;  %890 = vrot.lane.b32.xlu1 %v7021_v24, %s6822_s18 }
 0x102   : > { %886 = vrot.lane.b32.xlu0 %v7024_v26, %s6822_s18 }
 0x104   : > { %894 = vrot.lane.b32.xlu1 %v7024_v26, %s6823_s27 }
 0x106   : > { %892 = vrot.lane.b32.xlu0 %v7018_v21, %s6823_s27 }
 0x108   : > { %898 = vrot.lane.b32.xlu1 %v7021_v24, %s6823_s27 }
 0x10a   : > { %896 = vrot.lane.b32.xlu0 %v7016_v18, %s6823_s27 }
 0x10c   : > { %902 = vrot.lane.b32.xlu1 %v7024_v26, %s6825_s29 }
 0x10e   : > { %900 = vrot.lane.b32.xlu0 %v7018_v21, %s6825_s29 }
 0x110   : > { %906 = vrot.lane.b32.xlu1 %v7021_v24, %s6825_s29 }
 0x112   : > { %904 = vrot.lane.b32.xlu0 %v7016_v18, %s6825_s29 }
 0x114   : > { %957 = vrot.lane.b32.xlu1 %v7024_v26, %s6827_s30 }
 0x116   : > { %908 = vrot.lane.b32.xlu0 %v7018_v21, %s6827_s30 }
 0x118   : > { %1053 = vrot.lane.b32.xlu1 %v7021_v24, %s6827_s30 }
 0x11a   : > { %1005 = vrot.lane.b32.xlu0 %v7016_v18, %s6827_s30 }
 0x16e   : > { %v7050_v28 = vpop.permute.xlu1 %888 }
 0x16f   : > { %v7063_v33 = vcombine.low %v7050_v28, %v7050_v28 }
 0x170   : > { %v7052_v29 = vpop.permute.xlu0 %884 }
 0x171   : > { %v5668_v30 = vcombine.low %v7052_v29, %v7052_v29 }
 0x172   : > { %v7056_v31 = vpop.permute.xlu1 %890 }
 0x173   : > { %1103 = vrot.lane.b32.xlu0 %v5668_v30, %s6827_s30  ;;  %v5674_v37 = vcombine.low %v7056_v31, %v7056_v31 }
 0x174   : > { %v7059_v32 = vpop.permute.xlu0 %886 }
 0x175   : > { %v5670_v34 = vcombine.low %v7059_v32, %v7059_v32 }
 0x176   : > { %v7067_v35 = vpop.permute.xlu1 %894 }
 0x177   : > { %1203 = vrot.lane.b32.xlu0 %v7063_v33, %s6827_s30  ;;  %1153 = vrot.lane.b32.xlu1 %v5670_v34, %s6827_s30  ;;  %v7086_v41 = vcombine.low %v7067_v35, %v7067_v35 }
 0x178   : > { %v7072_v36 = vpop.permute.xlu0 %892 }
 0x179   : > { %v5676_v38 = vcombine.low %v7072_v36, %v7072_v36 }
 0x17a   : > { %v7078_v39 = vpop.permute.xlu1 %898 }
 0x17b   : > { %1253 = vrot.lane.b32.xlu1 %v5674_v37, %s6827_s30  ;;  %1303 = vrot.lane.b32.xlu0 %v5676_v38, %s6827_s30  ;;  %v7102_v45 = vcombine.low %v7078_v39, %v7078_v39 }
 0x17c   : > { %v7082_v40 = vpop.permute.xlu0 %896 }
 0x17d   : > { %v7090_v42 = vcombine.low %v7082_v40, %v7082_v40 }
 0x17e   : > { %v7092_v43 = vpop.permute.xlu1 %902 }
 0x17f   : > { %1353 = vrot.lane.b32.xlu1 %v7086_v41, %s6827_s30  ;;  %1403 = vrot.lane.b32.xlu0 %v7090_v42, %s6827_s30  ;;  %v7118_v49 = vcombine.low %v7092_v43, %v7092_v43 }
 0x180   : > { %v7098_v44 = vpop.permute.xlu0 %900 }
 0x181   : > { %v7106_v46 = vcombine.low %v7098_v44, %v7098_v44 }
 0x182   : > { %v7108_v47 = vpop.permute.xlu1 %906 }
 0x183   : > { %1453 = vrot.lane.b32.xlu1 %v7102_v45, %s6827_s30  ;;  %1503 = vrot.lane.b32.xlu0 %v7106_v46, %s6827_s30  ;;  %v7131_v54 = vcombine.low %v7108_v47, %v7108_v47 }
 0x184   : > { %v7114_v48 = vpop.permute.xlu0 %904 }
 0x185   : > { %v7122_v50 = vcombine.low %v7114_v48, %v7114_v48 }
 0x186   : > { %v958_v51 = vpop.permute.xlu1 %957 }
 0x187   : > { %v963_v52 = vsel %vm910_vm3, %v958_v51, 0  ;;  %1553 = vrot.lane.b32.xlu1 %v7118_v49, %s6827_s30  ;;  %1603 = vrot.lane.b32.xlu0 %v7122_v50, %s6827_s30 }
 0x188   : > { %6233 = vmatpush3.bf16.xpose.msra.mxu0 %v963_v52  ;;  %v909_v53 = vpop.permute.xlu0 %908 }
 0x189   : > { %v915_v55 = vsel %vm910_vm3, %v909_v53, 0  ;;  %6244 = vmatprep.subr.bf16.mxu0 %v6824_v27 }
 0x18a   : > { %6227 = vmatpush3.bf16.xpose.msra.mxu1 %v915_v55  ;;  %v1054_v56 = vpop.permute.xlu1 %1053 }
 0x18b   : > { %1653 = vrot.lane.b32.xlu1 %v7131_v54, %s6827_s30  ;;  %1986 = vrot.lane.b32.xlu0 %v7024_v26, %s6828_s3  ;;  %v1059_v58 = vsel %vm910_vm3, %v1054_v56, 0  ;;  %s6829_s30 = smov 8  }
 0x18c   : > { %6238 = vmatprep.subr.bf16.mxu1 %v6824_v27  ;;  %v1006_v57 = vpop.permute.xlu0 %1005 }
 0x18d   : > { %v1011_v59 = vsel %vm910_vm3, %v1006_v57, 0 }
 0x18f   : > { %6235 = vmatmul.mubr.msk.bf16.vlgmr.msra.gmra.mxu0 %vm910_vm3, %v7024_v26  ;;  %1937 = vrot.lane.b32.xlu1 %v7018_v21, %s6828_s3  ;;  %v7256_v26 = vld [vmem:[%s8202_s25] ss:$0 sm:$0xff] }
 0x190   : > { %2082 = vrot.lane.b32.xlu0 %v7021_v24, %s6828_s3  ;;  %6245 = vmatpush3.bf16.xpose.msra.mxu0 %v1059_v58 }
 0x191   : > { %6229 = vmatmul.mubr.msk.bf16.vlgmr.msra.gmra.mxu1 %vm910_vm3, %v7018_v21  ;;  %6246 = vmatprep.mubr.msk.bf16.mxu0 %vm6826_vm2, %v6824_v27 }
 0x192   : > { %6239 = vmatpush3.bf16.xpose.msra.mxu1 %v1011_v59  ;;  %6240 = vmatprep.mubr.msk.bf16.mxu1 %vm6826_vm2, %v6824_v27 }
 0x193   : > { %2034 = vrot.lane.b32.xlu1 %v7016_v18, %s6828_s3  ;;  %6250 = vmatprep.subr.bf16.mxu1 %v6824_v27 }
 0x194   : > { %2274 = vrot.lane.b32.xlu0 %v5674_v37, %s6828_s3  ;;  %6256 = vmatprep.subr.bf16.mxu0 %v6824_v27 }
 0x197   : > { %6247 = vmatmul.mubr.msk.bf16.vlgmr.msra.gmra.mxu0 %vm910_vm3, %v7021_v24  ;;  %2130 = vrot.lane.b32.xlu1 %v5668_v30, %s6828_s3  ;;  %v7251_v24 = vld [vmem:[%s8202_s25 + $0x1] ss:$0 sm:$0xff] }
 0x198   : > { %2178 = vrot.lane.b32.xlu0 %v5670_v34, %s6828_s3  ;;  %6258 = vmatprep.mubr.msk.bf16.mxu0 %vm6826_vm2, %v6824_v27 }
 0x199   : > { %6241 = vmatmul.mubr.msk.bf16.vlgmr.msra.gmra.mxu1 %vm910_vm3, %v7016_v18 }
 0x19a   : > { %6252 = vmatprep.mubr.msk.bf16.mxu1 %vm6826_vm2, %v6824_v27 }
 0x19b   : > { %2226 = vrot.lane.b32.xlu1 %v7063_v33, %s6828_s3 }
 0x19f   : > { %2322 = vrot.lane.b32.xlu1 %v5676_v38, %s6828_s3 }
 0x1e5   : > { %v1104_v60 = vpop.permute.xlu0 %1103 }
 0x1e6   : > { %v1109_v61 = vsel %vm910_vm3, %v1104_v60, 0 }
 0x1e7   : > { %6251 = vmatpush3.bf16.xpose.msra.mxu1 %v1109_v61 }
 0x1e8   : > { %6262 = vmatprep.subr.bf16.mxu1 %v6824_v27 }
 0x1e9   : > { %v1154_v62 = vpop.permute.xlu1 %1153  ;;  %v1204_v0 = vpop.permute.xlu0 %1203 }
 0x1ea   : > { %v1159_v63 = vsel %vm910_vm3, %v1154_v62, 0  ;;  %v1209_v1 = vsel %vm910_vm3, %v1204_v0, 0 }
 0x1eb   : > { %6257 = vmatpush3.bf16.xpose.msra.mxu0 %v1159_v63 }
 0x1ec   : > { %6268 = vmatprep.subr.bf16.mxu0 %v6824_v27 }
 0x1ed   : > { %v1254_v2 = vpop.permute.xlu1 %1253  ;;  %v1304_v4 = vpop.permute.xlu0 %1303 }
 0x1ee   : > { %6253 = vmatmul.mubr.msk.bf16.vlgmr.msra.gmra.mxu1 %vm910_vm3, %v7052_v29  ;;  %v1259_v3 = vsel %vm910_vm3, %v1254_v2, 0  ;;  %v1309_v5 = vsel %vm910_vm3, %v1304_v4, 0 }
 0x1ef   : > { %6263 = vmatpush3.bf16.xpose.msra.mxu1 %v1209_v1  ;;  %6264 = vmatprep.mubr.msk.bf16.mxu1 %vm6826_vm2, %v6824_v27 }
 0x1f0   : > { %6274 = vmatprep.subr.bf16.mxu1 %v6824_v27 }
 0x1f1   : > { %v1354_v6 = vpop.permute.xlu1 %1353  ;;  %v1404_v8 = vpop.permute.xlu0 %1403 }
 0x1f2   : > { %6259 = vmatmul.mubr.msk.bf16.vlgmr.msra.gmra.mxu0 %vm910_vm3, %v7059_v32  ;;  %v1359_v7 = vsel %vm910_vm3, %v1354_v6, 0  ;;  %v1409_v9 = vsel %vm910_vm3, %v1404_v8, 0 }
 0x1f3   : > { %6269 = vmatpush3.bf16.xpose.msra.mxu0 %v1259_v3  ;;  %6270 = vmatprep.mubr.msk.bf16.mxu0 %vm6826_vm2, %v6824_v27 }
 0x1f4   : > { %6280 = vmatprep.subr.bf16.mxu0 %v6824_v27 }
 0x1f5   : > { %v1454_v10 = vpop.permute.xlu1 %1453  ;;  %v1504_v12 = vpop.permute.xlu0 %1503 }
 0x1f6   : > { %6265 = vmatmul.mubr.msk.bf16.vlgmr.msra.gmra.mxu1 %vm910_vm3, %v7050_v28  ;;  %v1459_v11 = vsel %vm910_vm3, %v1454_v10, 0  ;;  %v1509_v13 = vsel %vm910_vm3, %v1504_v12, 0 }
 0x1f7   : > { %6275 = vmatpush3.bf16.xpose.msra.mxu1 %v1309_v5  ;;  %6276 = vmatprep.mubr.msk.bf16.mxu1 %vm6826_vm2, %v6824_v27 }
 0x1f8   : > { %6286 = vmatprep.subr.bf16.mxu1 %v6824_v27 }
 0x1f9   : > { %v1554_v14 = vpop.permute.xlu1 %1553  ;;  %v1604_v16 = vpop.permute.xlu0 %1603 }
 0x1fa   : > { %6271 = vmatmul.mubr.msk.bf16.vlgmr.msra.gmra.mxu0 %vm910_vm3, %v7056_v31  ;;  %v1559_v15 = vsel %vm910_vm3, %v1554_v14, 0  ;;  %v1609_v18 = vsel %vm910_vm3, %v1604_v16, 0 }
 0x1fb   : > { %6281 = vmatpush3.bf16.xpose.msra.mxu0 %v1359_v7  ;;  %6282 = vmatprep.mubr.msk.bf16.mxu0 %vm6826_vm2, %v6824_v27 }
 0x1fc   : > { %6292 = vmatprep.subr.bf16.mxu0 %v6824_v27 }
 0x1fd   : > { %v1654_v17 = vpop.permute.xlu1 %1653  ;;  %v1987_v22 = vpop.permute.xlu0 %1986 }
 0x1fe   : > { %6277 = vmatmul.mubr.msk.bf16.vlgmr.msra.gmra.mxu1 %vm910_vm3, %v7072_v36  ;;  %v1659_v19 = vsel %vm910_vm3, %v1654_v17, 0  ;;  %v1992_v23 = vsel %vm1942_vm4, %v1987_v22, 0 }
 0x1ff   : > { %6287 = vmatpush3.bf16.xpose.msra.mxu1 %v1409_v9  ;;  %6288 = vmatprep.mubr.msk.bf16.mxu1 %vm6826_vm2, %v6824_v27 }
 0x200   : > { %6298 = vmatprep.subr.bf16.mxu1 %v6824_v27 }
 0x201   : > { %v1938_v20 = vpop.permute.xlu1 %1937 }
 0x202   : > { %6283 = vmatmul.mubr.msk.bf16.vlgmr.msra.gmra.mxu0 %vm910_vm3, %v7067_v35  ;;  %v1944_v21 = vsel %vm1942_vm4, %v1938_v20, 0 }
 0x203   : > { %6293 = vmatpush3.bf16.xpose.msra.mxu0 %v1459_v11  ;;  %6294 = vmatprep.mubr.msk.bf16.mxu0 %vm6826_vm2, %v6824_v27 }
 0x204   : > { %6304 = vmatprep.subr.bf16.mxu0 %v6824_v27 }
 0x206   : > { %6289 = vmatmul.mubr.msk.bf16.vlgmr.msra.gmra.mxu1 %vm910_vm3, %v7082_v40  ;;  %v7271_v40 = vld [vmem:[%s8202_s25 + $0x2] ss:$0 sm:$0xff] }
 0x207   : > { %6299 = vmatpush3.bf16.xpose.msra.mxu1 %v1509_v13  ;;  %6300 = vmatprep.mubr.msk.bf16.mxu1 %vm6826_vm2, %v6824_v27 }
 0x208   : > { %6310 = vmatprep.subr.bf16.mxu1 %v6824_v27 }
 0x20a   : > { %6295 = vmatmul.mubr.msk.bf16.vlgmr.msra.gmra.mxu0 %vm910_vm3, %v7078_v39 }
 0x20b   : > { %6305 = vmatpush3.bf16.xpose.msra.mxu0 %v1559_v15  ;;  %6306 = vmatprep.mubr.msk.bf16.mxu0 %vm6826_vm2, %v6824_v27 }
 0x20c   : > { %6316 = vmatprep.subr.bf16.mxu0 %v6824_v27 }
 0x20e   : > { %6301 = vmatmul.mubr.msk.bf16.vlgmr.msra.gmra.mxu1 %vm910_vm3, %v7098_v44 }
 0x20f   : > { %6311 = vmatpush3.bf16.xpose.msra.mxu1 %v1609_v18  ;;  %6312 = vmatprep.mubr.msk.bf16.mxu1 %vm6826_vm2, %v6824_v27 }
 0x210   : > { %6322 = vmatprep.subr.bf16.mxu1 %v6824_v27 }
 0x212   : > { %6307 = vmatmul.mubr.msk.bf16.vlgmr.msra.gmra.mxu0 %vm910_vm3, %v7092_v43  ;;  %v7276_v43 = vld [vmem:[%s8202_s25 + $0x3] ss:$0 sm:$0xff] }
 0x213   : > { %6317 = vmatpush3.bf16.xpose.msra.mxu0 %v1659_v19  ;;  %6318 = vmatprep.mubr.msk.bf16.mxu0 %vm6826_vm2, %v6824_v27 }
 0x214   : > { %6328 = vmatprep.subr.bf16.mxu0 %v6824_v27 }
 0x216   : > { %6313 = vmatmul.mubr.msk.bf16.vlgmr.msra.gmra.mxu1 %vm910_vm3, %v7114_v48 }
 0x217   : > { %6323 = vmatpush3.bf16.msra.mxu1 %v1944_v21  ;;  %6324 = vmatprep.mubr.msk.bf16.mxu1 %vm6826_vm2, %v6824_v27 }
 0x218   : > { %6334 = vmatprep.subr.bf16.mxu1 %v6824_v27 }
 0x21a   : > { %6319 = vmatmul.mubr.msk.bf16.vlgmr.msra.gmra.mxu0 %vm910_vm3, %v7108_v47 }
 0x21b   : > { %6329 = vmatpush3.bf16.msra.mxu0 %v1992_v23  ;;  %6330 = vmatprep.mubr.msk.bf16.mxu0 %vm6826_vm2, %v6824_v27 }
 0x21c   : > { %6340 = vmatprep.subr.bf16.mxu0 %v6824_v27 }
 0x24f   : > { %v999_v25 = vpop.f32.mrf.mxu0 }
 0x250   : > { %v7259_v28 = vadd.f32 %v7251_v24, %v999_v25 }
 0x251   : > { %v951_v29 = vpop.f32.mrf.mxu1  ;;  %v6236_v30 = vpop.f32.mrf.mxu0 }
 0x252   : > { %v7262_v31 = vadd.f32 %v7256_v26, %v951_v29  ;;  %v1748_v32 = vsel %vm910_vm3, %v7259_v28, -inf }
 0x253   : > { %v1002_v33 = vpop.f32.mrf.mxu0  ;;  %1749 = vmax.xlane.f32.xlu1 %v1748_v32  ;;  %v6230_v34 = vpop.f32.mrf.mxu1 }
 0x254   : > { %v1745_v35 = vsel %vm910_vm3, %v7262_v31, -inf }
 0x255   : > { %v6237_v36 = vpop.f32.mrf.mxu0  ;;  %1746 = vmax.xlane.f32.xlu0 %v1745_v35  ;;  %v954_v37 = vpop.f32.mrf.mxu1 }
 0x257   : > { %v6231_v38 = vpop.f32.mrf.mxu1  ;;  %v1095_v39 = vpop.f32.mrf.mxu0 }
 0x258   : > { %v7282_v53 = vadd.f32 %v7276_v43, %v1095_v39 }
 0x259   : > { %v1047_v44 = vpop.f32.mrf.mxu1  ;;  %v6248_v47 = vpop.f32.mrf.mxu0 }
 0x25a   : > { %v7279_v48 = vadd.f32 %v7271_v40, %v1047_v44  ;;  %v1754_v59 = vsel %vm910_vm3, %v7282_v53, -inf }
 0x25b   : > { %v6242_v51 = vpop.f32.mrf.mxu1  ;;  %v1098_v52 = vpop.f32.mrf.mxu0 }
 0x25c   : > { %v1751_v55 = vsel %vm910_vm3, %v7279_v48, -inf }
 0x25d   : > { %v6249_v56 = vpop.f32.mrf.mxu0  ;;  %1752 = vmax.xlane.f32.xlu0 %v1751_v55  ;;  %v1050_v57 = vpop.f32.mrf.mxu1 }
 0x25e   : > { %v7326_v57 = vpop.permute.xlu0 %2082 }
 0x25f   : > { %v6243_v58 = vpop.f32.mrf.mxu1 }
 0x261   : > { %1755 = vmax.xlane.f32.xlu0 %v1754_v59 }
 0x2ae   : > { %v1145_v60 = vpop.f32.mrf.mxu1 }
 0x2af   : > { %v7289_v61 = vadd.f32 %v7256_v26, %v1145_v60 }
 0x2b0   : > { %v6254_v62 = vpop.f32.mrf.mxu1 }
 0x2b1   : > { %v1757_v63 = vsel %vm910_vm3, %v7289_v61, -inf }
 0x2b2   : > { %v1195_v0 = vpop.f32.mrf.mxu0  ;;  %1758 = vmax.xlane.f32.xlu1 %v1757_v63  ;;  %v1148_v1 = vpop.f32.mrf.mxu1 }
 0x2b3   : > { %v7294_v2 = vadd.f32 %v7251_v24, %v1195_v0 }
 0x2b4   : > { %v6255_v3 = vpop.f32.mrf.mxu1  ;;  %v6260_v4 = vpop.f32.mrf.mxu0 }
 0x2b5   : > { %v1760_v5 = vsel %vm910_vm3, %v7294_v2, -inf }
 0x2b6   : > { %v1198_v6 = vpop.f32.mrf.mxu0  ;;  %1761 = vmax.xlane.f32.xlu0 %v1760_v5  ;;  %v1245_v7 = vpop.f32.mrf.mxu1 }
 0x2b7   : > { %v7299_v8 = vadd.f32 %v7271_v40, %v1245_v7  ;;  %v7335_v5 = vpop.permute.xlu0 %2274 }
 0x2b8   : > { %v6261_v9 = vpop.f32.mrf.mxu0  ;;  %v6266_v10 = vpop.f32.mrf.mxu1 }
 0x2b9   : > { %v1763_v11 = vsel %vm910_vm3, %v7299_v8, -inf }
 0x2ba   : > { %v1295_v12 = vpop.f32.mrf.mxu0  ;;  %1764 = vmax.xlane.f32.xlu1 %v1763_v11  ;;  %v1248_v13 = vpop.f32.mrf.mxu1 }
 0x2bb   : > { %v7304_v14 = vadd.f32 %v7276_v43, %v1295_v12 }
 0x2bc   : > { %v6267_v15 = vpop.f32.mrf.mxu1  ;;  %v6272_v16 = vpop.f32.mrf.mxu0 }
 0x2bd   : > { %v1766_v17 = vsel %vm910_vm3, %v7304_v14, -inf  ;;  %v7345_v16 = vpop.permute.xlu0 %2178 }
 0x2be   : > { %v1298_v18 = vpop.f32.mrf.mxu0  ;;  %1767 = vmax.xlane.f32.xlu0 %v1766_v17  ;;  %v1345_v19 = vpop.f32.mrf.mxu1 }
 0x2bf   : > { %v7309_v20 = vadd.f32 %v7256_v26, %v1345_v19 }
 0x2c0   : > { %v6273_v21 = vpop.f32.mrf.mxu0  ;;  %v6278_v22 = vpop.f32.mrf.mxu1 }
 0x2c1   : > { %v1769_v23 = vsel %vm910_vm3, %v7309_v20, -inf }
 0x2c2   : > { %v1395_v25 = vpop.f32.mrf.mxu0  ;;  %1770 = vmax.xlane.f32.xlu1 %v1769_v23  ;;  %v1348_v29 = vpop.f32.mrf.mxu1 }
 0x2c3   : > { %v7314_v30 = vadd.f32 %v7251_v24, %v1395_v25 }
 0x2c4   : > { %v6279_v32 = vpop.f32.mrf.mxu1  ;;  %v6284_v33 = vpop.f32.mrf.mxu0 }
 0x2c5   : > { %v1772_v34 = vsel %vm910_vm3, %v7314_v30, -inf  ;;  %v7355_v33 = vpop.permute.xlu1 %2034 }
 0x2c6   : > { %v1398_v35 = vpop.f32.mrf.mxu0  ;;  %1773 = vmax.xlane.f32.xlu0 %v1772_v34  ;;  %v1445_v36 = vpop.f32.mrf.mxu1 }
 0x2c7   : > { %v7319_v37 = vadd.f32 %v7271_v40, %v1445_v36 }
 0x2c8   : > { %v6285_v38 = vpop.f32.mrf.mxu0  ;;  %v6290_v39 = vpop.f32.mrf.mxu1 }
 0x2c9   : > { %v1775_v44 = vsel %vm910_vm3, %v7319_v37, -inf  ;;  %v7357_v35 = vpop.permute.xlu1 %2130 }
 0x2ca   : > { %v1495_v47 = vpop.f32.mrf.mxu0  ;;  %1776 = vmax.xlane.f32.xlu1 %v1775_v44  ;;  %v1448_v51 = vpop.f32.mrf.mxu1 }
 0x2cb   : > { %v7324_v52 = vadd.f32 %v7276_v43, %v1495_v47 }
 0x2cc   : > { %v6291_v55 = vpop.f32.mrf.mxu1  ;;  %v6296_v56 = vpop.f32.mrf.mxu0 }
 0x2cd   : > { %v1778_v58 = vsel %vm910_vm3, %v7324_v52, -inf  ;;  %v7359_v36 = vpop.permute.xlu1 %2226 }
 0x2ce   : > { %v1498_v59 = vpop.f32.mrf.mxu0  ;;  %1779 = vmax.xlane.f32.xlu0 %v1778_v58  ;;  %v1545_v60 = vpop.f32.mrf.mxu1 }
 0x2cf   : > { %v7331_v62 = vadd.f32 %v7256_v26, %v1545_v60 }
 0x2d0   : > { %v6297_v63 = vpop.f32.mrf.mxu0  ;;  %v6302_v0 = vpop.f32.mrf.mxu1 }
 0x2d1   : > { %v1781_v1 = vsel %vm910_vm3, %v7331_v62, -inf  ;;  %v7365_v39 = vpop.permute.xlu1 %2322 }
 0x2d2   : > { %v1595_v3 = vpop.f32.mrf.mxu0  ;;  %1782 = vmax.xlane.f32.xlu1 %v1781_v1  ;;  %v1548_v4 = vpop.f32.mrf.mxu1 }
 0x2d3   : > { %v7338_v6 = vadd.f32 %v7251_v24, %v1595_v3 }
 0x2d4   : > { %v6303_v7 = vpop.f32.mrf.mxu1  ;;  %v6308_v9 = vpop.f32.mrf.mxu0 }
 0x2d5   : > { %v1784_v10 = vsel %vm910_vm3, %v7338_v6, -inf }
 0x2d6   : > { %v1598_v26 = vpop.f32.mrf.mxu0  ;;  %1785 = vmax.xlane.f32.xlu0 %v1784_v10  ;;  %v1645_v11 = vpop.f32.mrf.mxu1 }
 0x2d7   : > { %v7343_v12 = vadd.f32 %v7271_v40, %v1645_v11 }
 0x2d8   : > { %v6309_v13 = vpop.f32.mrf.mxu0  ;;  %v6314_v15 = vpop.f32.mrf.mxu1 }
 0x2d9   : > { %v1787_v17 = vsel %vm910_vm3, %v7343_v12, -inf }
 0x2da   : > { %v1695_v24 = vpop.f32.mrf.mxu0  ;;  %1788 = vmax.xlane.f32.xlu1 %v1787_v17  ;;  %v1648_v18 = vpop.f32.mrf.mxu1 }
 0x2db   : > { %v7350_v19 = vadd.f32 %v7276_v43, %v1695_v24 }
 0x2dc   : > { %v6320_v21 = vpop.f32.mrf.mxu0  ;;  %v6315_v22 = vpop.f32.mrf.mxu1 }
 0x2dd   : > { %v1790_v23 = vsel %vm910_vm3, %v7350_v19, -inf  ;;  %v1750_v44 = vpop.xlane.xlu1 %1749 }
 0x2de   : > { %v1698_v40 = vpop.f32.mrf.mxu0  ;;  %1791 = vmax.xlane.f32.xlu0 %v1790_v23  ;;  %v1747_v25 = vpop.xlane.xlu0 %1746  ;;  %v1794_v47 = vsub.f32 %v7259_v28, %v1750_v44 }
 0x2df   : > { %v1793_v29 = vsub.f32 %v7262_v31, %v1747_v25 }
 0x2e0   : > { %v6321_v32 = vpop.f32.mrf.mxu0  ;;  %v1811_v55 = vmul.f32 1.442695, %v1794_v47 }
 0x2e1   : > { %v1809_v34 = vmul.f32 1.442695, %v1793_v29 }
 0x2e3   : > { %6640 = vpow2.f32 %v1809_v34 }
 0x2e4   : > { %6642 = vpow2.f32 %v1811_v55 }
 0x2e6   : > { %v1753_v31 = vpop.xlane.xlu0 %1752 }
 0x2ea   : > { %v1756_v51 = vpop.xlane.xlu0 %1755 }
 0x2eb   : > { %v1796_v56 = vsub.f32 %v7282_v53, %v1756_v51 }
 0x2ed   : > { %v1815_v58 = vmul.f32 1.442695, %v1796_v56 }
 0x2ef   : > { %6644 = vpow2.f32 %v1815_v58 }
 0x2f0   : > { %v7361_v43 = vpop.eup %6640 }
 0x2f1   : > { %v1841_v38 = vsel %vm910_vm3, %v7361_v43, 0.0  ;;  %v7375_v59 = vpop.eup %6642 }
 0x2f2   : > { %1842 = vadd.xlane.f32.xlu1 %v1841_v38  ;;  %v1844_v28 = vsel %vm910_vm3, %v7375_v59, 0.0 }
 0x2f4   : > { %2370 = vrot.lane.b32.xlu0 %v7086_v41, %s6828_s3  ;;  %v1795_v41 = vsub.f32 %v7279_v48, %v1753_v31 }
 0x2f6   : > { %v1813_v53 = vmul.f32 1.442695, %v1795_v41 }
 0x2f8   : > { %6646 = vpow2.f32 %v1813_v53 }
 0x2fc   : > { %v7380_v60 = vpop.eup %6644 }
 0x2fd   : > { %v1850_v63 = vsel %vm910_vm3, %v7380_v60, 0.0 }
 0x303   : > { %2418 = vrot.lane.b32.xlu1 %v7090_v42, %s6828_s3 }
 0x305   : > { %v7384_v42 = vpop.eup %6646 }
 0x307   : > { %2466 = vrot.lane.b32.xlu1 %v7102_v45, %s6828_s3  ;;  %v1847_v45 = vsel %vm910_vm3, %v7384_v42, 0.0 }
 0x313   : > { %1845 = vadd.xlane.f32.xlu0 %v1844_v28 }
 0x317   : > { %1851 = vadd.xlane.f32.xlu0 %v1850_v63 }
 0x32b   : > { %1848 = vadd.xlane.f32.xlu1 %v1847_v45 }
 0x33b   : > { %v1759_v0 = vpop.xlane.xlu1 %1758 }
 0x33c   : > { %v1797_v48 = vsub.f32 %v7289_v61, %v1759_v0 }
 0x33e   : > { %v1817_v1 = vmul.f32 1.442695, %v1797_v48 }
 0x33f   : > { %v1762_v3 = vpop.xlane.xlu0 %1761 }
 0x340   : > { %6648 = vpow2.f32 %v1817_v1  ;;  %v1798_v4 = vsub.f32 %v7294_v2, %v1762_v3 }
 0x342   : > { %v1819_v7 = vmul.f32 1.442695, %v1798_v4 }
 0x343   : > { %v1765_v9 = vpop.xlane.xlu1 %1764 }
 0x344   : > { %6650 = vpow2.f32 %v1819_v7  ;;  %v1799_v10 = vsub.f32 %v7299_v8, %v1765_v9 }
 0x346   : > { %v1821_v26 = vmul.f32 1.442695, %v1799_v10 }
 0x347   : > { %v1768_v11 = vpop.xlane.xlu0 %1767 }
 0x348   : > { %6652 = vpow2.f32 %v1821_v26  ;;  %v1800_v13 = vsub.f32 %v7304_v14, %v1768_v11 }
 0x34a   : > { %v1823_v15 = vmul.f32 1.442695, %v1800_v13 }
 0x34b   : > { %v1771_v17 = vpop.xlane.xlu1 %1770 }
 0x34c   : > { %6654 = vpow2.f32 %v1823_v15  ;;  %v1801_v61 = vsub.f32 %v7309_v20, %v1771_v17 }
 0x34d   : > { %v7393_v24 = vpop.eup %6648 }
 0x34e   : > { %v1825_v18 = vmul.f32 1.442695, %v1801_v61  ;;  %v1853_v2 = vsel %vm910_vm3, %v7393_v24, 0.0 }
 0x34f   : > { %1854 = vadd.xlane.f32.xlu1 %v1853_v2  ;;  %v1774_v21 = vpop.xlane.xlu0 %1773 }
 0x350   : > { %6656 = vpow2.f32 %v1825_v18  ;;  %v1802_v8 = vsub.f32 %v7314_v30, %v1774_v21 }
 0x351   : > { %v7398_v22 = vpop.eup %6650 }
 0x352   : > { %v1827_v23 = vmul.f32 1.442695, %v1802_v8  ;;  %v1856_v14 = vsel %vm910_vm3, %v7398_v22, 0.0 }
 0x353   : > { %v1777_v40 = vpop.xlane.xlu1 %1776  ;;  %1857 = vadd.xlane.f32.xlu0 %v1856_v14 }
 0x354   : > { %6658 = vpow2.f32 %v1827_v23  ;;  %v1803_v20 = vsub.f32 %v7319_v37, %v1777_v40 }
 0x355   : > { %v7403_v25 = vpop.eup %6652 }
 0x356   : > { %v1829_v29 = vmul.f32 1.442695, %v1803_v20  ;;  %v1859_v32 = vsel %vm910_vm3, %v7403_v25, 0.0  ;;  %v2088_v20 = vsel %vm1942_vm4, %v7326_v57, 0  ;;  %v2184_v57 = vsel %vm1942_vm4, %v7345_v16, 0 }
 0x357   : > { %1860 = vadd.xlane.f32.xlu1 %v1859_v32  ;;  %v1780_v34 = vpop.xlane.xlu0 %1779 }
 0x358   : > { %6660 = vpow2.f32 %v1829_v29  ;;  %v1804_v30 = vsub.f32 %v7324_v52, %v1780_v34 }
 0x359   : > { %v7408_v38 = vpop.eup %6654 }
 0x35a   : > { %v1831_v31 = vmul.f32 1.442695, %v1804_v30  ;;  %v1862_v44 = vsel %vm910_vm3, %v7408_v38, 0.0 }
 0x35b   : > { %1863 = vadd.xlane.f32.xlu0 %v1862_v44  ;;  %v1783_v28 = vpop.xlane.xlu1 %1782 }
 0x35c   : > { %6662 = vpow2.f32 %v1831_v31  ;;  %v1805_v45 = vsub.f32 %v7331_v62, %v1783_v28  ;;  %v2136_v31 = vsel %vm1942_vm4, %v7357_v35, 0  ;;  %v2232_v28 = vsel %vm1942_vm4, %v7359_v36, 0 }
 0x35d   : > { %v7412_v37 = vpop.eup %6656 }
 0x35e   : > { %v1865_v47 = vsel %vm910_vm3, %v7412_v37, 0.0  ;;  %v1833_v1 = vmul.f32 1.442695, %v1805_v45 }
 0x35f   : > { %1866 = vadd.xlane.f32.xlu1 %v1865_v47  ;;  %v1786_v0 = vpop.xlane.xlu0 %1785 }
 0x360   : > { %v1806_v48 = vsub.f32 %v7338_v6, %v1786_v0  ;;  %v2280_v0 = vsel %vm1942_vm4, %v7335_v5, 0 }
 0x361   : > { %v7416_v51 = vpop.eup %6658 }
 0x362   : > { %v1868_v55 = vsel %vm910_vm3, %v7416_v51, 0.0  ;;  %v1835_v9 = vmul.f32 1.442695, %v1806_v48 }
 0x363   : > { %1869 = vadd.xlane.f32.xlu0 %v1868_v55  ;;  %v1789_v53 = vpop.xlane.xlu1 %1788 }
 0x364   : > { %v1807_v3 = vsub.f32 %v7343_v12, %v1789_v53 }
 0x365   : > { %v7420_v52 = vpop.eup %6660 }
 0x366   : > { %v1871_v56 = vsel %vm910_vm3, %v7420_v52, 0.0 }
 0x367   : > { %1872 = vadd.xlane.f32.xlu1 %v1871_v56  ;;  %v1792_v4 = vpop.xlane.xlu0 %1791 }
 0x368   : > { %v1808_v26 = vsub.f32 %v7350_v19, %v1792_v4 }
 0x369   : > { %v7424_v58 = vpop.eup %6662 }
 0x36a   : > { %v1874_v41 = vsel %vm910_vm3, %v7424_v58, 0.0  ;;  %v1839_v62 = vmul.f32 1.442695, %v1808_v26 }
 0x36b   : > { %1875 = vadd.xlane.f32.xlu0 %v1874_v41  ;;  %v7445_v12 = vpop.permute.xlu0 %2370 }
 0x378   : > { %2562 = vrot.lane.b32.xlu1 %v7118_v49, %s6828_s3  ;;  %v1837_v49 = vmul.f32 1.442695, %v1807_v3  ;;  %v2328_v3 = vsel %vm1942_vm4, %v7365_v39, 0 }
 0x37b   : > { %v1843_v63 = vpop.xlane.xlu1 %1842 }
 0x37c   : > { %6664 = vrcp.f32 %v1843_v63 }
 0x37d   : > { %6666 = vpow2.f32 %v1833_v1 }
 0x37e   : > { %6668 = vpow2.f32 %v1835_v9  ;;  %v2376_v9 = vsel %vm1942_vm4, %v7445_v12, 0 }
 0x37f   : > { %6670 = vpow2.f32 %v1837_v49  ;;  %v7461_v8 = vpop.permute.xlu1 %2418 }
 0x380   : > { %6672 = vpow2.f32 %v1839_v62  ;;  %v2424_v49 = vsel %vm1942_vm4, %v7461_v8, 0 }
 0x381   : > { %2514 = vrot.lane.b32.xlu0 %v7106_v46, %s6828_s3  ;;  %v2040_v46 = vsel %vm1942_vm4, %v7355_v33, 0 }
 0x383   : > { %v7467_v29 = vpop.permute.xlu1 %2466 }
 0x389   : > { %v6665_v7 = vpop.eup %6664 }
 0x38a   : > { %v1905_v10 = vmul.f32 %v6665_v7, %v7361_v43  ;;  %v7443_v6 = vpop.eup %6666 }
 0x38b   : > { %v7447_v19 = vpop.eup %6668  ;;  %v1877_v33 = vsel %vm910_vm3, %v7443_v6, 0.0 }
 0x38c   : > { %v1921_v11 = vpack.c.bf16 %v1905_v10, %v1905_v10  ;;  %v7451_v43 = vpop.eup %6670  ;;  %v1880_v17 = vsel %vm910_vm3, %v7447_v19, 0.0 }
 0x38d   : > { %v1883_v15 = vsel %vm910_vm3, %v7451_v43, 0.0  ;;  %v7457_v61 = vpop.eup %6672 }
 0x38e   : > { %6325 = vmatmul.mubr.msk.bf16.vlgmr.msra.gmra.mxu1 %vm910_vm3, %v1921_v11  ;;  %v1886_v2 = vsel %vm910_vm3, %v7457_v61, 0.0 }
 0x38f   : > { %6335 = vmatpush3.bf16.msra.mxu1 %v2040_v46  ;;  %6336 = vmatprep.mubr.msk.bf16.mxu1 %vm6826_vm2, %v6824_v27  ;;  %v2472_v46 = vsel %vm1942_vm4, %v7467_v29, 0 }
 0x390   : > { %6346 = vmatprep.subr.bf16.mxu1 %v6824_v27 }
 0x39c   : > { %1878 = vadd.xlane.f32.xlu1 %v1877_v33  ;;  %v1846_v13 = vpop.xlane.xlu0 %1845 }
 0x39d   : > { %6674 = vrcp.f32 %v1846_v13 }
 0x3a0   : > { %1884 = vadd.xlane.f32.xlu1 %v1883_v15  ;;  %1881 = vadd.xlane.f32.xlu0 %v1880_v17  ;;  %v1852_v18 = vpop.xlane.xlu0 %1851 }
 0x3a1   : > { %6676 = vrcp.f32 %v1852_v18 }
 0x3a4   : > { %1887 = vadd.xlane.f32.xlu0 %v1886_v2 }
 0x3aa   : > { %v6675_v21 = vpop.eup %6674 }
 0x3ab   : > { %v1906_v23 = vmul.f32 %v6675_v21, %v7375_v59 }
 0x3ad   : > { %v1922_v14 = vpack.c.bf16 %v1906_v23, %v1906_v23 }
 0x3ae   : > { %v6677_v40 = vpop.eup %6676 }
 0x3af   : > { %6331 = vmatmul.mubr.msk.bf16.vlgmr.msra.gmra.mxu0 %vm910_vm3, %v1922_v14  ;;  %v1908_v59 = vmul.f32 %v6677_v40, %v7380_v60 }
 0x3b0   : > { %6341 = vmatpush3.bf16.msra.mxu0 %v2088_v20  ;;  %6342 = vmatprep.mubr.msk.bf16.mxu0 %vm6826_vm2, %v6824_v27 }
 0x3b1   : > { %2658 = vrot.lane.b32.xlu1 %v7131_v54, %s6828_s3  ;;  %6352 = vmatprep.subr.bf16.mxu0 %v6824_v27  ;;  %v1924_v34 = vpack.c.bf16 %v1908_v59, %v1908_v59 }
 0x3b4   : > { %v1849_v32 = vpop.xlane.xlu1 %1848 }
 0x3b5   : > { %6678 = vrcp.f32 %v1849_v32 }
 0x3b7   : > { %6343 = vmatmul.mubr.msk.bf16.vlgmr.msra.gmra.mxu0 %vm910_vm3, %v1924_v34 }
 0x3b8   : > { %6353 = vmatpush3.bf16.msra.mxu0 %v2184_v57  ;;  %6354 = vmatprep.mubr.msk.bf16.mxu0 %vm6826_vm2, %v6824_v27 }
 0x3b9   : > { %6364 = vmatprep.subr.bf16.mxu0 %v6824_v27 }
 0x3ba   : > { %2610 = vrot.lane.b32.xlu0 %v7122_v50, %s6828_s3  ;;  %s6830_s3 = smov 16  }
 0x3c2   : > { %v6679_v54 = vpop.eup %6678 }
 0x3c3   : > { %v1907_v60 = vmul.f32 %v6679_v54, %v7384_v42 }
 0x3c5   : > { %v1923_v30 = vpack.c.bf16 %v1907_v60, %v1907_v60 }
 0x3c7   : > { %6337 = vmatmul.mubr.msk.bf16.vlgmr.msra.gmra.mxu1 %vm910_vm3, %v1923_v30 }
 0x3c8   : > { %6347 = vmatpush3.bf16.msra.mxu1 %v2136_v31  ;;  %6348 = vmatprep.mubr.msk.bf16.mxu1 %vm6826_vm2, %v6824_v27 }
 0x3c9   : > { %6358 = vmatprep.subr.bf16.mxu1 %v6824_v27 }
 0x3d8   : > { %v1855_v16 = vpop.xlane.xlu1 %1854 }
 0x3d9   : > { %6680 = vrcp.f32 %v1855_v16 }
 0x3dc   : > { %v1858_v44 = vpop.xlane.xlu0 %1857 }
 0x3dd   : > { %6682 = vrcp.f32 %v1858_v44 }
 0x3e0   : > { %v1861_v50 = vpop.xlane.xlu1 %1860 }
 0x3e1   : > { %6684 = vrcp.f32 %v1861_v50 }
 0x3e4   : > { %v1864_v47 = vpop.xlane.xlu0 %1863 }
 0x3e5   : > { %6686 = vrcp.f32 %v1864_v47 }
 0x3e6   : > { %v6681_v42 = vpop.eup %6680 }
 0x3e7   : > { %v1909_v55 = vmul.f32 %v6681_v42, %v7393_v24 }
 0x3e8   : > { %v1867_v35 = vpop.xlane.xlu1 %1866 }
 0x3e9   : > { %6688 = vrcp.f32 %v1867_v35  ;;  %v1925_v56 = vpack.c.bf16 %v1909_v55, %v1909_v55 }
 0x3ea   : > { %v6683_v41 = vpop.eup %6682 }
 0x3eb   : > { %6349 = vmatmul.mubr.msk.bf16.vlgmr.msra.gmra.mxu1 %vm910_vm3, %v1925_v56  ;;  %v1910_v53 = vmul.f32 %v6683_v41, %v7398_v22 }
 0x3ec   : > { %6359 = vmatpush3.bf16.msra.mxu1 %v2232_v28  ;;  %v1870_v63 = vpop.xlane.xlu0 %1869  ;;  %6360 = vmatprep.mubr.msk.bf16.mxu1 %vm6826_vm2, %v6824_v27 }
 0x3ed   : > { %6690 = vrcp.f32 %v1870_v63  ;;  %v1926_v45 = vpack.c.bf16 %v1910_v53, %v1910_v53  ;;  %6370 = vmatprep.subr.bf16.mxu1 %v6824_v27 }
 0x3ee   : > { %v6685_v24 = vpop.eup %6684 }
 0x3ef   : > { %6355 = vmatmul.mubr.msk.bf16.vlgmr.msra.gmra.mxu0 %vm910_vm3, %v1926_v45  ;;  %v1911_v36 = vmul.f32 %v6685_v24, %v7403_v25 }
 0x3f0   : > { %6365 = vmatpush3.bf16.msra.mxu0 %v2280_v0  ;;  %v1873_v48 = vpop.xlane.xlu1 %1872  ;;  %6366 = vmatprep.mubr.msk.bf16.mxu0 %vm6826_vm2, %v6824_v27 }
 0x3f1   : > { %6692 = vrcp.f32 %v1873_v48  ;;  %v1927_v22 = vpack.c.bf16 %v1911_v36, %v1911_v36  ;;  %6376 = vmatprep.subr.bf16.mxu0 %v6824_v27 }
 0x3f2   : > { %v6687_v1 = vpop.eup %6686 }
 0x3f3   : > { %6361 = vmatmul.mubr.msk.bf16.vlgmr.msra.gmra.mxu1 %vm910_vm3, %v1927_v22  ;;  %v1912_v5 = vmul.f32 %v6687_v1, %v7408_v38 }
 0x3f4   : > { %6371 = vmatpush3.bf16.msra.mxu1 %v2328_v3  ;;  %v1876_v4 = vpop.xlane.xlu0 %1875  ;;  %6372 = vmatprep.mubr.msk.bf16.mxu1 %vm6826_vm2, %v6824_v27  ;;  %v2563_v17 = vpop.permute.xlu1 %2562 }
 0x3f5   : > { %6694 = vrcp.f32 %v1876_v4  ;;  %v1928_v25 = vpack.c.bf16 %v1912_v5, %v1912_v5  ;;  %6382 = vmatprep.subr.bf16.mxu1 %v6824_v27  ;;  %v2568_v18 = vsel %vm1942_vm4, %v2563_v17, 0 }
 0x3f6   : > { %v6689_v7 = vpop.eup %6688 }
 0x3f7   : > { %6367 = vmatmul.mubr.msk.bf16.vlgmr.msra.gmra.mxu0 %vm910_vm3, %v1928_v25  ;;  %v1913_v39 = vmul.f32 %v6689_v7, %v7412_v37 }
 0x3f8   : > { %6377 = vmatpush3.bf16.msra.mxu0 %v2376_v9  ;;  %6378 = vmatprep.mubr.msk.bf16.mxu0 %vm6826_vm2, %v6824_v27  ;;  %v2515_v12 = vpop.permute.xlu0 %2514 }
 0x3f9   : > { %v1929_v38 = vpack.c.bf16 %v1913_v39, %v1913_v39  ;;  %6388 = vmatprep.subr.bf16.mxu0 %v6824_v27  ;;  %v2520_v13 = vsel %vm1942_vm4, %v2515_v12, 0 }
 0x3fa   : > { %v6691_v10 = vpop.eup %6690 }
 0x3fb   : > { %6373 = vmatmul.mubr.msk.bf16.vlgmr.msra.gmra.mxu1 %vm910_vm3, %v1929_v38  ;;  %v1914_v26 = vmul.f32 %v6691_v10, %v7416_v51 }
 0x3fc   : > { %6383 = vmatpush3.bf16.msra.mxu1 %v2424_v49  ;;  %6384 = vmatprep.mubr.msk.bf16.mxu1 %vm6826_vm2, %v6824_v27 }
 0x3fd   : > { %v1930_v37 = vpack.c.bf16 %v1914_v26, %v1914_v26  ;;  %6394 = vmatprep.subr.bf16.mxu1 %v6824_v27 }
 0x3fe   : > { %v6693_v11 = vpop.eup %6692 }
 0x3ff   : > { %6379 = vmatmul.mubr.msk.bf16.vlgmr.msra.gmra.mxu0 %vm910_vm3, %v1930_v37  ;;  %v1915_v62 = vmul.f32 %v6693_v11, %v7420_v52 }
 0x400   : > { %6389 = vmatpush3.bf16.msra.mxu0 %v2472_v46  ;;  %6390 = vmatprep.mubr.msk.bf16.mxu0 %vm6826_vm2, %v6824_v27 }
 0x401   : > { %v1931_v51 = vpack.c.bf16 %v1915_v62, %v1915_v62  ;;  %6400 = vmatprep.subr.bf16.mxu0 %v6824_v27 }
 0x402   : > { %v6695_v33 = vpop.eup %6694 }
 0x403   : > { %6385 = vmatmul.mubr.msk.bf16.vlgmr.msra.gmra.mxu1 %vm910_vm3, %v1931_v51  ;;  %v1916_v15 = vmul.f32 %v6695_v33, %v7424_v58 }
 0x404   : > { %6395 = vmatpush3.bf16.msra.mxu1 %v2520_v13  ;;  %6396 = vmatprep.mubr.msk.bf16.mxu1 %vm6826_vm2, %v6824_v27 }
 0x405   : > { %v1932_v52 = vpack.c.bf16 %v1916_v15, %v1916_v15  ;;  %6406 = vmatprep.subr.bf16.mxu1 %v6824_v27 }
 0x407   : > { %6391 = vmatmul.mubr.msk.bf16.vlgmr.msra.gmra.mxu0 %vm910_vm3, %v1932_v52 }
 0x408   : > { %6401 = vmatpush3.bf16.msra.mxu0 %v2568_v18  ;;  %6402 = vmatprep.mubr.msk.bf16.mxu0 %vm6826_vm2, %v6824_v27 }
 0x409   : > { %6412 = vmatprep.subr.bf16.mxu0 %v6824_v27 }
 0x425   : > { %v1879_v2 = vpop.xlane.xlu1 %1878 }
 0x426   : > { %6696 = vrcp.f32 %v1879_v2 }
 0x429   : > { %v1885_v58 = vpop.xlane.xlu1 %1884  ;;  %v1882_v21 = vpop.xlane.xlu0 %1881 }
 0x42a   : > { %6698 = vrcp.f32 %v1885_v58 }
 0x42b   : > { %6700 = vrcp.f32 %v1882_v21 }
 0x42d   : > { %v1888_v8 = vpop.xlane.xlu0 %1887  ;;  %v2659_v57 = vpop.permute.xlu1 %2658 }
 0x42e   : > { %6702 = vrcp.f32 %v1888_v8 }
 0x431   : > { %v2611_v40 = vpop.permute.xlu0 %2610 }
 0x432   : > { %v2616_v32 = vsel %vm1942_vm4, %v2611_v40, 0 }
 0x433   : > { %v6697_v23 = vpop.eup %6696 }
 0x434   : > { %v1917_v14 = vmul.f32 %v6697_v23, %v7443_v6  ;;  %v2664_v6 = vsel %vm1942_vm4, %v2659_v57, 0 }
 0x436   : > { %v1933_v20 = vpack.c.bf16 %v1917_v14, %v1917_v14 }
 0x437   : > { %v6699_v29 = vpop.eup %6698 }
 0x438   : > { %v6701_v59 = vpop.eup %6700  ;;  %6397 = vmatmul.mubr.msk.bf16.vlgmr.msra.gmra.mxu1 %vm910_vm3, %v1933_v20  ;;  %v1919_v54 = vmul.f32 %v6699_v29, %v7451_v43  ;;  %v6510_v29 = vld [vmem:[%s6959_s24 + $0x8] sm:$0xff]  }
 0x439   : > { %6407 = vmatpush3.bf16.msra.mxu1 %v2616_v32  ;;  %v1918_v34 = vmul.f32 %v6701_v59, %v7447_v19  ;;  %6408 = vmatprep.mubr.msk.bf16.mxu1 %vm6826_vm2, %v6824_v27 }
 0x43a   : > { %v1935_v31 = vpack.c.bf16 %v1919_v54, %v1919_v54  ;;  %6418 = vmatprep.subr.bf16.mxu1 %v6510_v29 }
 0x43b   : > { %v1934_v60 = vpack.c.bf16 %v1918_v34, %v1918_v34  ;;  %v6703_v30 = vpop.eup %6702  ;;  %v6511_v34 = vld [vmem:[%s6959_s24] sm:$0xff]  }
 0x43c   : > { %v1920_v16 = vmul.f32 %v6703_v30, %v7457_v61 }
 0x43d   : > { %6403 = vmatmul.mubr.msk.bf16.vlgmr.msra.gmra.mxu0 %vm910_vm3, %v1934_v60 }
 0x43e   : > { %6413 = vmatpush3.bf16.msra.mxu0 %v2664_v6  ;;  %6414 = vmatprep.mubr.msk.bf16.mxu0 %vm6826_vm2, %v6824_v27  ;;  %v1936_v19 = vpack.c.bf16 %v1920_v16, %v1920_v16 }
 0x440   : > { %6409 = vmatmul.mubr.msk.bf16.vlgmr.msra.gmra.mxu1 %vm910_vm3, %v1935_v31 }
 0x441   : > { %6419 = vmatpush3.bf16.msra.mxu1 %v6510_v29  ;;  %v6721_v29 = vld [vmem:[#allocation2 + $0x10] sm:$0xff] }
 0x442   : > { %6420 = vmatprep.subr.bf16.mxu1 %v6511_v34 }
 0x445   : > { %6415 = vmatmul.mubr.msk.bf16.vlgmr.msra.gmra.mxu0 %vm910_vm3, %v1936_v19  ;;  %6421 = vmatpush3.bf16.msra.mxu1 %v6511_v34 }
 0x44e   : > { %v7558_v44 = vpop.f32.mrf.mxu1 }
 0x450   : > { %v6326_v43 = vpop.f32.mrf.mxu1 }
 0x452   : > { %v1983_v50 = vpop.f32.mrf.mxu1 }
 0x454   : > { %v6327_v47 = vpop.f32.mrf.mxu1 }
 0x46f   : > { %v7560_v42 = vpop.f32.mrf.mxu0 }
 0x471   : > { %v6332_v55 = vpop.f32.mrf.mxu0 }
 0x473   : > { %v2031_v35 = vpop.f32.mrf.mxu0 }
 0x475   : > { %v6333_v56 = vpop.f32.mrf.mxu0 }
 0x477   : > { %v7562_v41 = vpop.f32.mrf.mxu0 }
 0x479   : > { %v6344_v27 = vpop.f32.mrf.mxu0 }
 0x47b   : > { %v2127_v28 = vpop.f32.mrf.mxu0 }
 0x47d   : > { %v6345_v61 = vpop.f32.mrf.mxu0 }
 0x487   : > { %v7564_v53 = vpop.f32.mrf.mxu1 }
 0x489   : > { %v6338_v63 = vpop.f32.mrf.mxu1 }
 0x48b   : > { %v2079_v45 = vpop.f32.mrf.mxu1 }
 0x48d   : > { %v6339_v24 = vpop.f32.mrf.mxu1 }
 0x4ab   : > { %v2172_v0 = vpop.f32.mrf.mxu1 }
 0x4ad   : > { %v6350_v36 = vpop.f32.mrf.mxu1 }
 0x4af   : > { %v2175_v48 = vpop.f32.mrf.mxu1  ;;  %v2220_v22 = vpop.f32.mrf.mxu0 }
 0x4b0   : > { %v6478_v1 = vpack.i.bf16 %v2220_v22, %v2172_v0 }
 0x4b1   : > { %v6351_v3 = vpop.f32.mrf.mxu1  ;;  %v6356_v5 = vpop.f32.mrf.mxu0 }
 0x4b2   : > { %6479 = vrot.lane.b32.xlu0 %v6478_v1, %s6829_s30 }
 0x4b3   : > { %v2223_v4 = vpop.f32.mrf.mxu0  ;;  %v2268_v25 = vpop.f32.mrf.mxu1 }
 0x4b5   : > { %v6357_v7 = vpop.f32.mrf.mxu0  ;;  %v6362_v9 = vpop.f32.mrf.mxu1 }
 0x4b7   : > { %v2271_v39 = vpop.f32.mrf.mxu1  ;;  %v2316_v38 = vpop.f32.mrf.mxu0 }
 0x4b8   : > { %v6483_v10 = vpack.i.bf16 %v2316_v38, %v2268_v25 }
 0x4b9   : > { %v6363_v49 = vpop.f32.mrf.mxu1  ;;  %v6368_v26 = vpop.f32.mrf.mxu0 }
 0x4ba   : > { %6484 = vrot.lane.b32.xlu1 %v6483_v10, %s6829_s30 }
 0x4bb   : > { %v2319_v37 = vpop.f32.mrf.mxu0  ;;  %v2364_v11 = vpop.f32.mrf.mxu1 }
 0x4bd   : > { %v6369_v46 = vpop.f32.mrf.mxu0  ;;  %v6374_v62 = vpop.f32.mrf.mxu1 }
 0x4bf   : > { %v2367_v12 = vpop.f32.mrf.mxu1  ;;  %v2412_v51 = vpop.f32.mrf.mxu0 }
 0x4c0   : > { %v6488_v33 = vpack.i.bf16 %v2412_v51, %v2364_v11 }
 0x4c1   : > { %v6375_v13 = vpop.f32.mrf.mxu1  ;;  %v6380_v15 = vpop.f32.mrf.mxu0 }
 0x4c2   : > { %6489 = vrot.lane.b32.xlu0 %v6488_v33, %s6830_s3 }
 0x4c3   : > { %v2415_v17 = vpop.f32.mrf.mxu0  ;;  %v2460_v52 = vpop.f32.mrf.mxu1 }
 0x4c5   : > { %v6381_v18 = vpop.f32.mrf.mxu0  ;;  %v6386_v2 = vpop.f32.mrf.mxu1 }
 0x4c7   : > { %v2463_v58 = vpop.f32.mrf.mxu1  ;;  %v2508_v21 = vpop.f32.mrf.mxu0 }
 0x4c8   : > { %v6493_v8 = vpack.i.bf16 %v2508_v21, %v2460_v52  ;;  %v6720_v21 = vld [vmem:[#allocation2] sm:$0xff] }
 0x4c9   : > { %v6387_v23 = vpop.f32.mrf.mxu1  ;;  %v6392_v14 = vpop.f32.mrf.mxu0 }
 0x4ca   : > { %6494 = vrot.lane.b32.xlu1 %v6493_v8, %s6830_s3 }
 0x4cb   : > { %v2511_v40 = vpop.f32.mrf.mxu0 }
 0x4cd   : > { %v6393_v20 = vpop.f32.mrf.mxu0 }
 0x4f8   : > { %v2556_v59 = vpop.f32.mrf.mxu1 }
 0x4fa   : > { %v6398_v32 = vpop.f32.mrf.mxu1 }
 0x4fb   : > { %v6722_v32 = vld [vmem:[#allocation2 + $0x8] sm:$0xff] }
 0x4fc   : > { %v2559_v57 = vpop.f32.mrf.mxu1 }
 0x4fd   : > { %v2604_v54 = vpop.f32.mrf.mxu0 }
 0x4fe   : > { %v6498_v60 = vpack.i.bf16 %v2604_v54, %v2556_v59  ;;  %v6399_v30 = vpop.f32.mrf.mxu1 }
 0x4ff   : > { %v6404_v6 = vpop.f32.mrf.mxu0 }
 0x500   : > { %6499 = vrot.lane.b32.xlu0 %v6498_v60, %s6831_s5  ;;  %v2652_v31 = vpop.f32.mrf.mxu1  ;;  %v6723_v60 = vld [vmem:[#allocation2 + $0x18] sm:$0xff] }
 0x501   : > { %v2607_v16 = vpop.f32.mrf.mxu0 }
 0x502   : > { %v6410_v19 = vpop.f32.mrf.mxu1 }
 0x503   : > { %v6405_v43 = vpop.f32.mrf.mxu0 }
 0x504   : > { %v2655_v50 = vpop.f32.mrf.mxu1 }
 0x505   : > { %v2700_v47 = vpop.f32.mrf.mxu0 }
 0x506   : > { %v6503_v55 = vpack.i.bf16 %v2700_v47, %v2652_v31  ;;  %v6411_v35 = vpop.f32.mrf.mxu1 }
 0x507   : > { %v6416_v56 = vpop.f32.mrf.mxu0 }
 0x508   : > { %6504 = vrot.lane.b32.xlu1 %v6503_v55, %s6831_s5 }
 0x509   : > { %v2703_v27 = vpop.f32.mrf.mxu0 }
 0x50b   : > { %v6417_v28 = vpop.f32.mrf.mxu0 }
 0x524   : > { %v6480_v61 = vpop.permute.xlu0 %6479 }
 0x525   : > { %v6482_v45 = vunpack.i.h.bf16 %v6480_v61  ;;  %v6481_v24 = vunpack.i.l.bf16 %v6480_v61 }
 0x527   : > { %v2755_v1 = vsel %vm910_vm3, %v7560_v42, %v6482_v45  ;;  %v2754_v3 = vsel %vm910_vm3, %v7558_v44, %v6481_v24 }
 0x52c   : > { %v6485_v48 = vpop.permute.xlu1 %6484 }
 0x52d   : > { %v6487_v49 = vunpack.i.h.bf16 %v6485_v48  ;;  %v6486_v26 = vunpack.i.l.bf16 %v6485_v48 }
 0x52f   : > { %v2757_v11 = vsel %vm910_vm3, %v7562_v41, %v6487_v49  ;;  %v2756_v46 = vsel %vm910_vm3, %v7564_v53, %v6486_v26  ;;  %v5712_v41 = vld [vmem:[%s8203_s8] ss:$0 sm:$0xff]  ;;  %v2930_v26 = vld [vmem:[%s6969_s1 + $0x8] sm:$0xff] }
 0x530   : > { %v2937_v49 = vld [vmem:[%s6969_s1 + $0x40] sm:$0xff] }
 0x534   : > { %v6490_v63 = vpop.permute.xlu0 %6489 }
 0x535   : > { %v6492_v0 = vunpack.i.h.bf16 %v6490_v63  ;;  %v6491_v36 = vunpack.i.l.bf16 %v6490_v63 }
 0x537   : > { %v2759_v25 = vsel %vm2758_vm5, %v2754_v3, %v6491_v36  ;;  %v2760_v7 = vsel %vm2758_vm5, %v2755_v1, %v6492_v0  ;;  %v2945_v3 = vld [vmem:[%s6969_s1 + $0x80] sm:$0xff] }
 0x53c   : > { %v6495_v9 = vpop.permute.xlu1 %6494 }
 0x53d   : > { %v6497_v37 = vunpack.i.h.bf16 %v6495_v9  ;;  %v6496_v42 = vunpack.i.l.bf16 %v6495_v9 }
 0x53f   : > { %v2762_v51 = vsel %vm2758_vm5, %v2757_v11, %v6497_v37  ;;  %v2761_v33 = vsel %vm2758_vm5, %v2756_v46, %v6496_v42  ;;  %v2938_v42 = vld [vmem:[%s6969_s1 + $0x48] sm:$0xff] }
 0x540   : > { %v5721_v11 = vcombine.low %v2930_v26, %v2938_v42  ;;  %v5722_v46 = vcombine.high %v2930_v26, %v2938_v42  ;;  %v2942_v26 = vld [vmem:[%s6969_s1 + $0x68] sm:$0xff] }
 0x572   : > { %v6500_v22 = vpop.permute.xlu0 %6499 }
 0x573   : > { %v6502_v5 = vunpack.i.h.bf16 %v6500_v22  ;;  %v6501_v4 = vunpack.i.l.bf16 %v6500_v22 }
 0x575   : > { %v2764_v39 = vsel %vm2763_vm6, %v2759_v25, %v6501_v4  ;;  %v2765_v38 = vsel %vm2763_vm6, %v2760_v7, %v6502_v5  ;;  %v2953_v5 = vld [vmem:[%s6969_s1 + $0xc0] sm:$0xff]  ;;  %v2946_v4 = vld [vmem:[%s6969_s1 + $0x88] sm:$0xff] }
 0x576   : > { %v2768_v10 = vpack.c.bf16 %v2765_v38, %v2764_v39  ;;  %v5736_v25 = vcombine.high %v2945_v3, %v2953_v5  ;;  %v2954_v7 = vld [vmem:[%s6969_s1 + $0xc8] sm:$0xff]  ;;  %v5735_v9 = vcombine.low %v2945_v3, %v2953_v5 }
 0x577   : > { %v5737_v39 = vcombine.low %v2946_v4, %v2954_v7  ;;  %v5738_v38 = vcombine.high %v2946_v4, %v2954_v7 }
 0x578   : > { %6422 = vmatprep.mubr.msk.bf16.mxu1 %vm816_vm1, %v2768_v10  ;;  %3223 = vmatprep.subr.bf16.mxu0 %v5736_v25  ;;  %v2929_v10 = vld [vmem:[%s6969_s1] sm:$0xff] }
 0x579   : > { %3276 = vmatprep.subr.bf16.mxu1 %v5738_v38  ;;  %3224 = vmatpush1.bf16.msra.mxu0 %v5735_v9  ;;  %v5720_v37 = vcombine.high %v2929_v10, %v2937_v49  ;;  %v2933_v38 = vld [vmem:[%s6969_s1 + $0x20] sm:$0xff] }
 0x57a   : > { %v6505_v44 = vpop.permute.xlu1 %6504 }
 0x57b   : > { %v6507_v62 = vunpack.i.h.bf16 %v6505_v44  ;;  %v6506_v12 = vunpack.i.l.bf16 %v6505_v44  ;;  %v5719_v44 = vcombine.low %v2929_v10, %v2937_v49  ;;  %3225 = vmatprep.subr.bf16.mxu0 %v5720_v37  ;;  %v2941_v10 = vld [vmem:[%s6969_s1 + $0x60] sm:$0xff]  ;;  %v2934_v49 = vld [vmem:[%s6969_s1 + $0x28] sm:$0xff] }
 0x57d   : > { %v2767_v13 = vsel %vm2763_vm6, %v2762_v51, %v6507_v62  ;;  %v2766_v15 = vsel %vm2763_vm6, %v2761_v33, %v6506_v12  ;;  %3226 = vmatpush1.bf16.msra.mxu0 %v5719_v44  ;;  %v6832_v62 = vmov 0   ;;  %v2947_v12 = vld [vmem:[%s6969_s1 + $0x90] sm:$0xff]  ;;  %v2948_v33 = vld [vmem:[%s6969_s1 + $0x98] sm:$0xff]  ;;  %v5728_v44 = vcombine.high %v2933_v38, %v2941_v10 }
 0x57e   : > { %v2769_v17 = vpack.c.bf16 %v2767_v13, %v2766_v15  ;;  %3243 = vmatprep.mubr.bf16.mxu0 %v6832_v62  ;;  %v2955_v51 = vld [vmem:[%s6969_s1 + $0xd0] sm:$0xff]  ;;  %v2956_v15 = vld [vmem:[%s6969_s1 + $0xd8] sm:$0xff] }
 0x57f   : > { %v5740_v13 = vcombine.high %v2947_v12, %v2955_v51 }
 0x580   : > { %6423 = vmatmul.mubr.msk.bf16.vlgmr.msra.gmra.mxu1 %vm816_vm1, %v2769_v17  ;;  %v5739_v17 = vcombine.low %v2947_v12, %v2955_v51  ;;  %v2959_v12 = vld [vmem:[%s6969_s1 + $0xf0] sm:$0xff]  ;;  %v2952_v51 = vld [vmem:[%s6969_s1 + $0xb8] sm:$0xff] }
 0x581   : > { %3277 = vmatpush1.bf16.msra.mxu1 %v5737_v39  ;;  %3296 = vmatprep.mubr.bf16.mxu1 %v6832_v62 }
 0x582   : > { %3278 = vmatprep.subr.bf16.mxu1 %v5722_v46  ;;  %3329 = vmatprep.subr.bf16.mxu0 %v5740_v13  ;;  %v2951_v46 = vld [vmem:[%s6969_s1 + $0xb0] sm:$0xff]  ;;  %v5727_v13 = vcombine.low %v2933_v38, %v2941_v10  ;;  %v2965_v38 = vlaneseq }
 0x584   : > { %v7763_v10 = vshrl.u32 %v2965_v38, 7 }
 0x585   : > { %3279 = vmatpush1.bf16.msra.mxu1 %v5721_v11  ;;  %v5730_v11 = vcombine.high %v2934_v49, %v2942_v26 }
 0x640   : > { %v6424_v52 = vpop.f32.mrf.mxu1 }
 0x641   : > { %v2842_v18 = vadd.f32 %v6424_v52, %v5712_v41  ;;  %v5741_v52 = vcombine.low %v2948_v33, %v2956_v15 }
 0x642   : > { %v2833_v53 = vpop.f32.mrf.mxu1 }
 0x643   : > { %v2834_v2 = vadd.f32 %v5712_v41, %v2833_v53  ;;  %v2850_v59 = vadd.f32 %v6721_v29, %v2842_v18 }
 0x644   : > { %v6425_v58 = vpop.f32.mrf.mxu1 }
 0x645   : > { %v2848_v8 = vadd.f32 %v6720_v21, %v2834_v2  ;;  %v2845_v14 = vadd.f32 %v6425_v58, %v5712_v41  ;;  %v2860_v54 = vsel %vm816_vm1, %v2850_v59, 0.0 }
 0x646   : > { %v2836_v23 = vpop.f32.mrf.mxu1 }
 0x647   : > { %v2837_v40 = vadd.f32 %v5712_v41, %v2836_v23  ;;  %v2854_v20 = vsel %vm816_vm1, %v2848_v8, 0.0  ;;  %v2851_v30 = vadd.f32 %v6723_v60, %v2845_v14  ;;  %v5742_v41 = vcombine.high %v2948_v33, %v2956_v15  ;;  %v2960_v33 = vld [vmem:[%s6969_s1 + $0xf8] sm:$0xff] }
 0x648   : > { %2855 = vadd.xlane.f32.xlu0 %v2854_v20  ;;  %v5729_v15 = vcombine.low %v2934_v49, %v2942_v26  ;;  %v2971_v49 = vsub.s32 1, %v7763_v10  ;;  %v2979_v26 = vsub.s32 3, %v7763_v10 }
 0x649   : > { %v2849_v34 = vadd.f32 %v6722_v32, %v2837_v40  ;;  %v2863_v6 = vsel %vm816_vm1, %v2851_v30, 0.0  ;;  %3382 = vmatprep.subr.bf16.mxu1 %v5742_v41  ;;  %v2935_v41 = vld [vmem:[%s6969_s1 + $0x30] sm:$0xff] }
 0x64b   : > { %v2857_v57 = vsel %vm816_vm1, %v2849_v34, 0.0 }
 0x64c   : > { %2858 = vadd.xlane.f32.xlu1 %v2857_v57  ;;  %2861 = vadd.xlane.f32.xlu0 %v2860_v54  ;;  %v5717_v57 = vld [vmem:[%s757_s2] ss:$0 sm:$0xff] }
 0x650   : > { %2864 = vadd.xlane.f32.xlu0 %v2863_v6 }
 0x6d1   : > { %v2856_v31 = vpop.xlane.xlu0 %2855 }
 0x6d2   : > { %v2867_v16 = vmul.f32 0.03125, %v2856_v31  ;;  %v5718_v31 = vld [vmem:[%s760_s28] ss:$0 sm:$0xff] }
 0x6d4   : > { %v7599_v19 = vsub.f32 %v2848_v8, %v2867_v16 }
 0x6d5   : > { %v2859_v43 = vpop.xlane.xlu1 %2858  ;;  %v2862_v50 = vpop.xlane.xlu0 %2861 }
 0x6d6   : > { %v2868_v47 = vmul.f32 0.03125, %v2859_v43  ;;  %v2869_v55 = vmul.f32 0.03125, %v2862_v50  ;;  %v2875_v35 = vmul.f32 %v7599_v19, %v7599_v19  ;;  %v2931_v50 = vld [vmem:[%s6969_s1 + $0x10] sm:$0xff] }
 0x6d8   : > { %v7603_v56 = vsub.f32 %v2849_v34, %v2868_v47  ;;  %v7605_v27 = vsub.f32 %v2850_v59, %v2869_v55  ;;  %v2879_v28 = vsel %vm816_vm1, %v2875_v35, 0.0 }
 0x6d9   : > { %2880 = vadd.xlane.f32.xlu1 %v2879_v28  ;;  %v2865_v61 = vpop.xlane.xlu0 %2864  ;;  %v2932_v28 = vld [vmem:[%s6969_s1 + $0x18] sm:$0xff] }
 0x6da   : > { %v2870_v63 = vmul.f32 0.03125, %v2865_v61  ;;  %v2876_v45 = vmul.f32 %v7603_v56, %v7603_v56  ;;  %v2877_v24 = vmul.f32 %v7605_v27, %v7605_v27  ;;  %v2940_v61 = vld [vmem:[%s6969_s1 + $0x58] sm:$0xff] }
 0x6db   : > { %v5725_v4 = vcombine.low %v2932_v28, %v2940_v61 }
 0x6dc   : > { %v7612_v0 = vsub.f32 %v2851_v30, %v2870_v63  ;;  %v2882_v36 = vsel %vm816_vm1, %v2876_v45, 0.0  ;;  %v2885_v48 = vsel %vm816_vm1, %v2877_v24, 0.0 }
 0x6dd   : > { %2883 = vadd.xlane.f32.xlu0 %v2882_v36  ;;  %2886 = vadd.xlane.f32.xlu1 %v2885_v48  ;;  %v2949_v36 = vld [vmem:[%s6969_s1 + $0xa0] sm:$0xff] }
 0x6de   : > { %v2878_v22 = vmul.f32 %v7612_v0, %v7612_v0 }
 0x6e0   : > { %v2888_v1 = vsel %vm816_vm1, %v2878_v22, 0.0  ;;  %v2950_v22 = vld [vmem:[%s6969_s1 + $0xa8] sm:$0xff] }
 0x6e1   : > { %2889 = vadd.xlane.f32.xlu0 %v2888_v1  ;;  %v2958_v1 = vld [vmem:[%s6969_s1 + $0xe8] sm:$0xff] }
 0x6e2   : > { %v5746_v7 = vcombine.high %v2950_v22, %v2958_v1  ;;  %v5745_v42 = vcombine.low %v2950_v22, %v2958_v1  ;;  %v6539_v22 = vld [vmem:[%s6984_s22 + $0x88] sm:$0xff]   ;;  %v6540_v1 = vld [vmem:[%s6984_s22 + $0x40] sm:$0xff]  }
 0x762   : > { %v2881_v53 = vpop.xlane.xlu1 %2880 }
 0x763   : > { %v2891_v18 = vmul.f32 0.03125, %v2881_v53  ;;  %v2943_v53 = vld [vmem:[%s6969_s1 + $0x70] sm:$0xff] }
 0x765   : > { %v2895_v2 = vadd.f32 1e-05, %v2891_v18  ;;  %v2936_v18 = vld [vmem:[%s6969_s1 + $0x38] sm:$0xff] }
 0x766   : > { %v2887_v58 = vpop.xlane.xlu1 %2886  ;;  %v2884_v21 = vpop.xlane.xlu0 %2883 }
 0x767   : > { %6704 = vrsqrt.f32 %v2895_v2  ;;  %v2893_v8 = vmul.f32 0.03125, %v2887_v58  ;;  %v2892_v23 = vmul.f32 0.03125, %v2884_v21  ;;  %v2944_v2 = vld [vmem:[%s6969_s1 + $0x78] sm:$0xff]  ;;  %v5747_v58 = vcombine.low %v2951_v46, %v2959_v12 }
 0x768   : > { %v5749_v21 = vcombine.low %v2952_v51, %v2960_v33 }
 0x769   : > { %v2896_v14 = vadd.f32 1e-05, %v2892_v23  ;;  %v2897_v40 = vadd.f32 1e-05, %v2893_v8  ;;  %v5732_v8 = vcombine.high %v2935_v41, %v2943_v53  ;;  %v5734_v23 = vcombine.high %v2936_v18, %v2944_v2 }
 0x76a   : > { %v2890_v20 = vpop.xlane.xlu0 %2889 }
 0x76b   : > { %v2894_v29 = vmul.f32 0.03125, %v2890_v20  ;;  %6706 = vrsqrt.f32 %v2896_v14  ;;  %v5731_v14 = vcombine.low %v2935_v41, %v2943_v53  ;;  %v6512_v20 = vld [vmem:[%s6984_s22 + $0x78] sm:$0xff]  }
 0x76c   : > { %6708 = vrsqrt.f32 %v2897_v40  ;;  %v5733_v40 = vcombine.low %v2936_v18, %v2944_v2 }
 0x76d   : > { %v2898_v59 = vadd.f32 1e-05, %v2894_v29  ;;  %v6513_v29 = vld [vmem:[%s6984_s22 + $0xf8] sm:$0xff]  }
 0x76f   : > { %6710 = vrsqrt.f32 %v2898_v59  ;;  %v6514_v59 = vld [vmem:[%s6984_s22 + $0x38] sm:$0xff]  }
 0x774   : > { %v6705_v32 = vpop.eup %6704 }
 0x775   : > { %v2903_v34 = vmul.f32 %v6705_v32, %v7599_v19  ;;  %v6515_v32 = vld [vmem:[%s6984_s22 + $0xb8] sm:$0xff]  }
 0x777   : > { %v2913_v60 = vmul.f32 %v5717_v57, %v2903_v34  ;;  %v6516_v34 = vld [vmem:[%s6984_s22 + $0x70] sm:$0xff]  }
 0x778   : > { %v6707_v54 = vpop.eup %6706 }
 0x779   : > { %v2904_v30 = vmul.f32 %v6707_v54, %v7603_v56  ;;  %v6709_v6 = vpop.eup %6708  ;;  %v7647_v47 = vadd.f32 %v5718_v31, %v2913_v60  ;;  %v2939_v56 = vld [vmem:[%s6969_s1 + $0x50] sm:$0xff] }
 0x77a   : > { %v2905_v55 = vmul.f32 %v6709_v6, %v7605_v27  ;;  %v5724_v24 = vcombine.high %v2931_v50, %v2939_v56  ;;  %v2957_v27 = vld [vmem:[%s6969_s1 + $0xe0] sm:$0xff]  ;;  %v5723_v5 = vcombine.low %v2931_v50, %v2939_v56  ;;  %v6518_v54 = vld [vmem:[%s6984_s22 + $0x30] sm:$0xff]   ;;  %v6521_v6 = vld [vmem:[%s6984_s22 + $0xe8] sm:$0xff]  }
 0x77b   : > { %v2914_v43 = vmul.f32 %v5717_v57, %v2904_v30  ;;  %v5744_v25 = vcombine.high %v2949_v36, %v2957_v27  ;;  %v5743_v37 = vcombine.low %v2949_v36, %v2957_v27  ;;  %v6519_v60 = vld [vmem:[%s6984_s22 + $0xb0] sm:$0xff]   ;;  %v6520_v30 = vld [vmem:[%s6984_s22 + $0x68] sm:$0xff]   ;;  %v6527_v50 = vld [vmem:[%s6984_s22 + $0xa0] sm:$0xff]  }
 0x77c   : > { %v6711_v16 = vpop.eup %6710  ;;  %v2915_v48 = vmul.f32 %v5717_v57, %v2905_v55  ;;  %v6528_v55 = vld [vmem:[%s6984_s22 + $0x58] sm:$0xff]   ;;  %v6536_v36 = vld [vmem:[%s6984_s22 + $0x48] sm:$0xff]  }
 0x77d   : > { %v2906_v19 = vmul.f32 %v6711_v16, %v7612_v0  ;;  %v7650_v35 = vadd.f32 %v5718_v31, %v2914_v43  ;;  %v5726_v0 = vcombine.high %v2932_v28, %v2940_v61  ;;  %v6523_v16 = vld [vmem:[%s6984_s22 + $0xa8] sm:$0xff]   ;;  %v6525_v43 = vld [vmem:[%s6984_s22 + $0xe0] sm:$0xff]   ;;  %v6529_v56 = vld [vmem:[%s6984_s22 + $0xd8] sm:$0xff]  }
 0x77e   : > { %v7671_v9 = vadd.f32 %v5718_v31, %v2915_v48  ;;  %v6530_v28 = vld [vmem:[%s6984_s22 + $0x18] sm:$0xff]   ;;  %v6537_v48 = vld [vmem:[%s6984_s22 + $0xc8] sm:$0xff]  }
 0x77f   : > { %v7657_v63 = vpack.c.bf16 %v7650_v35, %v7647_v47  ;;  %v2916_v45 = vmul.f32 %v5717_v57, %v2906_v19  ;;  %v6517_v57 = vld [vmem:[%s6984_s22 + $0xf0] sm:$0xff]   ;;  %v6526_v19 = vld [vmem:[%s6984_s22 + $0x20] sm:$0xff]   ;;  %v6531_v61 = vld [vmem:[%s6984_s22 + $0x98] sm:$0xff]  }
 0x780   : > { %v6538_v27 = vld [vmem:[%s6984_s22 + $0x8] sm:$0xff]  }
 0x781   : > { %5751 = vmatmul.mubr.msk.bf16.vlgmr.msra.gmra.mxu0 %vm816_vm1, %v7657_v63  ;;  %5753 = vmatmul.mubr.msk.bf16.vlgmr.msra.gmra.mxu1 %vm816_vm1, %v7657_v63  ;;  %v7669_v3 = vadd.f32 %v5718_v31, %v2916_v45  ;;  %v6522_v31 = vld [vmem:[%s6984_s22 + $0x28] sm:$0xff]   ;;  %v6533_v45 = vld [vmem:[%s6984_s22 + $0xd0] sm:$0xff]  }
 0x782   : > { %3253 = vmatprep.mubr.bf16.mxu0 %v6832_v62  ;;  %3306 = vmatprep.mubr.bf16.mxu1 %v6832_v62 }
 0x783   : > { %8204 = vst [vmem:[#allocation12_spill] sm:$0xff] %v7669_v3  ;;  %3330 = vmatpush1.bf16.msra.mxu0 %v5739_v17  ;;  %3383 = vmatpush1.bf16.msra.mxu1 %v5741_v52  ;;  %v7675_v39 = vpack.c.bf16 %v7669_v3, %v7671_v9  ;;  %v5748_v17 = vcombine.high %v2951_v46, %v2959_v12 }
 0x784   : > { %3331 = vmatprep.subr.bf16.mxu0 %v5724_v24  ;;  %3384 = vmatprep.subr.bf16.mxu1 %v5726_v0  ;;  %v5750_v52 = vcombine.high %v2952_v51, %v2960_v33  ;;  %v6534_v24 = vld [vmem:[%s6984_s22 + $0x10] sm:$0xff]  }
 0x785   : > { %v6535_v0 = vld [vmem:[%s6984_s22 + $0x90] sm:$0xff]  }
 0x787   : > { %3332 = vmatpush1.bf16.msra.mxu0 %v5723_v5  ;;  %3385 = vmatpush1.bf16.msra.mxu1 %v5725_v4  ;;  %v6541_v5 = vld [vmem:[%s6984_s22 + $0xc0] sm:$0xff]  }
 0x788   : > { %3435 = vmatprep.subr.bf16.mxu0 %v5744_v25  ;;  %3488 = vmatprep.subr.bf16.mxu1 %v5746_v7  ;;  %v6542_v4 = vld [vmem:[%s6984_s22] sm:$0xff]   ;;  %v6544_v7 = vld [vmem:[%s6984_s22 + $0x178] sm:$0xff]  }
 0x789   : > { %5752 = vmatmul.mubr.msk.bf16.gmra.mxu0 %vm816_vm1, %v7675_v39  ;;  %5754 = vmatmul.mubr.msk.bf16.gmra.mxu1 %vm816_vm1, %v7675_v39  ;;  %v6543_v25 = vld [vmem:[%s6984_s22 + $0x80] sm:$0xff]  }
 0x78a   : > { %3349 = vmatprep.mubr.bf16.mxu0 %v6832_v62  ;;  %3402 = vmatprep.mubr.bf16.mxu1 %v6832_v62 }
 0x791   : > { %5755 = vmatmul.mubr.msk.bf16.vlgmr.msra.gmra.mxu0 %vm816_vm1, %v7657_v63  ;;  %5757 = vmatmul.mubr.msk.bf16.vlgmr.msra.gmra.mxu1 %vm816_vm1, %v7657_v63 }
 0x792   : > { %3359 = vmatprep.mubr.bf16.mxu0 %v6832_v62  ;;  %3412 = vmatprep.mubr.bf16.mxu1 %v6832_v62 }
 0x793   : > { %3436 = vmatpush1.bf16.msra.mxu0 %v5743_v37  ;;  %3489 = vmatpush1.bf16.msra.mxu1 %v5745_v42  ;;  %v2967_v37 = vsub.s32 0, %v7763_v10  ;;  %v2975_v42 = vsub.s32 2, %v7763_v10 }
 0x794   : > { %3437 = vmatprep.subr.bf16.mxu0 %v5728_v44  ;;  %3490 = vmatprep.subr.bf16.mxu1 %v5730_v11  ;;  %v7770_v44 = vld [vmem:[%s6974_s0] sm:$0xff] }
 0x795   : > { %v2972_v12 = vrot.slane %v7770_v44, %v2971_v49  ;;  %v2980_v51 = vrot.slane %v7770_v44, %v2979_v26  ;;  %v2968_v33 = vrot.slane %v7770_v44, %v2967_v37 }
 0x797   : > { %3438 = vmatpush1.bf16.msra.mxu0 %v5727_v13  ;;  %3491 = vmatpush1.bf16.msra.mxu1 %v5729_v15  ;;  %v2976_v13 = vrot.slane %v7770_v44, %v2975_v42 }
 0x798   : > { %3541 = vmatprep.subr.bf16.mxu0 %v5748_v17  ;;  %3594 = vmatprep.subr.bf16.mxu1 %v5750_v52 }
 0x799   : > { %5756 = vmatmul.mubr.msk.bf16.gmra.mxu0 %vm816_vm1, %v7675_v39  ;;  %5758 = vmatmul.mubr.msk.bf16.gmra.mxu1 %vm816_vm1, %v7675_v39 }
 0x79a   : > { %3455 = vmatprep.mubr.bf16.mxu0 %v6832_v62  ;;  %3508 = vmatprep.mubr.bf16.mxu1 %v6832_v62 }
 0x7a1   : > { %5759 = vmatmul.mubr.msk.bf16.vlgmr.msra.gmra.mxu0 %vm816_vm1, %v7657_v63  ;;  %5761 = vmatmul.mubr.msk.bf16.vlgmr.msra.gmra.mxu1 %vm816_vm1, %v7657_v63 }
 0x7a2   : > { %3465 = vmatprep.mubr.bf16.mxu0 %v6832_v62  ;;  %3518 = vmatprep.mubr.bf16.mxu1 %v6832_v62 }
 0x7a3   : > { %3542 = vmatpush1.bf16.msra.mxu0 %v5747_v58  ;;  %3595 = vmatpush1.bf16.msra.mxu1 %v5749_v21 }
 0x7a4   : > { %3543 = vmatprep.subr.bf16.mxu0 %v5732_v8  ;;  %3596 = vmatprep.subr.bf16.mxu1 %v5734_v23 }
 0x7a7   : > { %3544 = vmatpush1.bf16.msra.mxu0 %v5731_v14  ;;  %3597 = vmatpush1.bf16.msra.mxu1 %v5733_v40 }
 0x7a8   : > { %5994 = vmatprep.subr.bf16.mxu0 %v6512_v20  ;;  %6022 = vmatprep.subr.bf16.mxu1 %v6513_v29 }
 0x7a9   : > { %5760 = vmatmul.mubr.msk.bf16.gmra.mxu0 %vm816_vm1, %v7675_v39  ;;  %5762 = vmatmul.mubr.msk.bf16.gmra.mxu1 %vm816_vm1, %v7675_v39 }
 0x7aa   : > { %3561 = vmatprep.mubr.bf16.mxu0 %v6832_v62  ;;  %3614 = vmatprep.mubr.bf16.mxu1 %v6832_v62 }
 0x7b1   : > { %5763 = vmatmul.mubr.msk.bf16.vlgmr.msra.gmra.mxu0 %vm816_vm1, %v7657_v63  ;;  %5765 = vmatmul.mubr.msk.bf16.vlgmr.msra.gmra.mxu1 %vm816_vm1, %v7657_v63  ;;  %v6532_v63 = vld [vmem:[%s6984_s22 + $0x50] sm:$0xff]  }
 0x7b2   : > { %3571 = vmatprep.mubr.bf16.mxu0 %v6832_v62  ;;  %3624 = vmatprep.mubr.bf16.mxu1 %v6832_v62  ;;  %v6524_v62 = vld [vmem:[%s6984_s22 + $0x60] sm:$0xff]  }
 0x7b3   : > { %5995 = vmatpush3.bf16.msra.mxu0 %v6514_v59  ;;  %6023 = vmatpush3.bf16.msra.mxu1 %v6515_v32 }
 0x7b4   : > { %5996 = vmatprep.subr.bf16.mxu0 %v6516_v34  ;;  %6024 = vmatprep.subr.bf16.mxu1 %v6517_v57 }
 0x7b7   : > { %5997 = vmatpush3.bf16.msra.mxu0 %v6518_v54  ;;  %6025 = vmatpush3.bf16.msra.mxu1 %v6519_v60 }
 0x7b8   : > { %5998 = vmatprep.subr.bf16.mxu0 %v6520_v30  ;;  %6026 = vmatprep.subr.bf16.mxu1 %v6521_v6 }
 0x7b9   : > { %5764 = vmatmul.mubr.msk.bf16.gmra.mxu0 %vm816_vm1, %v7675_v39  ;;  %5766 = vmatmul.mubr.msk.bf16.gmra.mxu1 %vm816_vm1, %v7675_v39  ;;  %v6545_v39 = vld [vmem:[%s6984_s22 + $0x1f8] sm:$0xff]  }
 0x7bb   : > { %5999 = vmatpush3.bf16.msra.mxu0 %v6522_v31  ;;  %6027 = vmatpush3.bf16.msra.mxu1 %v6523_v16 }
 0x7bc   : > { %6000 = vmatprep.subr.bf16.mxu0 %v6524_v62  ;;  %6028 = vmatprep.subr.bf16.mxu1 %v6525_v43 }
 0x7bf   : > { %6001 = vmatpush3.bf16.msra.mxu0 %v6526_v19  ;;  %6029 = vmatpush3.bf16.msra.mxu1 %v6527_v50  ;;  %v6546_v50 = vld [vmem:[%s6984_s22 + $0x138] sm:$0xff]  }
 0x7c0   : > { %6002 = vmatprep.subr.bf16.mxu0 %v6528_v55  ;;  %6030 = vmatprep.subr.bf16.mxu1 %v6529_v56  ;;  %v6547_v55 = vld [vmem:[%s6984_s22 + $0x1b8] sm:$0xff]   ;;  %v2987_v56 = vsub.s32 5, %v7763_v10 }
 0x7c3   : > { %6003 = vmatpush3.bf16.msra.mxu0 %v6530_v28  ;;  %6031 = vmatpush3.bf16.msra.mxu1 %v6531_v61 }
 0x7c4   : > { %6004 = vmatprep.subr.bf16.mxu0 %v6532_v63  ;;  %6032 = vmatprep.subr.bf16.mxu1 %v6533_v45 }
 0x7c7   : > { %6005 = vmatpush3.bf16.msra.mxu0 %v6534_v24  ;;  %6033 = vmatpush3.bf16.msra.mxu1 %v6535_v0  ;;  %v6548_v0 = vld [vmem:[%s6984_s22 + $0x170] sm:$0xff]  }
 0x7c8   : > { %6006 = vmatprep.subr.bf16.mxu0 %v6536_v36  ;;  %6034 = vmatprep.subr.bf16.mxu1 %v6537_v48  ;;  %v6549_v36 = vld [vmem:[%s6984_s22 + $0x1f0] sm:$0xff]   ;;  %v2995_v48 = vsub.s32 7, %v7763_v10 }
 0x7cb   : > { %6007 = vmatpush3.bf16.msra.mxu0 %v6538_v27  ;;  %6035 = vmatpush3.bf16.msra.mxu1 %v6539_v22 }
 0x7cc   : > { %6008 = vmatprep.subr.bf16.mxu0 %v6540_v1  ;;  %6036 = vmatprep.subr.bf16.mxu1 %v6541_v5 }
 0x7cf   : > { %6009 = vmatpush3.bf16.msra.mxu0 %v6542_v4  ;;  %6037 = vmatpush3.bf16.msra.mxu1 %v6543_v25 }
 0x7d0   : > { %6050 = vmatprep.subr.bf16.mxu0 %v6544_v7  ;;  %6078 = vmatprep.subr.bf16.mxu1 %v6545_v39 }
 0x841   : > { %v3245_v11 = vpop.f32.mrf.mxu0  ;;  %v3298_v46 = vpop.f32.mrf.mxu1 }
 0x842   : > { %v3246_v21 = vadd.f32 %v3245_v11, %v2968_v33  ;;  %v3299_v8 = vadd.f32 %v3298_v46, %v2976_v13  ;;  %v6550_v11 = vld [vmem:[%s6984_s22 + $0x130] sm:$0xff]  }
 0x843   : > { %v3247_v15 = vpop.f32.mrf.mxu0  ;;  %v3300_v17 = vpop.f32.mrf.mxu1 }
 0x844   : > { %v3248_v53 = vadd.f32 %v3247_v15, %v2972_v12  ;;  %v3301_v18 = vadd.f32 %v3300_v17, %v2980_v51  ;;  %v3635_v6 = vmax.f32 %v3246_v21, 0.0  ;;  %v3637_v31 = vmax.f32 %v3299_v8, 0.0 }
 0x845   : > { %v3249_v52 = vpop.f32.mrf.mxu0  ;;  %v3302_v41 = vpop.f32.mrf.mxu1 }
 0x846   : > { %v3250_v2 = vadd.f32 %v3249_v52, %v2968_v33  ;;  %v3303_v58 = vadd.f32 %v3302_v41, %v2976_v13  ;;  %v3636_v57 = vmax.f32 %v3248_v53, 0.0  ;;  %v3638_v54 = vmax.f32 %v3301_v18, 0.0 }
 0x847   : > { %v3251_v23 = vpop.f32.mrf.mxu0  ;;  %v3304_v14 = vpop.f32.mrf.mxu1 }
 0x848   : > { %v3252_v40 = vadd.f32 %v3251_v23, %v2972_v12  ;;  %v3305_v20 = vadd.f32 %v3304_v14, %v2980_v51  ;;  %v3651_v29 = vmax.f32 %v3250_v2, 0.0  ;;  %v3653_v59 = vmax.f32 %v3303_v58, 0.0  ;;  %v6553_v23 = vld [vmem:[%s6984_s22 + $0x1e8] sm:$0xff]  }
 0x849   : > { %v3255_v32 = vpop.f32.mrf.mxu0  ;;  %v3308_v34 = vpop.f32.mrf.mxu1 }
 0x84a   : > { %v3652_v60 = vmax.f32 %v3252_v40, 0.0  ;;  %v3654_v30 = vmax.f32 %v3305_v20, 0.0  ;;  %v3699_v28 = vpack.c.bf16 %v3651_v29, %v3635_v6  ;;  %v3701_v61 = vpack.c.bf16 %v3653_v59, %v3637_v31  ;;  %v6554_v29 = vld [vmem:[%s6984_s22 + $0x128] sm:$0xff]   ;;  %v6557_v31 = vld [vmem:[%s6984_s22 + $0x1e0] sm:$0xff]  }
 0x84b   : > { %v3257_v16 = vpop.f32.mrf.mxu0  ;;  %v3310_v62 = vpop.f32.mrf.mxu1  ;;  %v3256_v5 = vadd.f32 %v3255_v32, %v2968_v33  ;;  %v3309_v7 = vadd.f32 %v3308_v34, %v2976_v13 }
 0x84c   : > { %v3700_v43 = vpack.c.bf16 %v3652_v60, %v3636_v57  ;;  %v3702_v19 = vpack.c.bf16 %v3654_v30, %v3638_v54  ;;  %v3258_v63 = vadd.f32 %v3257_v16, %v2972_v12  ;;  %v3311_v27 = vadd.f32 %v3310_v62, %v2980_v51  ;;  %v6555_v57 = vld [vmem:[%s6984_s22 + $0x1a8] sm:$0xff]   ;;  %v6556_v54 = vld [vmem:[%s6984_s22 + $0x160] sm:$0xff]  }
 0x84d   : > { %v3259_v45 = vpop.f32.mrf.mxu0  ;;  %v3312_v24 = vpop.f32.mrf.mxu1  ;;  %v3667_v58 = vmax.f32 %v3256_v5, 0.0  ;;  %v3669_v14 = vmax.f32 %v3309_v7, 0.0 }
 0x84e   : > { %v3260_v22 = vadd.f32 %v3259_v45, %v2968_v33  ;;  %v3313_v1 = vadd.f32 %v3312_v24, %v2976_v13  ;;  %4794 = vmatprep.mubr.bf16.mxu0 %v3700_v43  ;;  %4843 = vmatprep.mubr.bf16.mxu1 %v3702_v19  ;;  %v3668_v46 = vmax.f32 %v3258_v63, 0.0  ;;  %v7798_v33 = vrot.slane %v7770_v44, %v2987_v56  ;;  %v6552_v13 = vld [vmem:[%s6984_s22 + $0x168] sm:$0xff]   ;;  %v6560_v63 = vld [vmem:[%s6984_s22 + $0x158] sm:$0xff]  }
 0x84f   : > { %v3261_v4 = vpop.f32.mrf.mxu0  ;;  %v3314_v25 = vpop.f32.mrf.mxu1  ;;  %4795 = vmatmul.mubr.bf16.vlgmr.msra.gmra.mxu0 %v3699_v28  ;;  %4844 = vmatmul.mubr.bf16.vlgmr.msra.gmra.mxu1 %v3701_v61  ;;  %v3670_v41 = vmax.f32 %v3311_v27, 0.0  ;;  %v6559_v61 = vld [vmem:[%s6984_s22 + $0x1a0] sm:$0xff]   ;;  %v6561_v27 = vld [vmem:[%s6984_s22 + $0x1d8] sm:$0xff]  }
 0x850   : > { %v3262_v39 = vadd.f32 %v3261_v4, %v2972_v12  ;;  %v3315_v38 = vadd.f32 %v3314_v25, %v2980_v51  ;;  %6051 = vmatpush3.bf16.msra.mxu0 %v6546_v50  ;;  %6079 = vmatpush3.bf16.msra.mxu1 %v6547_v55  ;;  %v3683_v15 = vmax.f32 %v3260_v22, 0.0  ;;  %v7803_v12 = vrot.slane %v7770_v44, %v2995_v48  ;;  %v6551_v51 = vld [vmem:[%s6984_s22 + $0x1b0] sm:$0xff]   ;;  %v6558_v50 = vld [vmem:[%s6984_s22 + $0x120] sm:$0xff]   ;;  %v6562_v25 = vld [vmem:[%s6984_s22 + $0x118] sm:$0xff]  }
 0x851   : > { %v7791_v17 = vpop.f32.mrf.mxu0  ;;  %v7793_v52 = vpop.f32.mrf.mxu1  ;;  %6052 = vmatprep.subr.bf16.mxu0 %v6548_v0  ;;  %6080 = vmatprep.subr.bf16.mxu1 %v6549_v36  ;;  %v3685_v53 = vmax.f32 %v3313_v1, 0.0 }
 0x852   : > { %v3684_v18 = vmax.f32 %v3262_v39, 0.0  ;;  %v3686_v2 = vmax.f32 %v3315_v38, 0.0  ;;  %v3715_v59 = vpack.c.bf16 %v3683_v15, %v3667_v58  ;;  %v6563_v38 = vld [vmem:[%s6984_s22 + $0x198] sm:$0xff]   ;;  %v2983_v15 = vsub.s32 4, %v7763_v10  ;;  %v6567_v58 = vld [vmem:[%s6984_s22 + $0x190] sm:$0xff]  }
 0x853   : > { %v3353_v21 = vpop.f32.mrf.mxu0  ;;  %v3406_v8 = vpop.f32.mrf.mxu1  ;;  %v3717_v60 = vpack.c.bf16 %v3685_v53, %v3669_v14  ;;  %v6566_v53 = vld [vmem:[%s6984_s22 + $0x110] sm:$0xff]  }
 0x854   : > { %v3716_v40 = vpack.c.bf16 %v3684_v18, %v3668_v46  ;;  %v3718_v20 = vpack.c.bf16 %v3686_v2, %v3670_v41  ;;  %6053 = vmatpush3.bf16.msra.mxu0 %v6550_v11  ;;  %6081 = vmatpush3.bf16.msra.mxu1 %v6551_v51  ;;  %v3354_v30 = vadd.f32 %v3353_v21, %v7798_v33  ;;  %v6564_v11 = vld [vmem:[%s6984_s22 + $0x150] sm:$0xff]   ;;  %v2991_v41 = vsub.s32 6, %v7763_v10  ;;  %v6568_v21 = vld [vmem:[%s6984_s22 + $0x148] sm:$0xff]  }
 0x855   : > { %v7809_v32 = vpop.f32.mrf.mxu0  ;;  %v7811_v34 = vpop.f32.mrf.mxu1  ;;  %6054 = vmatprep.subr.bf16.mxu0 %v6552_v13  ;;  %v3407_v6 = vadd.f32 %v3406_v8, %v7803_v12  ;;  %6082 = vmatprep.subr.bf16.mxu1 %v6553_v23  ;;  %v6565_v46 = vld [vmem:[%s6984_s22 + $0x1d0] sm:$0xff]   ;;  %v6569_v8 = vld [vmem:[%s6984_s22 + $0x1c8] sm:$0xff]   ;;  %v2984_v23 = vrot.slane %v7770_v44, %v2983_v15 }
 0x856   : > { %4802 = vmatprep.mubr.bf16.mxu0 %v3716_v40  ;;  %4851 = vmatprep.mubr.bf16.mxu1 %v3718_v20  ;;  %v3640_v45 = vmax.f32 %v3354_v30, 0.0  ;;  %v2992_v40 = vrot.slane %v7770_v44, %v2991_v41 }
 0x857   : > { %v3357_v16 = vpop.f32.mrf.mxu0  ;;  %v3410_v62 = vpop.f32.mrf.mxu1  ;;  %4803 = vmatmul.mubr.bf16.gmra.mxu0 %v3715_v59  ;;  %4852 = vmatmul.mubr.bf16.gmra.mxu1 %v3717_v60  ;;  %v3642_v24 = vmax.f32 %v3407_v6, 0.0  ;;  %v3356_v59 = vadd.f32 %v7809_v32, %v2984_v23  ;;  %v6573_v6 = vld [vmem:[%s6984_s22 + $0x1c0] sm:$0xff]   ;;  %v3352_v44 = vadd.f32 %v7791_v17, %v2984_v23 }
 0x858   : > { %v3358_v43 = vadd.f32 %v3357_v16, %v7798_v33  ;;  %v3411_v19 = vadd.f32 %v3410_v62, %v7803_v12  ;;  %6055 = vmatpush3.bf16.msra.mxu0 %v6554_v29  ;;  %6083 = vmatpush3.bf16.msra.mxu1 %v6555_v57  ;;  %v6570_v29 = vld [vmem:[%s6984_s22 + $0x108] sm:$0xff]   ;;  %v3409_v60 = vadd.f32 %v7811_v34, %v2992_v40  ;;  %v6574_v34 = vld [vmem:[%s6984_s22 + $0x100] sm:$0xff]  }
 0x859   : > { %v7821_v55 = vpop.f32.mrf.mxu0  ;;  %v7823_v28 = vpop.f32.mrf.mxu1  ;;  %6056 = vmatprep.subr.bf16.mxu0 %v6556_v54  ;;  %6084 = vmatprep.subr.bf16.mxu1 %v6557_v31  ;;  %v6571_v57 = vld [vmem:[%s6984_s22 + $0x188] sm:$0xff]   ;;  %v6572_v54 = vld [vmem:[%s6984_s22 + $0x140] sm:$0xff]   ;;  %v3405_v32 = vadd.f32 %v7793_v52, %v2992_v40  ;;  %v3639_v52 = vmax.f32 %v3352_v44, 0.0 }
 0x85a   : > { %v3656_v0 = vmax.f32 %v3358_v43, 0.0  ;;  %v3658_v36 = vmax.f32 %v3411_v19, 0.0  ;;  %v3655_v19 = vmax.f32 %v3356_v59, 0.0  ;;  %v6575_v17 = vld [vmem:[%s6984_s22 + $0x180] sm:$0xff]   ;;  %v6585_v44 = vld [vmem:[%s6984_s22 + $0x2e8] sm:$0xff]  }
 0x85b   : > { %v3363_v22 = vpop.f32.mrf.mxu0  ;;  %v3416_v1 = vpop.f32.mrf.mxu1 }
 0x85c   : > { %v3704_v5 = vpack.c.bf16 %v3656_v0, %v3640_v45  ;;  %v3706_v4 = vpack.c.bf16 %v3658_v36, %v3642_v24  ;;  %6057 = vmatpush3.bf16.msra.mxu0 %v6558_v50  ;;  %6085 = vmatpush3.bf16.msra.mxu1 %v6559_v61  ;;  %v3364_v62 = vadd.f32 %v3363_v22, %v7798_v33  ;;  %v6576_v61 = vld [vmem:[%s6984_s22 + $0x278] sm:$0xff]  }
 0x85d   : > { %v7829_v7 = vpop.f32.mrf.mxu0  ;;  %v7831_v39 = vpop.f32.mrf.mxu1  ;;  %6058 = vmatprep.subr.bf16.mxu0 %v6560_v63  ;;  %6086 = vmatprep.subr.bf16.mxu1 %v6561_v27  ;;  %v3417_v50 = vadd.f32 %v3416_v1, %v7803_v12  ;;  %v3657_v63 = vmax.f32 %v3409_v60, 0.0  ;;  %v6577_v24 = vld [vmem:[%s6984_s22 + $0x2f8] sm:$0xff]   ;;  %v3641_v27 = vmax.f32 %v3405_v32, 0.0 }
 0x85e   : > { %4892 = vmatprep.mubr.bf16.mxu0 %v3704_v5  ;;  %4941 = vmatprep.mubr.bf16.mxu1 %v3706_v4  ;;  %v3672_v22 = vmax.f32 %v3364_v62, 0.0  ;;  %v3703_v5 = vpack.c.bf16 %v3655_v19, %v3639_v52  ;;  %v6589_v52 = vld [vmem:[%s6984_s22 + $0x2e0] sm:$0xff]  }
 0x85f   : > { %v3367_v51 = vpop.f32.mrf.mxu0  ;;  %v3420_v13 = vpop.f32.mrf.mxu1  ;;  %v3674_v4 = vmax.f32 %v3417_v50, 0.0  ;;  %v6586_v50 = vld [vmem:[%s6984_s22 + $0x228] sm:$0xff]  }
 0x860   : > { %6059 = vmatpush3.bf16.msra.mxu0 %v6562_v25  ;;  %6087 = vmatpush3.bf16.msra.mxu1 %v6563_v38  ;;  %v3368_v30 = vadd.f32 %v3367_v51, %v7798_v33  ;;  %v3421_v31 = vadd.f32 %v3420_v13, %v7803_v12  ;;  %v7875_v33 = vld [vmem:[%s6974_s0 + $0x8] sm:$0xff]  ;;  %v3366_v25 = vadd.f32 %v7829_v7, %v2984_v23 }
 0x861   : > { %v7839_v18 = vpop.f32.mrf.mxu0  ;;  %v7841_v2 = vpop.f32.mrf.mxu1  ;;  %6060 = vmatprep.subr.bf16.mxu0 %v6564_v11  ;;  %6088 = vmatprep.subr.bf16.mxu1 %v6565_v46  ;;  %v7880_v12 = vrot.slane %v7875_v33, %v2971_v49  ;;  %v7886_v38 = vrot.slane %v7875_v33, %v2979_v26  ;;  %v6578_v11 = vld [vmem:[%s6984_s22 + $0x238] sm:$0xff]   ;;  %v3705_v46 = vpack.c.bf16 %v3657_v63, %v3641_v27  ;;  %v6581_v26 = vld [vmem:[%s6984_s22 + $0x2f0] sm:$0xff]   ;;  %v6587_v63 = vld [vmem:[%s6984_s22 + $0x2a8] sm:$0xff]  }
 0x862   : > { %v3688_v45 = vmax.f32 %v3368_v30, 0.0  ;;  %v3690_v0 = vmax.f32 %v3421_v31, 0.0  ;;  %v3419_v49 = vadd.f32 %v7831_v39, %v2992_v40  ;;  %v3362_v7 = vadd.f32 %v7821_v55, %v2984_v23  ;;  %v6590_v27 = vld [vmem:[%s6984_s22 + $0x220] sm:$0xff]  }
 0x863   : > { %v3459_v14 = vpop.f32.mrf.mxu0  ;;  %v7852_v20 = vpop.f32.mrf.mxu1 }
 0x864   : > { %6061 = vmatpush3.bf16.msra.mxu0 %v6566_v53  ;;  %6089 = vmatpush3.bf16.msra.mxu1 %v6567_v58  ;;  %v3720_v51 = vpack.c.bf16 %v3688_v45, %v3672_v22  ;;  %v6579_v53 = vld [vmem:[%s6984_s22 + $0x2b8] sm:$0xff]   ;;  %v6580_v58 = vld [vmem:[%s6984_s22 + $0x270] sm:$0xff]   ;;  %v3460_v39 = vadd.f32 %v3459_v14, %v7880_v12  ;;  %v3513_v55 = vadd.f32 %v7852_v20, %v7886_v38  ;;  %v3689_v60 = vmax.f32 %v3419_v49, 0.0  ;;  %v6584_v14 = vld [vmem:[%s6984_s22 + $0x268] sm:$0xff]  }
 0x865   : > { %6062 = vmatprep.subr.bf16.mxu0 %v6568_v21  ;;  %6090 = vmatprep.subr.bf16.mxu1 %v6569_v8  ;;  %v7863_v16 = vpop.f32.mrf.mxu0  ;;  %v7867_v43 = vpop.f32.mrf.mxu1  ;;  %v3722_v21 = vpack.c.bf16 %v3690_v0, %v3674_v4  ;;  %v6588_v45 = vld [vmem:[%s6984_s22 + $0x260] sm:$0xff]   ;;  %v6596_v49 = vld [vmem:[%s6984_s22 + $0x250] sm:$0xff]  }
 0x866   : > { %v3644_v20 = vmax.f32 %v3460_v39, 0.0  ;;  %v6591_v22 = vld [vmem:[%s6984_s22 + $0x2a0] sm:$0xff]   ;;  %v3008_v39 = vrot.slane %v7875_v33, %v2975_v42 }
 0x867   : > { %v3463_v36 = vpop.f32.mrf.mxu0  ;;  %v3516_v1 = vpop.f32.mrf.mxu1 }
 0x868   : > { %6063 = vmatpush3.bf16.msra.mxu0 %v6570_v29  ;;  %6091 = vmatpush3.bf16.msra.mxu1 %v6571_v57  ;;  %v3464_v13 = vadd.f32 %v3463_v36, %v7880_v12  ;;  %v3517_v8 = vadd.f32 %v3516_v1, %v7886_v38  ;;  %v3415_v29 = vadd.f32 %v7823_v28, %v2992_v40  ;;  %v3687_v57 = vmax.f32 %v3366_v25, 0.0  ;;  %v6583_v28 = vld [vmem:[%s6984_s22 + $0x2b0] sm:$0xff]   ;;  %v6592_v1 = vld [vmem:[%s6984_s22 + $0x258] sm:$0xff]  }
 0x869   : > { %6064 = vmatprep.subr.bf16.mxu0 %v6572_v54  ;;  %6092 = vmatprep.subr.bf16.mxu1 %v6573_v6  ;;  %v7898_v59 = vpop.f32.mrf.mxu0  ;;  %v7902_v23 = vpop.f32.mrf.mxu1  ;;  %v6582_v54 = vld [vmem:[%s6984_s22 + $0x230] sm:$0xff]   ;;  %v3671_v40 = vmax.f32 %v3362_v7, 0.0 }
 0x86a   : > { %v3660_v30 = vmax.f32 %v3464_v13, 0.0  ;;  %v3662_v6 = vmax.f32 %v3517_v8, 0.0  ;;  %v3673_v31 = vmax.f32 %v3415_v29, 0.0  ;;  %v6599_v7 = vld [vmem:[%s6984_s22 + $0x290] sm:$0xff]   ;;  %v6601_v8 = vld [vmem:[%s6984_s22 + $0x2c8] sm:$0xff]  }
 0x86b   : > { %v7908_v32 = vpop.f32.mrf.mxu0  ;;  %v3719_v62 = vpack.c.bf16 %v3687_v57, %v3671_v40  ;;  %v7910_v19 = vpop.f32.mrf.mxu1 }
 0x86c   : > { %6065 = vmatpush3.bf16.msra.mxu0 %v6574_v34  ;;  %6093 = vmatpush3.bf16.msra.mxu1 %v6575_v17  ;;  %v3646_v34 = vmax.f32 %v3513_v55, 0.0  ;;  %v3721_v17 = vpack.c.bf16 %v3689_v60, %v3673_v31  ;;  %v6602_v55 = vld [vmem:[%s6984_s22 + $0x208] sm:$0xff]  }
 0x86d   : > { %6106 = vmatprep.subr.bf16.mxu0 %v6576_v61  ;;  %6134 = vmatprep.subr.bf16.mxu1 %v6577_v24  ;;  %v3708_v61 = vpack.c.bf16 %v3660_v30, %v3644_v20  ;;  %v7916_v0 = vpop.f32.mrf.mxu0  ;;  %v7918_v36 = vpop.f32.mrf.mxu1  ;;  %v6603_v60 = vld [vmem:[%s6984_s22 + $0x288] sm:$0xff]   ;;  %v6604_v30 = vld [vmem:[%s6984_s22 + $0x240] sm:$0xff]  }
 0x86e   : > { %v3710_v24 = vpack.c.bf16 %v3662_v6, %v3646_v34  ;;  %v6608_v34 = vld [vmem:[%s6984_s22 + $0x378] sm:$0xff]  }
 0x86f   : > { %4893 = vmatmul.mubr.bf16.vlgmr.msra.gmra.mxu0 %v3703_v5  ;;  %4942 = vmatmul.mubr.bf16.vlgmr.msra.gmra.mxu1 %v3705_v46  ;;  %v6593_v5 = vld [vmem:[%s6984_s22 + $0x2d8] sm:$0xff]   ;;  %v3473_v4 = vpop.f32.mrf.mxu0  ;;  %v3526_v25 = vpop.f32.mrf.mxu1 }
 0x870   : > { %4900 = vmatprep.mubr.bf16.mxu0 %v3720_v51  ;;  %4949 = vmatprep.mubr.bf16.mxu1 %v3722_v21  ;;  %v6595_v46 = vld [vmem:[%s6984_s22 + $0x298] sm:$0xff]   ;;  %v6597_v51 = vld [vmem:[%s6984_s22 + $0x2d0] sm:$0xff]   ;;  %v6600_v21 = vld [vmem:[%s6984_s22 + $0x248] sm:$0xff]   ;;  %v3527_v40 = vadd.f32 %v3526_v25, %v7886_v38 }
 0x871   : > { %6107 = vmatpush3.bf16.msra.mxu0 %v6578_v11  ;;  %6135 = vmatpush3.bf16.msra.mxu1 %v6579_v53  ;;  %v6594_v11 = vld [vmem:[%s6984_s22 + $0x218] sm:$0xff]   ;;  %v7928_v13 = vpop.f32.mrf.mxu0  ;;  %v7930_v53 = vpop.f32.mrf.mxu1 }
 0x872   : > { %6108 = vmatprep.subr.bf16.mxu0 %v6580_v58  ;;  %6136 = vmatprep.subr.bf16.mxu1 %v6581_v26  ;;  %v6598_v58 = vld [vmem:[%s6984_s22 + $0x210] sm:$0xff]   ;;  %v3000_v26 = vrot.slane %v7875_v33, %v2967_v37  ;;  %v3474_v37 = vadd.f32 %v3473_v4, %v7880_v12 }
 0x873   : > { %v3565_v29 = vpop.f32.mrf.mxu0  ;;  %v3618_v57 = vpop.f32.mrf.mxu1 }
 0x874   : > { %v3458_v42 = vadd.f32 %v7839_v18, %v3000_v26  ;;  %v6607_v18 = vld [vmem:[%s6984_s22 + $0x280] sm:$0xff]  }
 0x875   : > { %6109 = vmatpush3.bf16.msra.mxu0 %v6582_v54  ;;  %6137 = vmatpush3.bf16.msra.mxu1 %v6583_v28  ;;  %v3462_v54 = vadd.f32 %v7863_v16, %v3000_v26  ;;  %v3515_v28 = vadd.f32 %v7867_v43, %v3008_v39  ;;  %v7951_v6 = vpop.f32.mrf.mxu0  ;;  %v3511_v16 = vadd.f32 %v7841_v2, %v3008_v39  ;;  %v7956_v31 = vpop.f32.mrf.mxu1  ;;  %v6606_v43 = vld [vmem:[%s6984_s22 + $0x200] sm:$0xff]   ;;  %v6609_v2 = vld [vmem:[%s6984_s22 + $0x3f8] sm:$0xff]  }
 0x876   : > { %6110 = vmatprep.subr.bf16.mxu0 %v6584_v14  ;;  %6138 = vmatprep.subr.bf16.mxu1 %v6585_v44  ;;  %v6605_v14 = vld [vmem:[%s6984_s22 + $0x2c0] sm:$0xff]   ;;  %v3470_v44 = vadd.f32 %v7908_v32, %v7880_v12 }
 0x877   : > { %4901 = vmatmul.mubr.bf16.gmra.mxu0 %v3719_v62  ;;  %4950 = vmatmul.mubr.bf16.gmra.mxu1 %v3721_v17  ;;  %v3659_v20 = vmax.f32 %v3462_v54, 0.0  ;;  %v3523_v62 = vadd.f32 %v7910_v19, %v7886_v38  ;;  %v3692_v17 = vmax.f32 %v3474_v37, 0.0  ;;  %v3569_v12 = vpop.f32.mrf.mxu0  ;;  %v3645_v32 = vmax.f32 %v3511_v16, 0.0  ;;  %v3622_v38 = vpop.f32.mrf.mxu1  ;;  %v6616_v54 = vld [vmem:[%s6984_s22 + $0x368] sm:$0xff]   ;;  %v6620_v16 = vld [vmem:[%s6984_s22 + $0x360] sm:$0xff]  }
 0x878   : > { %4990 = vmatprep.mubr.bf16.mxu0 %v3708_v61  ;;  %5039 = vmatprep.mubr.bf16.mxu1 %v3710_v24  ;;  %v3643_v61 = vmax.f32 %v3458_v42, 0.0  ;;  %v7967_v24 = vrot.slane %v7875_v33, %v2987_v56  ;;  %v3525_v56 = vadd.f32 %v7918_v36, %v3008_v39  ;;  %v6618_v37 = vld [vmem:[%s6984_s22 + $0x328] sm:$0xff]  }
 0x879   : > { %6111 = vmatpush3.bf16.msra.mxu0 %v6586_v50  ;;  %6139 = vmatpush3.bf16.msra.mxu1 %v6587_v63  ;;  %v3661_v50 = vmax.f32 %v3515_v28, 0.0  ;;  %v3694_v63 = vmax.f32 %v3527_v40, 0.0  ;;  %v6619_v40 = vld [vmem:[%s6984_s22 + $0x3a8] sm:$0xff]  }
 0x87a   : > { %6112 = vmatprep.subr.bf16.mxu0 %v6588_v45  ;;  %6140 = vmatprep.subr.bf16.mxu1 %v6589_v52  ;;  %v3676_v45 = vmax.f32 %v3470_v44, 0.0  ;;  %v3707_v19 = vpack.c.bf16 %v3659_v20, %v3643_v61  ;;  %v3678_v52 = vmax.f32 %v3523_v62, 0.0  ;;  %v3570_v25 = vadd.f32 %v3569_v12, %v7967_v24  ;;  %v7994_v20 = vpop.f32.mrf.mxu0  ;;  %v7996_v62 = vpop.f32.mrf.mxu1  ;;  %v6627_v12 = vld [vmem:[%s6984_s22 + $0x398] sm:$0xff]  }
 0x87b   : > { %v3566_v36 = vadd.f32 %v3565_v29, %v7967_v24 }
 0x87c   : > { %v3724_v4 = vpack.c.bf16 %v3692_v17, %v3676_v45  ;;  %v6625_v17 = vld [vmem:[%s6984_s22 + $0x3d8] sm:$0xff]   ;;  %v3628_v61 = vpop.f32.mrf.mxu1  ;;  %v6629_v45 = vld [vmem:[%s6984_s22 + $0x3d0] sm:$0xff]  }
 0x87d   : > { %6113 = vmatpush3.bf16.msra.mxu0 %v6590_v27  ;;  %6141 = vmatpush3.bf16.msra.mxu1 %v6591_v22  ;;  %v3472_v27 = vadd.f32 %v7916_v0, %v3000_v26  ;;  %v7973_v22 = vrot.slane %v7875_v33, %v2995_v48  ;;  %v3468_v0 = vadd.f32 %v7898_v59, %v3000_v26  ;;  %v6613_v48 = vld [vmem:[%s6984_s22 + $0x3f0] sm:$0xff]   ;;  %v3664_v26 = vmax.f32 %v3570_v25, 0.0 }
 0x87e   : > { %6114 = vmatprep.subr.bf16.mxu0 %v6592_v1  ;;  %6142 = vmatprep.subr.bf16.mxu1 %v6593_v5  ;;  %v6610_v1 = vld [vmem:[%s6984_s22 + $0x338] sm:$0xff]   ;;  %v3709_v5 = vpack.c.bf16 %v3661_v50, %v3645_v32  ;;  %v6614_v59 = vld [vmem:[%s6984_s22 + $0x330] sm:$0xff]   ;;  %v3024_v25 = vrot.slane %v7875_v33, %v2991_v41 }
 0x87f   : > { %v6624_v50 = vld [vmem:[%s6984_s22 + $0x358] sm:$0xff]   ;;  %v6628_v32 = vld [vmem:[%s6984_s22 + $0x350] sm:$0xff]  }
 0x881   : > { %6115 = vmatpush3.bf16.msra.mxu0 %v6594_v11  ;;  %6143 = vmatpush3.bf16.msra.mxu1 %v6595_v46  ;;  %v6611_v11 = vld [vmem:[%s6984_s22 + $0x3b8] sm:$0xff]   ;;  %v6612_v46 = vld [vmem:[%s6984_s22 + $0x370] sm:$0xff]  }
 0x882   : > { %6116 = vmatprep.subr.bf16.mxu0 %v6596_v49  ;;  %6144 = vmatprep.subr.bf16.mxu1 %v6597_v51  ;;  %v3726_v49 = vpack.c.bf16 %v3694_v63, %v3678_v52  ;;  %v3623_v51 = vadd.f32 %v3622_v38, %v7973_v22  ;;  %v6626_v63 = vld [vmem:[%s6984_s22 + $0x318] sm:$0xff]   ;;  %v6630_v52 = vld [vmem:[%s6984_s22 + $0x310] sm:$0xff]  }
 0x884   : > { %v3666_v29 = vmax.f32 %v3623_v51, 0.0  ;;  %v6636_v51 = vld [vmem:[%s6984_s22 + $0x340] sm:$0xff]  }
 0x885   : > { %6117 = vmatpush3.bf16.msra.mxu0 %v6598_v58  ;;  %6145 = vmatpush3.bf16.msra.mxu1 %v6599_v7  ;;  %v3521_v58 = vadd.f32 %v7902_v23, %v3008_v39  ;;  %v3691_v7 = vmax.f32 %v3472_v27, 0.0  ;;  %v3675_v23 = vmax.f32 %v3468_v0, 0.0  ;;  %v6617_v39 = vld [vmem:[%s6984_s22 + $0x3e8] sm:$0xff]   ;;  %v6631_v27 = vld [vmem:[%s6984_s22 + $0x390] sm:$0xff]  }
 0x886   : > { %6118 = vmatprep.subr.bf16.mxu0 %v6600_v21  ;;  %6146 = vmatprep.subr.bf16.mxu1 %v6601_v8  ;;  %v3619_v21 = vadd.f32 %v3618_v57, %v7973_v22  ;;  %v3693_v8 = vmax.f32 %v3525_v56, 0.0  ;;  %v3016_v56 = vrot.slane %v7875_v33, %v2983_v15  ;;  %v3617_v33 = vadd.f32 %v7930_v53, %v3024_v25 }
 0x887   : > { %v3723_v57 = vpack.c.bf16 %v3691_v7, %v3675_v23 }
 0x888   : > { %v3650_v28 = vmax.f32 %v3619_v21, 0.0  ;;  %v3568_v0 = vadd.f32 %v7951_v6, %v3016_v56  ;;  %v3564_v10 = vadd.f32 %v7928_v13, %v3016_v56  ;;  %v6638_v6 = vld [vmem:[%s6984_s22 + $0x300] sm:$0xff]   ;;  %v3629_v21 = vadd.f32 %v3628_v61, %v7973_v22 }
 0x889   : > { %6119 = vmatpush3.bf16.msra.mxu0 %v6602_v55  ;;  %6147 = vmatpush3.bf16.msra.mxu1 %v6603_v60  ;;  %v6615_v55 = vld [vmem:[%s6984_s22 + $0x3b0] sm:$0xff]   ;;  %v3677_v60 = vmax.f32 %v3521_v58, 0.0  ;;  %v6637_v58 = vld [vmem:[%s6984_s22 + $0x3c0] sm:$0xff]   ;;  %v3649_v13 = vmax.f32 %v3617_v33, 0.0 }
 0x88a   : > { %6120 = vmatprep.subr.bf16.mxu0 %v6604_v30  ;;  %6148 = vmatprep.subr.bf16.mxu1 %v6605_v14  ;;  %v3648_v30 = vmax.f32 %v3566_v36, 0.0  ;;  %v3714_v44 = vpack.c.bf16 %v3666_v29, %v3650_v28  ;;  %v3663_v7 = vmax.f32 %v3568_v0, 0.0  ;;  %v3682_v53 = vmax.f32 %v3629_v21, 0.0 }
 0x88b   : > { %v3725_v14 = vpack.c.bf16 %v3693_v8, %v3677_v60 }
 0x88c   : > { %v3712_v42 = vpack.c.bf16 %v3664_v26, %v3648_v30  ;;  %v3647_v26 = vmax.f32 %v3564_v10, 0.0 }
 0x88d   : > { %6121 = vmatpush3.bf16.msra.mxu0 %v6606_v43  ;;  %6149 = vmatpush3.bf16.msra.mxu1 %v6607_v18  ;;  %v6621_v43 = vld [vmem:[%s6984_s22 + $0x3e0] sm:$0xff]  }
 0x88e   : > { %6162 = vmatprep.subr.bf16.mxu0 %v6608_v34  ;;  %6190 = vmatprep.subr.bf16.mxu1 %v6609_v2  ;;  %v6622_v18 = vld [vmem:[%s6984_s22 + $0x320] sm:$0xff]   ;;  %v3575_v2 = vpop.f32.mrf.mxu0  ;;  %v3711_v23 = vpack.c.bf16 %v3663_v7, %v3647_v26 }
 0x88f   : > { %v6623_v34 = vld [vmem:[%s6984_s22 + $0x3a0] sm:$0xff]   ;;  %v3576_v36 = vadd.f32 %v3575_v2, %v7967_v24 }
 0x890   : > { %4991 = vmatmul.mubr.bf16.vlgmr.msra.gmra.mxu0 %v3707_v19  ;;  %5040 = vmatmul.mubr.bf16.vlgmr.msra.gmra.mxu1 %v3709_v5  ;;  %v3577_v38 = vpop.f32.mrf.mxu0  ;;  %v3630_v19 = vpop.f32.mrf.mxu1  ;;  %v6633_v5 = vld [vmem:[%s6984_s22 + $0x3c8] sm:$0xff]   ;;  %v5767_v26 = vld [vmem:[%s754_s20] ss:$0 sm:$0xff] }
 0x891   : > { %4998 = vmatprep.mubr.bf16.mxu0 %v3724_v4  ;;  %5047 = vmatprep.mubr.bf16.mxu1 %v3726_v49  ;;  %v6635_v49 = vld [vmem:[%s6984_s22 + $0x388] sm:$0xff]   ;;  %v3578_v29 = vadd.f32 %v3577_v38, %v3016_v56 }
 0x892   : > { %6163 = vmatpush3.bf16.msra.mxu0 %v6610_v1  ;;  %6191 = vmatpush3.bf16.msra.mxu1 %v6611_v11  ;;  %v6632_v1 = vld [vmem:[%s6984_s22 + $0x348] sm:$0xff]   ;;  %v3579_v4 = vpop.f32.mrf.mxu0  ;;  %v3632_v11 = vpop.f32.mrf.mxu1 }
 0x893   : > { %6164 = vmatprep.subr.bf16.mxu0 %v6612_v46  ;;  %6192 = vmatprep.subr.bf16.mxu1 %v6613_v48  ;;  %v6634_v46 = vld [vmem:[%s6984_s22 + $0x308] sm:$0xff]   ;;  %v3621_v48 = vadd.f32 %v7956_v31, %v3024_v25  ;;  %v3580_v15 = vadd.f32 %v3579_v4, %v7967_v24  ;;  %v3633_v41 = vadd.f32 %v3632_v11, %v7973_v22  ;;  %v6639_v31 = vld [vmem:[%s6984_s22 + $0x380] sm:$0xff]   ;;  %v3695_v28 = vmax.f32 %v3578_v29, 0.0 }
 0x894   : > { %v3574_v22 = vadd.f32 %v7994_v20, %v3016_v56 }
 0x895   : > { %v3696_v8 = vmax.f32 %v3580_v15, 0.0 }
 0x896   : > { %6165 = vmatpush3.bf16.msra.mxu0 %v6614_v59  ;;  %6193 = vmatpush3.bf16.msra.mxu1 %v6615_v55  ;;  %v3665_v59 = vmax.f32 %v3621_v48, 0.0  ;;  %v3698_v55 = vmax.f32 %v3633_v41, 0.0 }
 0x897   : > { %6166 = vmatprep.subr.bf16.mxu0 %v6616_v54  ;;  %6194 = vmatprep.subr.bf16.mxu1 %v6617_v39  ;;  %v3680_v54 = vmax.f32 %v3576_v36, 0.0  ;;  %v3631_v39 = vadd.f32 %v3630_v19, %v3024_v25 }
 0x898   : > { %4999 = vmatmul.mubr.bf16.gmra.mxu0 %v3723_v57  ;;  %5048 = vmatmul.mubr.bf16.gmra.mxu1 %v3725_v14  ;;  %v3713_v24 = vpack.c.bf16 %v3665_v59, %v3649_v13  ;;  %v3730_v30 = vpack.c.bf16 %v3698_v55, %v3682_v53  ;;  %v3627_v57 = vadd.f32 %v7996_v62, %v3024_v25  ;;  %v3679_v14 = vmax.f32 %v3574_v22, 0.0 }
 0x899   : > { %5088 = vmatprep.mubr.bf16.mxu0 %v3712_v42  ;;  %5137 = vmatprep.mubr.bf16.mxu1 %v3714_v44  ;;  %v3728_v60 = vpack.c.bf16 %v3696_v8, %v3680_v54 }
 0x89a   : > { %6167 = vmatpush3.bf16.msra.mxu0 %v6618_v37  ;;  %6195 = vmatpush3.bf16.msra.mxu1 %v6619_v40  ;;  %v3697_v37 = vmax.f32 %v3631_v39, 0.0  ;;  %v3681_v42 = vmax.f32 %v3627_v57, 0.0  ;;  %v3727_v40 = vpack.c.bf16 %v3695_v28, %v3679_v14 }
 0x89b   : > { %6168 = vmatprep.subr.bf16.mxu0 %v6620_v16  ;;  %6196 = vmatprep.subr.bf16.mxu1 %v6621_v43 }
 0x89c   : > { %v3729_v16 = vpack.c.bf16 %v3697_v37, %v3681_v42 }
 0x89e   : > { %6169 = vmatpush3.bf16.msra.mxu0 %v6622_v18  ;;  %6197 = vmatpush3.bf16.msra.mxu1 %v6623_v34 }
 0x89f   : > { %6170 = vmatprep.subr.bf16.mxu0 %v6624_v50  ;;  %6198 = vmatprep.subr.bf16.mxu1 %v6625_v17 }
 0x8a2   : > { %6171 = vmatpush3.bf16.msra.mxu0 %v6626_v63  ;;  %6199 = vmatpush3.bf16.msra.mxu1 %v6627_v12 }
 0x8a3   : > { %6172 = vmatprep.subr.bf16.mxu0 %v6628_v32  ;;  %6200 = vmatprep.subr.bf16.mxu1 %v6629_v45 }
 0x8a6   : > { %6173 = vmatpush3.bf16.msra.mxu0 %v6630_v52  ;;  %6201 = vmatpush3.bf16.msra.mxu1 %v6631_v27 }
 0x8a7   : > { %6174 = vmatprep.subr.bf16.mxu0 %v6632_v1  ;;  %6202 = vmatprep.subr.bf16.mxu1 %v6633_v5 }
 0x8aa   : > { %6175 = vmatpush3.bf16.msra.mxu0 %v6634_v46  ;;  %6203 = vmatpush3.bf16.msra.mxu1 %v6635_v49 }
 0x8ab   : > { %6176 = vmatprep.subr.bf16.mxu0 %v6636_v51  ;;  %6204 = vmatprep.subr.bf16.mxu1 %v6637_v58 }
 0x8ae   : > { %6177 = vmatpush3.bf16.msra.mxu0 %v6638_v6  ;;  %6205 = vmatpush3.bf16.msra.mxu1 %v6639_v31 }
 0x8b1   : > { %5089 = vmatmul.mubr.bf16.vlgmr.msra.gmra.mxu0 %v3711_v23  ;;  %5138 = vmatmul.mubr.bf16.vlgmr.msra.gmra.mxu1 %v3713_v24 }
 0x8b2   : > { %5096 = vmatprep.mubr.bf16.mxu0 %v3728_v60  ;;  %5145 = vmatprep.mubr.bf16.mxu1 %v3730_v30 }
 0x8b9   : > { %5097 = vmatmul.mubr.bf16.gmra.mxu0 %v3727_v40  ;;  %5146 = vmatmul.mubr.bf16.gmra.mxu1 %v3729_v16 }
 0x90f   : > { %v6010_v44 = vpop.f32.mrf.mxu0  ;;  %v6038_v43 = vpop.f32.mrf.mxu1 }
 0x911   : > { %v6011_v18 = vpop.f32.mrf.mxu0  ;;  %v6039_v34 = vpop.f32.mrf.mxu1 }
 0x912   : > { %v6012_v59 = vadd.f32 %v6011_v18, %v6010_v44  ;;  %v6040_v53 = vadd.f32 %v6039_v34, %v6038_v43 }
 0x913   : > { %v6013_v20 = vpop.f32.mrf.mxu0  ;;  %v6041_v50 = vpop.f32.mrf.mxu1 }
 0x914   : > { %v4797_v13 = vadd.f32 %v6012_v59, %v5767_v26 }
 0x915   : > { %v6014_v17 = vpop.f32.mrf.mxu0  ;;  %v6042_v2 = vpop.f32.mrf.mxu1 }
 0x916   : > { %v6015_v54 = vadd.f32 %v6014_v17, %v6013_v20  ;;  %v4846_v60 = vadd.f32 %v6040_v53, %v4797_v13  ;;  %v6043_v57 = vadd.f32 %v6042_v2, %v6041_v50 }
 0x917   : > { %v6016_v62 = vpop.f32.mrf.mxu0  ;;  %v6044_v61 = vpop.f32.mrf.mxu1 }
 0x918   : > { %v4800_v22 = vadd.f32 %v6015_v54, %v5767_v26 }
 0x919   : > { %v6017_v63 = vpop.f32.mrf.mxu0  ;;  %v6045_v12 = vpop.f32.mrf.mxu1 }
 0x91a   : > { %v6018_v24 = vadd.f32 %v6017_v63, %v6016_v62  ;;  %v4849_v40 = vadd.f32 %v6043_v57, %v4800_v22  ;;  %v6046_v59 = vadd.f32 %v6045_v12, %v6044_v61 }
 0x91b   : > { %v6019_v32 = vpop.f32.mrf.mxu0  ;;  %v8032_v45 = vpop.f32.mrf.mxu1 }
 0x91c   : > { %v4805_v14 = vadd.f32 %v6018_v24, %v5767_v26 }
 0x91d   : > { %v6020_v38 = vpop.f32.mrf.mxu0  ;;  %v6048_v19 = vpop.f32.mrf.mxu1 }
 0x91e   : > { %v6021_v16 = vadd.f32 %v6020_v38, %v6019_v32  ;;  %v4854_v34 = vadd.f32 %v6046_v59, %v4805_v14 }
 0x920   : > { %v4808_v63 = vadd.f32 %v6021_v16, %v5767_v26 }
 0x92f   : > { %v6066_v52 = vpop.f32.mrf.mxu0  ;;  %v6094_v27 = vpop.f32.mrf.mxu1 }
 0x931   : > { %v6067_v1 = vpop.f32.mrf.mxu0  ;;  %v6095_v5 = vpop.f32.mrf.mxu1 }
 0x932   : > { %v6068_v29 = vadd.f32 %v6067_v1, %v6066_v52  ;;  %v6096_v44 = vadd.f32 %v6095_v5, %v6094_v27 }
 0x933   : > { %v6069_v56 = vpop.f32.mrf.mxu0  ;;  %v6097_v4 = vpop.f32.mrf.mxu1 }
 0x934   : > { %v4895_v28 = vadd.f32 %v6068_v29, %v4846_v60 }
 0x935   : > { %v6070_v25 = vpop.f32.mrf.mxu0  ;;  %v6098_v11 = vpop.f32.mrf.mxu1 }
 0x936   : > { %v6071_v37 = vadd.f32 %v6070_v25, %v6069_v56  ;;  %v4944_v17 = vadd.f32 %v6096_v44, %v4895_v28  ;;  %v6099_v52 = vadd.f32 %v6098_v11, %v6097_v4  ;;  %v6049_v25 = vadd.f32 %v6048_v19, %v8032_v45 }
 0x937   : > { %v6072_v46 = vpop.f32.mrf.mxu0  ;;  %v6100_v0 = vpop.f32.mrf.mxu1 }
 0x938   : > { %v4898_v43 = vadd.f32 %v6071_v37, %v4849_v40 }
 0x939   : > { %v6073_v49 = vpop.f32.mrf.mxu0  ;;  %v6101_v51 = vpop.f32.mrf.mxu1 }
 0x93a   : > { %v6074_v20 = vadd.f32 %v6073_v49, %v6072_v46  ;;  %v4947_v54 = vadd.f32 %v6099_v52, %v4898_v43  ;;  %v6102_v5 = vadd.f32 %v6101_v51, %v6100_v0  ;;  %v4857_v46 = vadd.f32 %v6049_v25, %v4808_v63 }
 0x93b   : > { %v6075_v48 = vpop.f32.mrf.mxu0  ;;  %v8034_v15 = vpop.f32.mrf.mxu1 }
 0x93c   : > { %v4903_v2 = vadd.f32 %v6074_v20, %v4854_v34 }
 0x93d   : > { %v6076_v58 = vpop.f32.mrf.mxu0  ;;  %v8036_v10 = vpop.f32.mrf.mxu1 }
 0x93e   : > { %v6077_v32 = vadd.f32 %v6076_v58, %v6075_v48  ;;  %v4952_v4 = vadd.f32 %v6102_v5, %v4903_v2  ;;  %v6105_v45 = vadd.f32 %v8036_v10, %v8034_v15 }
 0x950   : > { %v6122_v41 = vpop.f32.mrf.mxu0  ;;  %v6150_v33 = vpop.f32.mrf.mxu1 }
 0x952   : > { %v6123_v36 = vpop.f32.mrf.mxu0  ;;  %v6151_v6 = vpop.f32.mrf.mxu1 }
 0x953   : > { %v6124_v18 = vadd.f32 %v6123_v36, %v6122_v41  ;;  %v6152_v38 = vadd.f32 %v6151_v6, %v6150_v33 }
 0x954   : > { %v6125_v7 = vpop.f32.mrf.mxu0  ;;  %v6153_v21 = vpop.f32.mrf.mxu1 }
 0x955   : > { %v4993_v1 = vadd.f32 %v6124_v18, %v4944_v17 }
 0x956   : > { %v6126_v31 = vpop.f32.mrf.mxu0  ;;  %v6154_v8 = vpop.f32.mrf.mxu1 }
 0x957   : > { %v6127_v13 = vadd.f32 %v6126_v31, %v6125_v7  ;;  %v5042_v49 = vadd.f32 %v6152_v38, %v4993_v1  ;;  %v4906_v7 = vadd.f32 %v6077_v32, %v4857_v46  ;;  %v6155_v31 = vadd.f32 %v6154_v8, %v6153_v21 }
 0x958   : > { %v6128_v55 = vpop.f32.mrf.mxu0  ;;  %v6156_v23 = vpop.f32.mrf.mxu1 }
 0x959   : > { %v4996_v41 = vadd.f32 %v6127_v13, %v4947_v54  ;;  %v4955_v60 = vadd.f32 %v6105_v45, %v4906_v7 }
 0x95a   : > { %v6129_v39 = vpop.f32.mrf.mxu0  ;;  %v6157_v30 = vpop.f32.mrf.mxu1 }
 0x95b   : > { %v6130_v61 = vadd.f32 %v6129_v39, %v6128_v55  ;;  %v5045_v0 = vadd.f32 %v6155_v31, %v4996_v41  ;;  %v6158_v55 = vadd.f32 %v6157_v30, %v6156_v23 }
 0x95c   : > { %v6131_v42 = vpop.f32.mrf.mxu0  ;;  %v6159_v3 = vpop.f32.mrf.mxu1 }
 0x95d   : > { %v5001_v19 = vadd.f32 %v6130_v61, %v4952_v4 }
 0x95e   : > { %v6132_v62 = vpop.f32.mrf.mxu0  ;;  %v6160_v50 = vpop.f32.mrf.mxu1 }
 0x95f   : > { %v6133_v51 = vadd.f32 %v6132_v62, %v6131_v42  ;;  %v5050_v8 = vadd.f32 %v6158_v55, %v5001_v19  ;;  %v6161_v44 = vadd.f32 %v6160_v50, %v6159_v3  ;;  %v8205_v50 = vld [vmem:[#allocation12_spill] sm:$0xff] }
 0x961   : > { %v5004_v14 = vadd.f32 %v6133_v51, %v4955_v60 }
 0x963   : > { %v5053_v17 = vadd.f32 %v6161_v44, %v5004_v14 }
 0x971   : > { %v6178_v56 = vpop.f32.mrf.mxu0  ;;  %v6206_v27 = vpop.f32.mrf.mxu1 }
 0x973   : > { %v6179_v12 = vpop.f32.mrf.mxu0  ;;  %v6207_v26 = vpop.f32.mrf.mxu1 }
 0x974   : > { %v6180_v36 = vadd.f32 %v6179_v12, %v6178_v56  ;;  %v6208_v29 = vadd.f32 %v6207_v26, %v6206_v27 }
 0x975   : > { %v6181_v11 = vpop.f32.mrf.mxu0  ;;  %v6209_v24 = vpop.f32.mrf.mxu1 }
 0x976   : > { %v5091_v53 = vadd.f32 %v6180_v36, %v5042_v49 }
 0x977   : > { %v6182_v48 = vpop.f32.mrf.mxu0  ;;  %v6210_v6 = vpop.f32.mrf.mxu1 }
 0x978   : > { %v5140_v58 = vadd.f32 %v6208_v29, %v5091_v53  ;;  %v6183_v33 = vadd.f32 %v6182_v48, %v6181_v11  ;;  %v6211_v57 = vadd.f32 %v6210_v6, %v6209_v24 }
 0x979   : > { %v6184_v39 = vpop.f32.mrf.mxu0  ;;  %v6212_v28 = vpop.f32.mrf.mxu1 }
 0x97a   : > { %v5094_v22 = vadd.f32 %v6183_v33, %v5045_v0  ;;  %v5154_v21 = vadd.f32 %v5140_v58, %v7647_v47 }
 0x97b   : > { %v6185_v37 = vpop.f32.mrf.mxu0  ;;  %v6213_v10 = vpop.f32.mrf.mxu1 }
 0x97c   : > { %v5143_v40 = vadd.f32 %v6211_v57, %v5094_v22  ;;  %v6186_v15 = vadd.f32 %v6185_v37, %v6184_v39  ;;  %v5160_v16 = vsel %vm816_vm1, %v5154_v21, 0.0  ;;  %v6214_v23 = vadd.f32 %v6213_v10, %v6212_v28  ;;  %v5896_v22 = vld [vmem:[%s763_s7] ss:$0 sm:$0xff] }
 0x97d   : > { %v6187_v42 = vpop.f32.mrf.mxu0  ;;  %5161 = vadd.xlane.f32.xlu1 %v5160_v16  ;;  %v6215_v30 = vpop.f32.mrf.mxu1  ;;  %v5897_v28 = vld [vmem:[%s766_s19] ss:$0 sm:$0xff]  ;;  %s8206_s19 = sld [smem:[#allocation15_spill]] (!%p5898_p6) }
 0x97e   : > { %v5099_v18 = vadd.f32 %v6186_v15, %v5050_v8  ;;  %v5155_v59 = vadd.f32 %v5143_v40, %v7650_v35 }
 0x97f   : > { %v6188_v20 = vpop.f32.mrf.mxu0  ;;  %v6216_v34 = vpop.f32.mrf.mxu1 }
 0x980   : > { %v5148_v43 = vadd.f32 %v6214_v23, %v5099_v18  ;;  %v6189_v47 = vadd.f32 %v6188_v20, %v6187_v42  ;;  %v5163_v62 = vsel %vm816_vm1, %v5155_v59, 0.0  ;;  %v6217_v52 = vadd.f32 %v6216_v34, %v6215_v30 }
 0x981   : > { %5164 = vadd.xlane.f32.xlu0 %v5163_v62 }
 0x982   : > { %v5102_v63 = vadd.f32 %v6189_v47, %v5053_v17  ;;  %v5156_v1 = vadd.f32 %v5148_v43, %v7671_v9 }
 0x984   : > { %v5151_v13 = vadd.f32 %v6217_v52, %v5102_v63  ;;  %v5166_v3 = vsel %vm816_vm1, %v5156_v1, 0.0 }
 0x985   : > { %5167 = vadd.xlane.f32.xlu1 %v5166_v3 }
 0x986   : > { %v5157_v2 = vadd.f32 %v5151_v13, %v8205_v50 }
 0x988   : > { %v5169_v35 = vsel %vm816_vm1, %v5157_v2, 0.0 }
 0x989   : > { %5170 = vadd.xlane.f32.xlu0 %v5169_v35 }
 0xa06   : > { %v5162_v56 = vpop.xlane.xlu1 %5161 }
 0xa07   : > { %v5172_v25 = vmul.f32 0.03125, %v5162_v56 }
 0xa09   : > { %v5176_v54 = vsub.f32 %v5154_v21, %v5172_v25 }
 0xa0a   : > { %v5165_v32 = vpop.xlane.xlu0 %5164 }
 0xa0b   : > { %v5173_v38 = vmul.f32 0.03125, %v5165_v32  ;;  %v5180_v27 = vmul.f32 %v5176_v54, %v5176_v54 }
 0xa0d   : > { %v5177_v5 = vsub.f32 %v5155_v59, %v5173_v38  ;;  %v5184_v61 = vsel %vm816_vm1, %v5180_v27, 0.0 }
 0xa0e   : > { %5185 = vadd.xlane.f32.xlu1 %v5184_v61  ;;  %v5168_v9 = vpop.xlane.xlu1 %5167 }
 0xa0f   : > { %v5174_v12 = vmul.f32 0.03125, %v5168_v9  ;;  %v5181_v46 = vmul.f32 %v5177_v5, %v5177_v5 }
 0xa11   : > { %v5178_v49 = vsub.f32 %v5156_v1, %v5174_v12  ;;  %v5187_v41 = vsel %vm816_vm1, %v5181_v46, 0.0 }
 0xa12   : > { %5188 = vadd.xlane.f32.xlu0 %v5187_v41  ;;  %v5171_v36 = vpop.xlane.xlu0 %5170 }
 0xa13   : > { %v5175_v26 = vmul.f32 0.03125, %v5171_v36  ;;  %v5182_v4 = vmul.f32 %v5178_v49, %v5178_v49 }
 0xa15   : > { %v5179_v11 = vsub.f32 %v5157_v2, %v5175_v26  ;;  %v5190_v7 = vsel %vm816_vm1, %v5182_v4, 0.0 }
 0xa16   : > { %5191 = vadd.xlane.f32.xlu1 %v5190_v7 }
 0xa17   : > { %v5183_v31 = vmul.f32 %v5179_v11, %v5179_v11 }
 0xa19   : > { %v5193_v53 = vsel %vm816_vm1, %v5183_v31, 0.0 }
 0xa1a   : > { %5194 = vadd.xlane.f32.xlu0 %v5193_v53 }
 0xa97   : > { %v5186_v29 = vpop.xlane.xlu1 %5185 }
 0xa98   : > { %v5196_v24 = vmul.f32 0.03125, %v5186_v29 }
 0xa9a   : > { %v5200_v45 = vadd.f32 1e-05, %v5196_v24 }
 0xa9b   : > { %v5189_v19 = vpop.xlane.xlu0 %5188 }
 0xa9c   : > { %6712 = vrsqrt.f32 %v5200_v45  ;;  %v5197_v48 = vmul.f32 0.03125, %v5189_v19 }
 0xa9e   : > { %v5201_v0 = vadd.f32 1e-05, %v5197_v48 }
 0xa9f   : > { %v5192_v51 = vpop.xlane.xlu1 %5191 }
 0xaa0   : > { %6714 = vrsqrt.f32 %v5201_v0  ;;  %v5198_v58 = vmul.f32 0.03125, %v5192_v51 }
 0xaa2   : > { %v5202_v33 = vadd.f32 1e-05, %v5198_v58 }
 0xaa3   : > { %v5195_v6 = vpop.xlane.xlu0 %5194 }
 0xaa4   : > { %6716 = vrsqrt.f32 %v5202_v33  ;;  %v5199_v55 = vmul.f32 0.03125, %v5195_v6 }
 0xaa6   : > { %v5203_v39 = vadd.f32 1e-05, %v5199_v55 }
 0xaa8   : > { %6718 = vrsqrt.f32 %v5203_v39 }
 0xaa9   : > { %v6713_v60 = vpop.eup %6712 }
 0xaaa   : > { %v5208_v57 = vmul.f32 %v6713_v60, %v5176_v54 }
 0xaac   : > { %v5218_v21 = vmul.f32 %v5896_v22, %v5208_v57 }
 0xaad   : > { %v6715_v8 = vpop.eup %6714 }
 0xaae   : > { %v8068_v37 = vadd.f32 %v5897_v28, %v5218_v21  ;;  %v5209_v14 = vmul.f32 %v6715_v8, %v5177_v5 }
 0xab0   : > { %5232 = vst.msk [vmem:[#allocation2] sm:$0xff] %vm816_vm1, %v8068_v37  ;;  %v5219_v40 = vmul.f32 %v5896_v22, %v5209_v14 }
 0xab1   : > { %v6717_v15 = vpop.eup %6716 }
 0xab2   : > { %v8072_v10 = vadd.f32 %v5897_v28, %v5219_v40  ;;  %v5210_v16 = vmul.f32 %v6717_v15, %v5178_v49 }
 0xab4   : > { %5233 = vst.msk [vmem:[#allocation2 + $0x8] sm:$0xff] %vm816_vm1, %v8072_v10  ;;  %v5220_v42 = vmul.f32 %v5896_v22, %v5210_v16 }
 0xab5   : > { %v6719_v44 = vpop.eup %6718 }
 0xab6   : > { %v8076_v18 = vadd.f32 %v5897_v28, %v5220_v42  ;;  %v5211_v23 = vmul.f32 %v6719_v44, %v5179_v11 }
 0xab8   : > { %5234 = vst.msk [vmem:[#allocation2 + $0x10] sm:$0xff] %vm816_vm1, %v8076_v18  ;;  %v5221_v30 = vmul.f32 %v5896_v22, %v5211_v23  ;;  %5239 = sbr.rel (%p5898_p6) target bundleno = 3073 (0xc01), region = 88 }
 0xaba   : > { %v8080_v59 = vadd.f32 %v5897_v28, %v5221_v30 }
 0xabc   : > { %5235 = vst.msk [vmem:[#allocation2 + $0x18] sm:$0xff] %vm816_vm1, %v8080_v59 }
 0xabd   : > { %v5246_v20 = vld [vmem:[%s8206_s19 + $0x10] sm:$0xff]  ;;  %vm5300_vm7 = vcmask 7168   ;;  %v5244_v17 = vld [vmem:[%s8206_s19] sm:$0xff]  ;;  %v5247_v43 = vld [vmem:[%s8206_s19 + $0x18] sm:$0xff]  ;;  %5240 = vst.msk [vmem:[#allocation3] sm:$0xff] %vm816_vm1, %v8068_v37  ;;  %v6833_v47 = vmov 0  }
 0xabe   : > { %5241 = vst.msk [vmem:[#allocation3 + $0x8] sm:$0xff] %vm816_vm1, %v8072_v10  ;;  %5242 = vst.msk [vmem:[#allocation3 + $0x10] sm:$0xff] %vm816_vm1, %v8076_v18  ;;  %6725 = vset.pattern.permute.xlu1 %v6833_v47  ;;  %6724 = vset.pattern.permute.xlu0 %v6833_v47  ;;  %v5315_v34 = vsel %vm5300_vm7, %v5246_v20, 0.0  ;;  %v5301_v62 = vsel %vm5300_vm7, %v5244_v17, 0.0  ;;  %v5322_v63 = vsel %vm5300_vm7, %v5247_v43, 0.0  ;;  %v5245_v52 = vld [vmem:[%s8206_s19 + $0x8] sm:$0xff] }
 0xabf   : > { %5243 = vst.msk [vmem:[#allocation3 + $0x18] sm:$0xff] %vm816_vm1, %v8080_v59  ;;  %5260 = vperm.xlu1 %6725, %v5246_v20   ;;  %v5316_v1 = vrot.slane %v5315_v34, 4  ;;  %5250 = vperm.xlu0 %6724, %v5244_v17   ;;  %v5302_v13 = vrot.slane %v5301_v62, 4  ;;  %v5323_v3 = vrot.slane %v5322_v63, 4  ;;  %v5308_v50 = vsel %vm5300_vm7, %v5245_v52, 0.0 }
 0xac0   : > { %v5309_v2 = vrot.slane %v5308_v50, 4  ;;  %vm5389_vm8 = vcmask 253952  }
 0xac1   : > { %v5317_v35 = vadd.f32 %v5316_v1, %v5315_v34  ;;  %v5303_v56 = vadd.f32 %v5302_v13, %v5301_v62  ;;  %v5324_v25 = vadd.f32 %v5323_v3, %v5322_v63 }
 0xac2   : > { %v5310_v54 = vadd.f32 %v5309_v2, %v5308_v50 }
 0xac3   : > { %v5318_v32 = vrot.slane %v5317_v35, 2  ;;  %v5304_v38 = vrot.slane %v5303_v56, 2  ;;  %v5325_v27 = vrot.slane %v5324_v25, 2  ;;  %5265 = vperm.xlu1 %6725, %v5247_v43   ;;  %5255 = vperm.xlu0 %6724, %v5245_v52  }
 0xac4   : > { %v5311_v5 = vrot.slane %v5310_v54, 2 }
 0xac5   : > { %v5319_v61 = vadd.f32 %v5318_v32, %v5317_v35  ;;  %v5305_v9 = vadd.f32 %v5304_v38, %v5303_v56  ;;  %v5326_v12 = vadd.f32 %v5325_v27, %v5324_v25 }
 0xac6   : > { %v5312_v46 = vadd.f32 %v5311_v5, %v5310_v54 }
 0xac7   : > { %v5306_v49 = vrot.slane %v5305_v9, 1  ;;  %v5327_v41 = vrot.slane %v5326_v12, 1  ;;  %v5320_v36 = vrot.slane %v5319_v61, 1 }
 0xac8   : > { %v5313_v26 = vrot.slane %v5312_v46, 1 }
 0xac9   : > { %v5307_v4 = vadd.f32 %v5306_v49, %v5305_v9  ;;  %v5321_v11 = vadd.f32 %v5320_v36, %v5319_v61  ;;  %v5328_v31 = vadd.f32 %v5327_v41, %v5326_v12 }
 0xaca   : > { %v5314_v7 = vadd.f32 %v5313_v26, %v5312_v46 }
 0xacb   : > { %v5329_v53 = vmax.f32 %v5307_v4, 1.0  ;;  %v5331_v24 = vmax.f32 %v5321_v11, 1.0  ;;  %v5332_v45 = vmax.f32 %v5328_v31, 1.0 }
 0xacc   : > { %v5330_v29 = vmax.f32 %v5314_v7, 1.0 }
 0xacd   : > { %5335 = vperm.xlu0 %6724, %v5329_v53  }
 0xace   : > { %5340 = vperm.xlu1 %6725, %v5330_v29  }
 0xad1   : > { %5345 = vperm.xlu0 %6724, %v5331_v24  }
 0xad2   : > { %5350 = vperm.xlu1 %6725, %v5332_v45  }
 0xb3a   : > { %v5261_v19 = vpop.permute.xlu1 %5260  ;;  %v5251_v48 = vpop.permute.xlu0 %5250 }
 0xb3b   : > { %v5268_v0 = vmul.f32 %v5251_v48, %v8068_v37  ;;  %v5270_v51 = vmul.f32 %v5261_v19, %v8076_v18 }
 0xb3d   : > { %v5272_v58 = vsel %vm816_vm1, %v5268_v0, 0.0  ;;  %v5286_v57 = vsel %vm816_vm1, %v5270_v51, 0.0 }
 0xb3e   : > { %v5266_v33 = vpop.permute.xlu1 %5265  ;;  %v5256_v6 = vpop.permute.xlu0 %5255  ;;  %v5273_v60 = vrot.slane %v5272_v58, 4  ;;  %v5287_v8 = vrot.slane %v5286_v57, 4 }
 0xb3f   : > { %v5271_v55 = vmul.f32 %v5266_v33, %v8080_v59  ;;  %v5269_v39 = vmul.f32 %v5256_v6, %v8072_v10 }
 0xb40   : > { %v5274_v37 = vadd.f32 %v5273_v60, %v5272_v58  ;;  %v5288_v16 = vadd.f32 %v5287_v8, %v5286_v57 }
 0xb41   : > { %v5279_v22 = vsel %vm816_vm1, %v5269_v39, 0.0  ;;  %v5293_v21 = vsel %vm816_vm1, %v5271_v55, 0.0 }
 0xb42   : > { %v5280_v28 = vrot.slane %v5279_v22, 4  ;;  %v5294_v14 = vrot.slane %v5293_v21, 4  ;;  %v5275_v42 = vrot.slane %v5274_v37, 2  ;;  %v5289_v30 = vrot.slane %v5288_v16, 2 }
 0xb44   : > { %v5281_v40 = vadd.f32 %v5280_v28, %v5279_v22  ;;  %v5295_v18 = vadd.f32 %v5294_v14, %v5293_v21  ;;  %v5276_v59 = vadd.f32 %v5275_v42, %v5274_v37  ;;  %v5290_v47 = vadd.f32 %v5289_v30, %v5288_v16 }
 0xb46   : > { %v5282_v23 = vrot.slane %v5281_v40, 2  ;;  %v5296_v17 = vrot.slane %v5295_v18, 2  ;;  %v5277_v34 = vrot.slane %v5276_v59, 1  ;;  %v5291_v52 = vrot.slane %v5290_v47, 1 }
 0xb48   : > { %v5336_v15 = vpop.permute.xlu0 %5335  ;;  %v5283_v43 = vadd.f32 %v5282_v23, %v5281_v40  ;;  %v5297_v62 = vadd.f32 %v5296_v17, %v5295_v18  ;;  %v5278_v1 = vadd.f32 %v5277_v34, %v5276_v59  ;;  %v5292_v54 = vadd.f32 %v5291_v52, %v5290_v47 }
 0xb49   : > { %v5341_v44 = vpop.permute.xlu1 %5340  ;;  %6726 = vrcp.f32 %v5336_v15 }
 0xb4a   : > { %6728 = vrcp.f32 %v5341_v44  ;;  %v5284_v63 = vrot.slane %v5283_v43, 1  ;;  %v5298_v3 = vrot.slane %v5297_v62, 1 }
 0xb4c   : > { %v5346_v10 = vpop.permute.xlu0 %5345  ;;  %v5285_v50 = vadd.f32 %v5284_v63, %v5283_v43  ;;  %v5299_v27 = vadd.f32 %v5298_v3, %v5297_v62 }
 0xb4d   : > { %v5351_v20 = vpop.permute.xlu1 %5350  ;;  %6730 = vrcp.f32 %v5346_v10 }
 0xb4e   : > { %6732 = vrcp.f32 %v5351_v20 }
 0xb56   : > { %v6727_v13 = vpop.eup %6726 }
 0xb57   : > { %v6729_v2 = vpop.eup %6728  ;;  %v5354_v35 = vmul.f32 %v6727_v13, %v5278_v1 }
 0xb58   : > { %v5356_v56 = vmul.f32 %v6729_v2, %v5285_v50 }
 0xb59   : > { %v5361_v25 = vmul.f32 %v5354_v35, %v5354_v35 }
 0xb5a   : > { %v6731_v32 = vpop.eup %6730  ;;  %v5362_v38 = vmul.f32 %v5356_v56, %v5356_v56 }
 0xb5b   : > { %v6733_v5 = vpop.eup %6732  ;;  %v5365_v61 = vsel %vm816_vm1, %v5361_v25, 0.0  ;;  %v5358_v9 = vmul.f32 %v6731_v32, %v5292_v54 }
 0xb5c   : > { %v5368_v12 = vsel %vm816_vm1, %v5362_v38, 0.0  ;;  %5366 = vadd.xlane.f32.xlu0 %v5365_v61  ;;  %v5360_v46 = vmul.f32 %v6733_v5, %v5299_v27 }
 0xb5d   : > { %5369 = vadd.xlane.f32.xlu1 %v5368_v12  ;;  %v5363_v49 = vmul.f32 %v5358_v9, %v5358_v9 }
 0xb5e   : > { %v5364_v36 = vmul.f32 %v5360_v46, %v5360_v46 }
 0xb5f   : > { %v5371_v41 = vsel %vm816_vm1, %v5363_v49, 0.0 }
 0xb60   : > { %5372 = vadd.xlane.f32.xlu0 %v5371_v41  ;;  %v5374_v26 = vsel %vm816_vm1, %v5364_v36, 0.0 }
 0xb64   : > { %5375 = vadd.xlane.f32.xlu0 %v5374_v26 }
 0xbe5   : > { %v5367_v4 = vpop.xlane.xlu0 %5366 }
 0xbe6   : > { %v5370_v11 = vpop.xlane.xlu1 %5369  ;;  %v5377_v7 = vmax.f32 %v5367_v4, 1e-24 }
 0xbe7   : > { %v5378_v31 = vmax.f32 %v5370_v11, 1e-24 }
 0xbe8   : > { %6734 = vrsqrt.f32 %v5377_v7 }
 0xbe9   : > { %6736 = vrsqrt.f32 %v5378_v31  ;;  %v5373_v53 = vpop.xlane.xlu0 %5372 }
 0xbea   : > { %v5379_v29 = vmax.f32 %v5373_v53, 1e-24 }
 0xbec   : > { %6738 = vrsqrt.f32 %v5379_v29 }
 0xbed   : > { %v5376_v24 = vpop.xlane.xlu0 %5375 }
 0xbee   : > { %v5380_v45 = vmax.f32 %v5376_v24, 1e-24 }
 0xbf0   : > { %6740 = vrsqrt.f32 %v5380_v45 }
 0xbf5   : > { %v6735_v19 = vpop.eup %6734 }
 0xbf6   : > { %v6737_v48 = vpop.eup %6736  ;;  %v5385_v0 = vmul.f32 %v6735_v19, %v5354_v35 }
 0xbf7   : > { %v5386_v51 = vmul.f32 %v6737_v48, %v5356_v56 }
 0xbf8   : > { %5390 = vst.msk [vmem:[#allocation5] sm:$0x1] %vm5389_vm8, %v5385_v0 }
 0xbf9   : > { %v6739_v58 = vpop.eup %6738  ;;  %5391 = vst.msk [vmem:[#allocation5 + $0x1] sm:$0x1] %vm5389_vm8, %v5386_v51 }
 0xbfa   : > { %v5387_v33 = vmul.f32 %v6739_v58, %v5358_v9 }
 0xbfc   : > { %5392 = vst.msk [vmem:[#allocation5 + $0x2] sm:$0x1] %vm5389_vm8, %v5387_v33 }
 0xbfd   : > { %v6741_v6 = vpop.eup %6740 }
 0xbfe   : > { %v5388_v55 = vmul.f32 %v6741_v6, %v5360_v46 }
 0xc00   : > { %5393 = vst.msk [vmem:[#allocation5 + $0x3] sm:$0x1] %vm5389_vm8, %v5388_v55 }
 0xc01 PF: > { %s8207_s15 = sld [smem:[#allocation10_spill]]  ;;  %s6834_s27 = smov [#allocation3]  }
 0xc02   : > { %s5403_s1 = sshll.u32 %s6834_s27, 4  ;;  %s6835_s0 = smov [#allocation5]   ;;  %s5404_s1 = int_to_ptr.vmem [resolvable:$true] %s5403_s1 }
 0xc03   : > { %s5419_s20 = sshll.u32 %s6835_s0, 4  ;;  %s6742_s22 = scalar_lea.vmem %s5404_s1, 512  ;;  %s5420_s20 = int_to_ptr.vmem [resolvable:$true] %s5419_s20 }
 0xc04   : > { %p6743_p8 = scmp.ne.s32.totalorder %s5404_s1, %s6742_s22  ;;  %p6749_p11 = scmp.lt.s32.totalorder %s5404_s1, %s5404_s1 }
 0xc05   : > { %p6750_p12 = scmp.lt.s32.totalorder %s6742_s22, %s6742_s22 }
 0xc07   : > { %s8208_s23 = sadd.s32 4294967295, %s8207_s15   ;;  %p6751_p13 = por %p6750_p12, %p6749_p11 }
 0xc08   : > { %p8123_p7 = scmp.eq.s32.totalorder %s8208_s23, 1 }
 0xc0a   : > { %p6744_p9 = pnand %p6743_p8, %p8123_p7 }
 0xc0c   : > { %p6745_p10 = pneg %p6744_p9 }
 0xc0e   : > { %p6752_p0 = pnand %p6751_p13, %p6745_p10 }
 0xc10   : > { %6755 = shalt.err (!%p6752_p0)
}
 0xc11   : > { %s6836_s2 = smov 128   ;;  %s8210_s26 = sld [smem:[#allocation20_spill]] }
 0xc12   : > { %s6766_s29 = scalar_lea.vmem %s5420_s20, 64  ;;  %p6773_p4 = scmp.lt.s32.totalorder %s5420_s20, %s5420_s20 }
 0xc13   : > { %p6767_p1 = scmp.ne.s32.totalorder %s5420_s20, %s6766_s29  ;;  %p6774_p5 = scmp.lt.s32.totalorder %s6766_s29, %s6766_s29 }
 0xc15   : > { %p6768_p2 = pnand %p6767_p1, %p8123_p7  ;;  %p6775_p6 = por %p6774_p5, %p6773_p4 }
 0xc17   : > { %6427 = dma.vmem_to_hbm [thread:$0]  (%p8123_p7), %s5404_s1, 512, %s8210_s26, [#allocation4], %s6836_s2, %s6836_s2, %s6829_s30  }
 0xc18   : > { %p6769_p3 = pneg %p6768_p2 }
 0xc1a   : > { %p6776_p8 = pnand %p6775_p6, %p6769_p3 }
 0xc1c   : > { %6779 = shalt.err (!%p6776_p8)
}
 0xc1d   : > { %s6837_s5 = smov 1   ;;  %s8211_s21 = sld [smem:[#allocation21_spill]] }
 0xc23   : > { %6429 = dma.vmem_to_hbm [thread:$0]  (%p8123_p7), %s5420_s20, 64, %s8211_s21, [#allocation6], %s6830_s3, %s6830_s3, %s6837_s5  }
 0xc24   : > { %6803 = dma.done.wait (%p8123_p7), [#allocation4], 512  }
 0xc25   : > { %6805 = vsyncadd (%p8123_p7), [#allocation4], 4294966784 }
 0xc26   : > { %6807 = dma.done.wait (%p8123_p7), [#allocation6], 64  }
 0xc27   : > { %6809 = vsyncadd (%p8123_p7), [#allocation6], 4294967232 }
 0xc28 PF: > { %s8212_s30 = sld [smem:[#allocation10_spill]] }
 0xc29   : > { %s8213_s21 = sld [smem:[#allocation9_spill]] }
 0xc2a   : > { %s8214_s22 = sld [smem:[#allocation11_spill]] }
 0xc2e   : > { %s29_s23 = sadd.s32 1, %s8212_s30  }
 0xc2f   : > { %p26_p9 = scmp.ge.s32.totalorder %s29_s23, 4  }
 0xc31   :  { %28 = sbr.rel (!%p26_p9) target bundleno = 13 (0xd), region = 167 }
 0xc36   :  { %5439 = vsyncpa [#allocation4], 1 }
 0xc37   :  { %5441 = vsyncpa [#allocation4 + $0x1], 1 }
 0xc38   :  { %5442 = vsyncpa [#allocation6], 1 }

</bundles_post_ra>
